<compile_context>
chip_gen: v7x
topology: tpu7x:2x2x1
jax: 0.10.0
libtpu: 0.0.40
codegen_flags: <defaults>
</compile_context>

<pallas_src>
import functools

import jax
import jax.numpy as jnp
import numpy as np
from jax import lax
from jax.experimental import pallas as pl
from jax.experimental.pallas import tpu as pltpu

_LPAD = 8  # interior starts at column _LPAD (sublane-aligned); left halo at 7


def _unet_stack_kernel(x_ref, w_ref, b_ref, o_ref, pad_ref, *,
                       H, W, Cin, Cp, Cout, n_layers):
    """Runs the whole conv stack for one batch element.

    x_ref   : (1, H, W, Cin)        input image (true channel count)
    w_ref   : (L, 9*Cp, Cout)       packed per-tap weight slabs
    b_ref   : (L, 1, Cout) f32      biases
    o_ref   : (1, H, W, Cout)       final-layer output
    pad_ref : (H+2, _LPAD+W+1, Cp)  resident activation; interior rows [1,H+1),
                                    cols [_LPAD, _LPAD+W); 1-pixel halo ring.
    """
    f32 = jnp.float32
    c0 = _LPAD
    pad_cols = pad_ref.shape[1]

    # Zero only the 1-pixel halo ring.  It is re-zeroed every grid step, so
    # correctness never depends on which core ran the first step.  The interior
    # is never zeroed: layer 0 reads only channels [0, Cin), freshly written
    # below, and layer l>0 reads only channels [0, Cout), freshly written by
    # the previous layer.
    zrow = jnp.zeros((1, pad_cols, Cp), pad_ref.dtype)
    pad_ref[0:1, :, :] = zrow
    pad_ref[H + 1:H + 2, :, :] = zrow
    zcol = jnp.zeros((H, 1, Cp), pad_ref.dtype)
    pad_ref[1:H + 1, c0 - 1:c0, :] = zcol
    pad_ref[1:H + 1, c0 + W:c0 + W + 1, :] = zcol

    # Fresh input for this batch element (only its true Cin channels).
    pad_ref[1:H + 1, c0:c0 + W, :Cin] = x_ref[0].astype(pad_ref.dtype)

    def conv_taps(l, k_ch):
        """Sum over the 9 taps of layer `l`, contracting its true K=k_ch chans."""
        acc = None
        for t in range(9):
            ky, kx = divmod(t, 3)
            tap = pad_ref[ky:ky + H, c0 - 1 + kx:c0 - 1 + kx + W, :k_ch]
            tap = tap.reshape(H * W, k_ch)
            w_t = w_ref[l, t * Cp:t * Cp + k_ch, :]
            if k_ch < 8:
                # Tiny-K input layer: rank-1 VPU updates beat a skinny K=Cin
                # MXU matmul (and stay f32 for v5e's f32-only VALU).
                for c in range(k_ch):
                    term = (tap[:, c:c + 1].astype(f32) *
                            w_t[c:c + 1, :].astype(f32))
                    acc = term if acc is None else acc + term
            else:
                part = jnp.dot(tap, w_t, preferred_element_type=f32)
                acc = part if acc is None else acc + part
        return acc

    # Hidden layers: conv + bias + ReLU, written back to the sublane-aligned
    # interior of the resident activation.
    for l in range(n_layers - 1):
        k_ch = Cin if l == 0 else Cout
        act = jnp.maximum(conv_taps(l, k_ch) + b_ref[l].astype(f32), 0.0)
        pad_ref[1:H + 1, c0:c0 + W, :Cout] = (
            act.reshape(H, W, Cout).astype(pad_ref.dtype))

    # Last layer: conv + bias, no ReLU, straight to the output block.
    l_last = n_layers - 1
    k_last = Cin if l_last == 0 else Cout
    out = conv_taps(l_last, k_last) + b_ref[l_last].astype(f32)
    o_ref[...] = out.reshape(1, H, W, Cout).astype(o_ref.dtype)


def _pack_weight(w_hwio, Cp):
    """(3, 3, Cin, Cout) HWIO -> (9*Cp, Cout) per-tap slab.

    Row (ky*3 + kx)*Cp + c holds w[ky, kx, c, :].  Rows with c >= Cin are zero
    and are never read by the kernel (each layer contracts only its true K);
    padding to Cp only exists so all layers stack into one array.
    """
    kh, kw, cin, cout = w_hwio.shape
    w = jnp.zeros((kh, kw, Cp, cout), w_hwio.dtype)
    w = w.at[:, :, :cin, :].set(w_hwio)
    return w.reshape(kh * kw * Cp, cout)


def unet_cnn_forward(images_nchw, params, compute_dtype=jnp.float32):
    """Matches UNet_CNN.forward: ReLU after every conv except the last."""
    w0 = params[0][0]
    in_channel, layer_size = w0.shape[2], w0.shape[3]
    Cp = max(in_channel, layer_size)
    L = len(params)

    # NCHW -> NHWC; the channel dim is NOT padded (review #4).
    x = jnp.transpose(images_nchw, (0, 2, 3, 1)).astype(jnp.float32)
    N, H, W, _ = x.shape

    w_all = jnp.stack([_pack_weight(w, Cp) for (w, _) in params]
                      ).astype(compute_dtype)                 # (L, 9*Cp, C)
    b_all = jnp.stack([b.reshape(1, layer_size) for (_, b) in params]
                      ).astype(jnp.float32)                   # (L, 1, C)

    pad_cols = _LPAD + W + 1
    act_item = jnp.dtype(compute_dtype).itemsize

    kernel = functools.partial(
        _unet_stack_kernel, H=H, W=W, Cin=in_channel, Cp=Cp, Cout=layer_size,
        n_layers=L)

    # Scoped-VMEM budget sized to the real footprint (tile-padded, double
    # buffered) with 2x headroom, clamped to sane bounds (review #7).
    vmem_bytes = (
        2 * H * W * max(in_channel, 8) * 4                        # input blocks
        + 2 * H * W * max(layer_size, 128) * 4                    # output blocks
        + 2 * L * 9 * Cp * max(layer_size, 128) * act_item        # weights
        + 2 * L * 8 * 128 * 4                                     # biases
        + (H + 2) * pad_cols * max(Cp, 128) * act_item)           # resident act
    vmem_limit = int(min(120 << 20, max(32 << 20, 2 * vmem_bytes)))

    out_nhwc = pl.pallas_call(
        kernel,
        out_shape=jax.ShapeDtypeStruct((N, H, W, layer_size), jnp.float32),
        grid_spec=pltpu.PrefetchScalarGridSpec(
            num_scalar_prefetch=0,
            grid=(N,),
            in_specs=[
                pl.BlockSpec((1, H, W, in_channel), lambda n: (n, 0, 0, 0)),
                pl.BlockSpec((L, 9 * Cp, layer_size), lambda n: (0, 0, 0)),
                pl.BlockSpec((L, 1, layer_size), lambda n: (0, 0, 0)),
            ],
            out_specs=pl.BlockSpec((1, H, W, layer_size),
                                   lambda n: (n, 0, 0, 0)),
            scratch_shapes=[
                pltpu.VMEM((H + 2, pad_cols, Cp), compute_dtype),
            ],
        ),
        compiler_params=pltpu.CompilerParams(
            dimension_semantics=("parallel",),
            vmem_limit_bytes=vmem_limit),
    )(x, w_all, b_all)

    return jnp.transpose(out_nhwc, (0, 3, 1, 2))  # NHWC -> NCHW


def init_unet_cnn_params(key, k, layer_size=32, in_channel=1, kernel_size=3):
    """Deterministic synthetic params. Returns list of (w_hwio, b) per layer."""
    assert kernel_size == 3, "kernel specialized to 3x3 (padding=1)"
    params = []
    chans = [in_channel] + [layer_size] * (k + 1)
    for i in range(k + 1):
        cin, cout = chans[i], chans[i + 1]
        key, kw_key, kb_key = jax.random.split(key, 3)
        fan_in = cin * kernel_size * kernel_size
        bound = 1.0 / np.sqrt(fan_in)
        # PyTorch Conv2d weight layout is (Cout, Cin, kh, kw); transpose to HWIO.
        w_oihw = jax.random.uniform(
            kw_key, (cout, cin, kernel_size, kernel_size),
            minval=-bound, maxval=bound, dtype=jnp.float32)
        b = jax.random.uniform(
            kb_key, (cout,), minval=-bound, maxval=bound, dtype=jnp.float32)
        w_hwio = jnp.transpose(w_oihw, (2, 3, 1, 0))  # (kh, kw, Cin, Cout)
        params.append((w_hwio, b))
    return params


def _reference_forward(images_nchw, params):
    """Pure-JAX reference (lax.conv) for a sanity check."""
    x = images_nchw
    n_layers = len(params)
    for i, (w_hwio, b) in enumerate(params):
        w_oihw = jnp.transpose(w_hwio, (3, 2, 0, 1))
        y = lax.conv_general_dilated(
            x, w_oihw, window_strides=(1, 1), padding="SAME",
            dimension_numbers=("NCHW", "OIHW", "NCHW"))
        y = y + b.reshape(1, -1, 1, 1)
        x = jnp.maximum(y, 0.0) if i < n_layers - 1 else y
    return x


if __name__ == "__main__":
    key = jax.random.PRNGKey(0)
    k = 2            # number of hidden CNN layers
    layer_size = 32  # hidden channels
    in_channel = 1
    N, H, W = 2, 16, 16

    key, x_key = jax.random.split(key)
    images = jax.random.normal(x_key, (N, in_channel, H, W), dtype=jnp.float32)
    params = init_unet_cnn_params(key, k, layer_size, in_channel)

    fwd = jax.jit(unet_cnn_forward, static_argnames=("compute_dtype",))

    ref = _reference_forward(images, params)

    # f32 path: strict check against the lax.conv reference.
    out = jax.block_until_ready(fwd(images, params, compute_dtype=jnp.float32))
    np.testing.assert_allclose(np.asarray(out), np.asarray(ref),
                               rtol=1e-4, atol=1e-4)

    # bf16 resident-activation / MXU-input path (f32 accumulation).
    out_bf16 = jax.block_until_ready(
        fwd(images, params, compute_dtype=jnp.bfloat16))
    np.testing.assert_allclose(np.asarray(out_bf16), np.asarray(ref),
                               rtol=2e-2, atol=2e-2)

    print("KERNEL_OK")
</pallas_src>

<mosaic_0001>
module attributes {stable_mosaic.version = 11 : i64} {
  func.func @_unet_stack_kernel(%arg0: i32, %arg1: memref<1x16x16x1xf32, #tpu.memory_space<vmem>>, %arg2: memref<3x288x32xf32, #tpu.memory_space<vmem>>, %arg3: memref<3x1x32xf32, #tpu.memory_space<vmem>>, %arg4: memref<1x16x16x32xf32, #tpu.memory_space<vmem>>, %arg5: memref<18x25x32xf32, #tpu.memory_space<vmem>>) attributes {dimension_semantics = [#tpu.dimension_semantics<parallel>], iteration_bounds = array<i64: 2>, scalar_prefetch = 0 : i64, scratch_operands = 1 : i64, tpu.core_type = #tpu.core_type<tc>, window_params = [{transform_indices = @transform_0, window_bounds = array<i64: 1, 16, 16, 1>}, {pipeline_mode = #tpu.pipeline_mode<synchronous>, transform_indices = @transform_1, window_bounds = array<i64: 3, 288, 32>}, {pipeline_mode = #tpu.pipeline_mode<synchronous>, transform_indices = @transform_2, window_bounds = array<i64: 3, 1, 32>}, {transform_indices = @transform_3, window_bounds = array<i64: 1, 16, 16, 32>}]} {
    %cst = arith.constant 0.000000e+00 : f32
    %0 = vector.broadcast %cst : f32 to vector<1x25x32xf32>
    %c0 = arith.constant 0 : index
    %c0_0 = arith.constant 0 : index
    %c0_1 = arith.constant 0 : index
    %1 = vector.load %arg5[%c0, %c0_0, %c0_1] : memref<18x25x32xf32, #tpu.memory_space<vmem>>, vector<1x25x32xf32>
    tpu.vector_store %arg5[%c0, %c0_0, %c0_1], %0 {strides = array<i32>} : memref<18x25x32xf32, #tpu.memory_space<vmem>>, vector<1x25x32xf32>,
    %c17 = arith.constant 17 : index
    %c0_2 = arith.constant 0 : index
    %c0_3 = arith.constant 0 : index
    %2 = vector.load %arg5[%c17, %c0_2, %c0_3] : memref<18x25x32xf32, #tpu.memory_space<vmem>>, vector<1x25x32xf32>
    tpu.vector_store %arg5[%c17, %c0_2, %c0_3], %0 {strides = array<i32>} : memref<18x25x32xf32, #tpu.memory_space<vmem>>, vector<1x25x32xf32>,
    %cst_4 = arith.constant 0.000000e+00 : f32
    %3 = vector.broadcast %cst_4 : f32 to vector<16x1x32xf32>
    %c1 = arith.constant 1 : index
    %c7 = arith.constant 7 : index
    %c0_5 = arith.constant 0 : index
    %4 = vector.load %arg5[%c1, %c7, %c0_5] : memref<18x25x32xf32, #tpu.memory_space<vmem>>, vector<16x1x32xf32>
    tpu.vector_store %arg5[%c1, %c7, %c0_5], %3 {strides = array<i32>} : memref<18x25x32xf32, #tpu.memory_space<vmem>>, vector<16x1x32xf32>,
    %c1_6 = arith.constant 1 : index
    %c24 = arith.constant 24 : index
    %c0_7 = arith.constant 0 : index
    %5 = vector.load %arg5[%c1_6, %c24, %c0_7] : memref<18x25x32xf32, #tpu.memory_space<vmem>>, vector<16x1x32xf32>
    tpu.vector_store %arg5[%c1_6, %c24, %c0_7], %3 {strides = array<i32>} : memref<18x25x32xf32, #tpu.memory_space<vmem>>, vector<16x1x32xf32>,
    %c0_8 = arith.constant 0 : index
    %c0_9 = arith.constant 0 : index
    %c0_10 = arith.constant 0 : index
    %c0_11 = arith.constant 0 : index
    %6 = vector.load %arg1[%c0_8, %c0_9, %c0_10, %c0_11] : memref<1x16x16x1xf32, #tpu.memory_space<vmem>>, vector<1x16x16x1xf32>
    %7 = vector.shape_cast %6 : vector<1x16x16x1xf32> to vector<16x16x1xf32>
    %c1_12 = arith.constant 1 : index
    %c8 = arith.constant 8 : index
    %c0_13 = arith.constant 0 : index
    %8 = vector.load %arg5[%c1_12, %c8, %c0_13] : memref<18x25x32xf32, #tpu.memory_space<vmem>>, vector<16x16x1xf32>
    tpu.vector_store %arg5[%c1_12, %c8, %c0_13], %7 {strides = array<i32>} : memref<18x25x32xf32, #tpu.memory_space<vmem>>, vector<16x16x1xf32>,
    %c0_14 = arith.constant 0 : index
    %c7_15 = arith.constant 7 : index
    %c0_16 = arith.constant 0 : index
    %9 = vector.load %arg5[%c0_14, %c7_15, %c0_16] : memref<18x25x32xf32, #tpu.memory_space<vmem>>, vector<16x16x1xf32>
    %10 = vector.shape_cast %9 : vector<16x16x1xf32> to vector<256x1xf32>
    %c0_17 = arith.constant 0 : index
    %c0_18 = arith.constant 0 : index
    %c0_19 = arith.constant 0 : index
    %11 = vector.load %arg2[%c0_17, %c0_18, %c0_19] : memref<3x288x32xf32, #tpu.memory_space<vmem>>, vector<1x1x32xf32>
    %12 = vector.shape_cast %11 : vector<1x1x32xf32> to vector<1x32xf32>
    %13 = vector.broadcast %10 : vector<256x1xf32> to vector<256x32xf32>
    %14 = vector.broadcast %12 : vector<1x32xf32> to vector<256x32xf32>
    %15 = arith.mulf %13, %14 : vector<256x32xf32>
    %c0_20 = arith.constant 0 : index
    %c8_21 = arith.constant 8 : index
    %c0_22 = arith.constant 0 : index
    %16 = vector.load %arg5[%c0_20, %c8_21, %c0_22] : memref<18x25x32xf32, #tpu.memory_space<vmem>>, vector<16x16x1xf32>
    %17 = vector.shape_cast %16 : vector<16x16x1xf32> to vector<256x1xf32>
    %c0_23 = arith.constant 0 : index
    %c32 = arith.constant 32 : index
    %c0_24 = arith.constant 0 : index
    %18 = vector.load %arg2[%c0_23, %c32, %c0_24] : memref<3x288x32xf32, #tpu.memory_space<vmem>>, vector<1x1x32xf32>
    %19 = vector.shape_cast %18 : vector<1x1x32xf32> to vector<1x32xf32>
    %20 = vector.broadcast %17 : vector<256x1xf32> to vector<256x32xf32>
    %21 = vector.broadcast %19 : vector<1x32xf32> to vector<256x32xf32>
    %22 = arith.mulf %20, %21 : vector<256x32xf32>
    %23 = arith.addf %15, %22 : vector<256x32xf32>
    %c0_25 = arith.constant 0 : index
    %c9 = arith.constant 9 : index
    %c0_26 = arith.constant 0 : index
    %24 = vector.load %arg5[%c0_25, %c9, %c0_26] : memref<18x25x32xf32, #tpu.memory_space<vmem>>, vector<16x16x1xf32>
    %25 = vector.shape_cast %24 : vector<16x16x1xf32> to vector<256x1xf32>
    %c0_27 = arith.constant 0 : index
    %c64 = arith.constant 64 : index
    %c0_28 = arith.constant 0 : index
    %26 = vector.load %arg2[%c0_27, %c64, %c0_28] : memref<3x288x32xf32, #tpu.memory_space<vmem>>, vector<1x1x32xf32>
    %27 = vector.shape_cast %26 : vector<1x1x32xf32> to vector<1x32xf32>
    %28 = vector.broadcast %25 : vector<256x1xf32> to vector<256x32xf32>
    %29 = vector.broadcast %27 : vector<1x32xf32> to vector<256x32xf32>
    %30 = arith.mulf %28, %29 : vector<256x32xf32>
    %31 = arith.addf %23, %30 : vector<256x32xf32>
    %c1_29 = arith.constant 1 : index
    %c7_30 = arith.constant 7 : index
    %c0_31 = arith.constant 0 : index
    %32 = vector.load %arg5[%c1_29, %c7_30, %c0_31] : memref<18x25x32xf32, #tpu.memory_space<vmem>>, vector<16x16x1xf32>
    %33 = vector.shape_cast %32 : vector<16x16x1xf32> to vector<256x1xf32>
    %c0_32 = arith.constant 0 : index
    %c96 = arith.constant 96 : index
    %c0_33 = arith.constant 0 : index
    %34 = vector.load %arg2[%c0_32, %c96, %c0_33] : memref<3x288x32xf32, #tpu.memory_space<vmem>>, vector<1x1x32xf32>
    %35 = vector.shape_cast %34 : vector<1x1x32xf32> to vector<1x32xf32>
    %36 = vector.broadcast %33 : vector<256x1xf32> to vector<256x32xf32>
    %37 = vector.broadcast %35 : vector<1x32xf32> to vector<256x32xf32>
    %38 = arith.mulf %36, %37 : vector<256x32xf32>
    %39 = arith.addf %31, %38 : vector<256x32xf32>
    %c1_34 = arith.constant 1 : index
    %c8_35 = arith.constant 8 : index
    %c0_36 = arith.constant 0 : index
    %40 = vector.load %arg5[%c1_34, %c8_35, %c0_36] : memref<18x25x32xf32, #tpu.memory_space<vmem>>, vector<16x16x1xf32>
    %41 = vector.shape_cast %40 : vector<16x16x1xf32> to vector<256x1xf32>
    %c0_37 = arith.constant 0 : index
    %c128 = arith.constant 128 : index
    %c0_38 = arith.constant 0 : index
    %42 = vector.load %arg2[%c0_37, %c128, %c0_38] : memref<3x288x32xf32, #tpu.memory_space<vmem>>, vector<1x1x32xf32>
    %43 = vector.shape_cast %42 : vector<1x1x32xf32> to vector<1x32xf32>
    %44 = vector.broadcast %41 : vector<256x1xf32> to vector<256x32xf32>
    %45 = vector.broadcast %43 : vector<1x32xf32> to vector<256x32xf32>
    %46 = arith.mulf %44, %45 : vector<256x32xf32>
    %47 = arith.addf %39, %46 : vector<256x32xf32>
    %c1_39 = arith.constant 1 : index
    %c9_40 = arith.constant 9 : index
    %c0_41 = arith.constant 0 : index
    %48 = vector.load %arg5[%c1_39, %c9_40, %c0_41] : memref<18x25x32xf32, #tpu.memory_space<vmem>>, vector<16x16x1xf32>
    %49 = vector.shape_cast %48 : vector<16x16x1xf32> to vector<256x1xf32>
    %c0_42 = arith.constant 0 : index
    %c160 = arith.constant 160 : index
    %c0_43 = arith.constant 0 : index
    %50 = vector.load %arg2[%c0_42, %c160, %c0_43] : memref<3x288x32xf32, #tpu.memory_space<vmem>>, vector<1x1x32xf32>
    %51 = vector.shape_cast %50 : vector<1x1x32xf32> to vector<1x32xf32>
    %52 = vector.broadcast %49 : vector<256x1xf32> to vector<256x32xf32>
    %53 = vector.broadcast %51 : vector<1x32xf32> to vector<256x32xf32>
    %54 = arith.mulf %52, %53 : vector<256x32xf32>
    %55 = arith.addf %47, %54 : vector<256x32xf32>
    %c2 = arith.constant 2 : index
    %c7_44 = arith.constant 7 : index
    %c0_45 = arith.constant 0 : index
    %56 = vector.load %arg5[%c2, %c7_44, %c0_45] : memref<18x25x32xf32, #tpu.memory_space<vmem>>, vector<16x16x1xf32>
    %57 = vector.shape_cast %56 : vector<16x16x1xf32> to vector<256x1xf32>
    %c0_46 = arith.constant 0 : index
    %c192 = arith.constant 192 : index
    %c0_47 = arith.constant 0 : index
    %58 = vector.load %arg2[%c0_46, %c192, %c0_47] : memref<3x288x32xf32, #tpu.memory_space<vmem>>, vector<1x1x32xf32>
    %59 = vector.shape_cast %58 : vector<1x1x32xf32> to vector<1x32xf32>
    %60 = vector.broadcast %57 : vector<256x1xf32> to vector<256x32xf32>
    %61 = vector.broadcast %59 : vector<1x32xf32> to vector<256x32xf32>
    %62 = arith.mulf %60, %61 : vector<256x32xf32>
    %63 = arith.addf %55, %62 : vector<256x32xf32>
    %c2_48 = arith.constant 2 : index
    %c8_49 = arith.constant 8 : index
    %c0_50 = arith.constant 0 : index
    %64 = vector.load %arg5[%c2_48, %c8_49, %c0_50] : memref<18x25x32xf32, #tpu.memory_space<vmem>>, vector<16x16x1xf32>
    %65 = vector.shape_cast %64 : vector<16x16x1xf32> to vector<256x1xf32>
    %c0_51 = arith.constant 0 : index
    %c224 = arith.constant 224 : index
    %c0_52 = arith.constant 0 : index
    %66 = vector.load %arg2[%c0_51, %c224, %c0_52] : memref<3x288x32xf32, #tpu.memory_space<vmem>>, vector<1x1x32xf32>
    %67 = vector.shape_cast %66 : vector<1x1x32xf32> to vector<1x32xf32>
    %68 = vector.broadcast %65 : vector<256x1xf32> to vector<256x32xf32>
    %69 = vector.broadcast %67 : vector<1x32xf32> to vector<256x32xf32>
    %70 = arith.mulf %68, %69 : vector<256x32xf32>
    %71 = arith.addf %63, %70 : vector<256x32xf32>
    %c2_53 = arith.constant 2 : index
    %c9_54 = arith.constant 9 : index
    %c0_55 = arith.constant 0 : index
    %72 = vector.load %arg5[%c2_53, %c9_54, %c0_55] : memref<18x25x32xf32, #tpu.memory_space<vmem>>, vector<16x16x1xf32>
    %73 = vector.shape_cast %72 : vector<16x16x1xf32> to vector<256x1xf32>
    %c0_56 = arith.constant 0 : index
    %c256 = arith.constant 256 : index
    %c0_57 = arith.constant 0 : index
    %74 = vector.load %arg2[%c0_56, %c256, %c0_57] : memref<3x288x32xf32, #tpu.memory_space<vmem>>, vector<1x1x32xf32>
    %75 = vector.shape_cast %74 : vector<1x1x32xf32> to vector<1x32xf32>
    %76 = vector.broadcast %73 : vector<256x1xf32> to vector<256x32xf32>
    %77 = vector.broadcast %75 : vector<1x32xf32> to vector<256x32xf32>
    %78 = arith.mulf %76, %77 : vector<256x32xf32>
    %79 = arith.addf %71, %78 : vector<256x32xf32>
    %c0_58 = arith.constant 0 : index
    %c0_59 = arith.constant 0 : index
    %c0_60 = arith.constant 0 : index
    %80 = vector.load %arg3[%c0_58, %c0_59, %c0_60] : memref<3x1x32xf32, #tpu.memory_space<vmem>>, vector<1x1x32xf32>
    %81 = vector.shape_cast %80 : vector<1x1x32xf32> to vector<1x32xf32>
    %82 = vector.broadcast %81 : vector<1x32xf32> to vector<256x32xf32>
    %83 = arith.addf %79, %82 : vector<256x32xf32>
    %cst_61 = arith.constant 0.000000e+00 : f32
    %84 = vector.broadcast %cst_61 : f32 to vector<256x32xf32>
    %85 = arith.maximumf %83, %84 : vector<256x32xf32>
    %86 = vector.shape_cast %85 : vector<256x32xf32> to vector<16x16x32xf32>
    %c1_62 = arith.constant 1 : index
    %c8_63 = arith.constant 8 : index
    %c0_64 = arith.constant 0 : index
    %87 = vector.load %arg5[%c1_62, %c8_63, %c0_64] : memref<18x25x32xf32, #tpu.memory_space<vmem>>, vector<16x16x32xf32>
    tpu.vector_store %arg5[%c1_62, %c8_63, %c0_64], %86 {strides = array<i32>} : memref<18x25x32xf32, #tpu.memory_space<vmem>>, vector<16x16x32xf32>,
    %c0_65 = arith.constant 0 : index
    %c7_66 = arith.constant 7 : index
    %c0_67 = arith.constant 0 : index
    %88 = vector.load %arg5[%c0_65, %c7_66, %c0_67] : memref<18x25x32xf32, #tpu.memory_space<vmem>>, vector<16x16x32xf32>
    %89 = vector.shape_cast %88 : vector<16x16x32xf32> to vector<256x32xf32>
    %c1_68 = arith.constant 1 : index
    %c0_69 = arith.constant 0 : index
    %c0_70 = arith.constant 0 : index
    %90 = vector.load %arg2[%c1_68, %c0_69, %c0_70] : memref<3x288x32xf32, #tpu.memory_space<vmem>>, vector<1x32x32xf32>
    %91 = vector.shape_cast %90 : vector<1x32x32xf32> to vector<32x32xf32>
    %cst_71 = arith.constant dense<0.000000e+00> : vector<256x32xf32>
    %92 = tpu.matmul %89, %91, %cst_71 {dimension_numbers = #tpu.dot_dimension_numbers<[1], [0], [0], [1], [0, 0, 1, 1], [], []>} : vector<256x32xf32>, vector<32x32xf32>, vector<256x32xf32> -> vector<256x32xf32>
    %c0_72 = arith.constant 0 : index
    %c8_73 = arith.constant 8 : index
    %c0_74 = arith.constant 0 : index
    %93 = vector.load %arg5[%c0_72, %c8_73, %c0_74] : memref<18x25x32xf32, #tpu.memory_space<vmem>>, vector<16x16x32xf32>
    %94 = vector.shape_cast %93 : vector<16x16x32xf32> to vector<256x32xf32>
    %c1_75 = arith.constant 1 : index
    %c32_76 = arith.constant 32 : index
    %c0_77 = arith.constant 0 : index
    %95 = vector.load %arg2[%c1_75, %c32_76, %c0_77] : memref<3x288x32xf32, #tpu.memory_space<vmem>>, vector<1x32x32xf32>
    %96 = vector.shape_cast %95 : vector<1x32x32xf32> to vector<32x32xf32>
    %cst_78 = arith.constant dense<0.000000e+00> : vector<256x32xf32>
    %97 = tpu.matmul %94, %96, %cst_78 {dimension_numbers = #tpu.dot_dimension_numbers<[1], [0], [0], [1], [0, 0, 1, 1], [], []>} : vector<256x32xf32>, vector<32x32xf32>, vector<256x32xf32> -> vector<256x32xf32>
    %98 = arith.addf %92, %97 : vector<256x32xf32>
    %c0_79 = arith.constant 0 : index
    %c9_80 = arith.constant 9 : index
    %c0_81 = arith.constant 0 : index
    %99 = vector.load %arg5[%c0_79, %c9_80, %c0_81] : memref<18x25x32xf32, #tpu.memory_space<vmem>>, vector<16x16x32xf32>
    %100 = vector.shape_cast %99 : vector<16x16x32xf32> to vector<256x32xf32>
    %c1_82 = arith.constant 1 : index
    %c64_83 = arith.constant 64 : index
    %c0_84 = arith.constant 0 : index
    %101 = vector.load %arg2[%c1_82, %c64_83, %c0_84] : memref<3x288x32xf32, #tpu.memory_space<vmem>>, vector<1x32x32xf32>
    %102 = vector.shape_cast %101 : vector<1x32x32xf32> to vector<32x32xf32>
    %cst_85 = arith.constant dense<0.000000e+00> : vector<256x32xf32>
    %103 = tpu.matmul %100, %102, %cst_85 {dimension_numbers = #tpu.dot_dimension_numbers<[1], [0], [0], [1], [0, 0, 1, 1], [], []>} : vector<256x32xf32>, vector<32x32xf32>, vector<256x32xf32> -> vector<256x32xf32>
    %104 = arith.addf %98, %103 : vector<256x32xf32>
    %c1_86 = arith.constant 1 : index
    %c7_87 = arith.constant 7 : index
    %c0_88 = arith.constant 0 : index
    %105 = vector.load %arg5[%c1_86, %c7_87, %c0_88] : memref<18x25x32xf32, #tpu.memory_space<vmem>>, vector<16x16x32xf32>
    %106 = vector.shape_cast %105 : vector<16x16x32xf32> to vector<256x32xf32>
    %c1_89 = arith.constant 1 : index
    %c96_90 = arith.constant 96 : index
    %c0_91 = arith.constant 0 : index
    %107 = vector.load %arg2[%c1_89, %c96_90, %c0_91] : memref<3x288x32xf32, #tpu.memory_space<vmem>>, vector<1x32x32xf32>
    %108 = vector.shape_cast %107 : vector<1x32x32xf32> to vector<32x32xf32>
    %cst_92 = arith.constant dense<0.000000e+00> : vector<256x32xf32>
    %109 = tpu.matmul %106, %108, %cst_92 {dimension_numbers = #tpu.dot_dimension_numbers<[1], [0], [0], [1], [0, 0, 1, 1], [], []>} : vector<256x32xf32>, vector<32x32xf32>, vector<256x32xf32> -> vector<256x32xf32>
    %110 = arith.addf %104, %109 : vector<256x32xf32>
    %c1_93 = arith.constant 1 : index
    %c8_94 = arith.constant 8 : index
    %c0_95 = arith.constant 0 : index
    %111 = vector.load %arg5[%c1_93, %c8_94, %c0_95] : memref<18x25x32xf32, #tpu.memory_space<vmem>>, vector<16x16x32xf32>
    %112 = vector.shape_cast %111 : vector<16x16x32xf32> to vector<256x32xf32>
    %c1_96 = arith.constant 1 : index
    %c128_97 = arith.constant 128 : index
    %c0_98 = arith.constant 0 : index
    %113 = vector.load %arg2[%c1_96, %c128_97, %c0_98] : memref<3x288x32xf32, #tpu.memory_space<vmem>>, vector<1x32x32xf32>
    %114 = vector.shape_cast %113 : vector<1x32x32xf32> to vector<32x32xf32>
    %cst_99 = arith.constant dense<0.000000e+00> : vector<256x32xf32>
    %115 = tpu.matmul %112, %114, %cst_99 {dimension_numbers = #tpu.dot_dimension_numbers<[1], [0], [0], [1], [0, 0, 1, 1], [], []>} : vector<256x32xf32>, vector<32x32xf32>, vector<256x32xf32> -> vector<256x32xf32>
    %116 = arith.addf %110, %115 : vector<256x32xf32>
    %c1_100 = arith.constant 1 : index
    %c9_101 = arith.constant 9 : index
    %c0_102 = arith.constant 0 : index
    %117 = vector.load %arg5[%c1_100, %c9_101, %c0_102] : memref<18x25x32xf32, #tpu.memory_space<vmem>>, vector<16x16x32xf32>
    %118 = vector.shape_cast %117 : vector<16x16x32xf32> to vector<256x32xf32>
    %c1_103 = arith.constant 1 : index
    %c160_104 = arith.constant 160 : index
    %c0_105 = arith.constant 0 : index
    %119 = vector.load %arg2[%c1_103, %c160_104, %c0_105] : memref<3x288x32xf32, #tpu.memory_space<vmem>>, vector<1x32x32xf32>
    %120 = vector.shape_cast %119 : vector<1x32x32xf32> to vector<32x32xf32>
    %cst_106 = arith.constant dense<0.000000e+00> : vector<256x32xf32>
    %121 = tpu.matmul %118, %120, %cst_106 {dimension_numbers = #tpu.dot_dimension_numbers<[1], [0], [0], [1], [0, 0, 1, 1], [], []>} : vector<256x32xf32>, vector<32x32xf32>, vector<256x32xf32> -> vector<256x32xf32>
    %122 = arith.addf %116, %121 : vector<256x32xf32>
    %c2_107 = arith.constant 2 : index
    %c7_108 = arith.constant 7 : index
    %c0_109 = arith.constant 0 : index
    %123 = vector.load %arg5[%c2_107, %c7_108, %c0_109] : memref<18x25x32xf32, #tpu.memory_space<vmem>>, vector<16x16x32xf32>
    %124 = vector.shape_cast %123 : vector<16x16x32xf32> to vector<256x32xf32>
    %c1_110 = arith.constant 1 : index
    %c192_111 = arith.constant 192 : index
    %c0_112 = arith.constant 0 : index
    %125 = vector.load %arg2[%c1_110, %c192_111, %c0_112] : memref<3x288x32xf32, #tpu.memory_space<vmem>>, vector<1x32x32xf32>
    %126 = vector.shape_cast %125 : vector<1x32x32xf32> to vector<32x32xf32>
    %cst_113 = arith.constant dense<0.000000e+00> : vector<256x32xf32>
    %127 = tpu.matmul %124, %126, %cst_113 {dimension_numbers = #tpu.dot_dimension_numbers<[1], [0], [0], [1], [0, 0, 1, 1], [], []>} : vector<256x32xf32>, vector<32x32xf32>, vector<256x32xf32> -> vector<256x32xf32>
    %128 = arith.addf %122, %127 : vector<256x32xf32>
    %c2_114 = arith.constant 2 : index
    %c8_115 = arith.constant 8 : index
    %c0_116 = arith.constant 0 : index
    %129 = vector.load %arg5[%c2_114, %c8_115, %c0_116] : memref<18x25x32xf32, #tpu.memory_space<vmem>>, vector<16x16x32xf32>
    %130 = vector.shape_cast %129 : vector<16x16x32xf32> to vector<256x32xf32>
    %c1_117 = arith.constant 1 : index
    %c224_118 = arith.constant 224 : index
    %c0_119 = arith.constant 0 : index
    %131 = vector.load %arg2[%c1_117, %c224_118, %c0_119] : memref<3x288x32xf32, #tpu.memory_space<vmem>>, vector<1x32x32xf32>
    %132 = vector.shape_cast %131 : vector<1x32x32xf32> to vector<32x32xf32>
    %cst_120 = arith.constant dense<0.000000e+00> : vector<256x32xf32>
    %133 = tpu.matmul %130, %132, %cst_120 {dimension_numbers = #tpu.dot_dimension_numbers<[1], [0], [0], [1], [0, 0, 1, 1], [], []>} : vector<256x32xf32>, vector<32x32xf32>, vector<256x32xf32> -> vector<256x32xf32>
    %134 = arith.addf %128, %133 : vector<256x32xf32>
    %c2_121 = arith.constant 2 : index
    %c9_122 = arith.constant 9 : index
    %c0_123 = arith.constant 0 : index
    %135 = vector.load %arg5[%c2_121, %c9_122, %c0_123] : memref<18x25x32xf32, #tpu.memory_space<vmem>>, vector<16x16x32xf32>
    %136 = vector.shape_cast %135 : vector<16x16x32xf32> to vector<256x32xf32>
    %c1_124 = arith.constant 1 : index
    %c256_125 = arith.constant 256 : index
    %c0_126 = arith.constant 0 : index
    %137 = vector.load %arg2[%c1_124, %c256_125, %c0_126] : memref<3x288x32xf32, #tpu.memory_space<vmem>>, vector<1x32x32xf32>
    %138 = vector.shape_cast %137 : vector<1x32x32xf32> to vector<32x32xf32>
    %cst_127 = arith.constant dense<0.000000e+00> : vector<256x32xf32>
    %139 = tpu.matmul %136, %138, %cst_127 {dimension_numbers = #tpu.dot_dimension_numbers<[1], [0], [0], [1], [0, 0, 1, 1], [], []>} : vector<256x32xf32>, vector<32x32xf32>, vector<256x32xf32> -> vector<256x32xf32>
    %140 = arith.addf %134, %139 : vector<256x32xf32>
    %c1_128 = arith.constant 1 : index
    %c0_129 = arith.constant 0 : index
    %c0_130 = arith.constant 0 : index
    %141 = vector.load %arg3[%c1_128, %c0_129, %c0_130] : memref<3x1x32xf32, #tpu.memory_space<vmem>>, vector<1x1x32xf32>
    %142 = vector.shape_cast %141 : vector<1x1x32xf32> to vector<1x32xf32>
    %143 = vector.broadcast %142 : vector<1x32xf32> to vector<256x32xf32>
    %144 = arith.addf %140, %143 : vector<256x32xf32>
    %cst_131 = arith.constant 0.000000e+00 : f32
    %145 = vector.broadcast %cst_131 : f32 to vector<256x32xf32>
    %146 = arith.maximumf %144, %145 : vector<256x32xf32>
    %147 = vector.shape_cast %146 : vector<256x32xf32> to vector<16x16x32xf32>
    %c1_132 = arith.constant 1 : index
    %c8_133 = arith.constant 8 : index
    %c0_134 = arith.constant 0 : index
    %148 = vector.load %arg5[%c1_132, %c8_133, %c0_134] : memref<18x25x32xf32, #tpu.memory_space<vmem>>, vector<16x16x32xf32>
    tpu.vector_store %arg5[%c1_132, %c8_133, %c0_134], %147 {strides = array<i32>} : memref<18x25x32xf32, #tpu.memory_space<vmem>>, vector<16x16x32xf32>,
    %c0_135 = arith.constant 0 : index
    %c7_136 = arith.constant 7 : index
    %c0_137 = arith.constant 0 : index
    %149 = vector.load %arg5[%c0_135, %c7_136, %c0_137] : memref<18x25x32xf32, #tpu.memory_space<vmem>>, vector<16x16x32xf32>
    %150 = vector.shape_cast %149 : vector<16x16x32xf32> to vector<256x32xf32>
    %c2_138 = arith.constant 2 : index
    %c0_139 = arith.constant 0 : index
    %c0_140 = arith.constant 0 : index
    %151 = vector.load %arg2[%c2_138, %c0_139, %c0_140] : memref<3x288x32xf32, #tpu.memory_space<vmem>>, vector<1x32x32xf32>
    %152 = vector.shape_cast %151 : vector<1x32x32xf32> to vector<32x32xf32>
    %cst_141 = arith.constant dense<0.000000e+00> : vector<256x32xf32>
    %153 = tpu.matmul %150, %152, %cst_141 {dimension_numbers = #tpu.dot_dimension_numbers<[1], [0], [0], [1], [0, 0, 1, 1], [], []>} : vector<256x32xf32>, vector<32x32xf32>, vector<256x32xf32> -> vector<256x32xf32>
    %c0_142 = arith.constant 0 : index
    %c8_143 = arith.constant 8 : index
    %c0_144 = arith.constant 0 : index
    %154 = vector.load %arg5[%c0_142, %c8_143, %c0_144] : memref<18x25x32xf32, #tpu.memory_space<vmem>>, vector<16x16x32xf32>
    %155 = vector.shape_cast %154 : vector<16x16x32xf32> to vector<256x32xf32>
    %c2_145 = arith.constant 2 : index
    %c32_146 = arith.constant 32 : index
    %c0_147 = arith.constant 0 : index
    %156 = vector.load %arg2[%c2_145, %c32_146, %c0_147] : memref<3x288x32xf32, #tpu.memory_space<vmem>>, vector<1x32x32xf32>
    %157 = vector.shape_cast %156 : vector<1x32x32xf32> to vector<32x32xf32>
    %cst_148 = arith.constant dense<0.000000e+00> : vector<256x32xf32>
    %158 = tpu.matmul %155, %157, %cst_148 {dimension_numbers = #tpu.dot_dimension_numbers<[1], [0], [0], [1], [0, 0, 1, 1], [], []>} : vector<256x32xf32>, vector<32x32xf32>, vector<256x32xf32> -> vector<256x32xf32>
    %159 = arith.addf %153, %158 : vector<256x32xf32>
    %c0_149 = arith.constant 0 : index
    %c9_150 = arith.constant 9 : index
    %c0_151 = arith.constant 0 : index
    %160 = vector.load %arg5[%c0_149, %c9_150, %c0_151] : memref<18x25x32xf32, #tpu.memory_space<vmem>>, vector<16x16x32xf32>
    %161 = vector.shape_cast %160 : vector<16x16x32xf32> to vector<256x32xf32>
    %c2_152 = arith.constant 2 : index
    %c64_153 = arith.constant 64 : index
    %c0_154 = arith.constant 0 : index
    %162 = vector.load %arg2[%c2_152, %c64_153, %c0_154] : memref<3x288x32xf32, #tpu.memory_space<vmem>>, vector<1x32x32xf32>
    %163 = vector.shape_cast %162 : vector<1x32x32xf32> to vector<32x32xf32>
    %cst_155 = arith.constant dense<0.000000e+00> : vector<256x32xf32>
    %164 = tpu.matmul %161, %163, %cst_155 {dimension_numbers = #tpu.dot_dimension_numbers<[1], [0], [0], [1], [0, 0, 1, 1], [], []>} : vector<256x32xf32>, vector<32x32xf32>, vector<256x32xf32> -> vector<256x32xf32>
    %165 = arith.addf %159, %164 : vector<256x32xf32>
    %c1_156 = arith.constant 1 : index
    %c7_157 = arith.constant 7 : index
    %c0_158 = arith.constant 0 : index
    %166 = vector.load %arg5[%c1_156, %c7_157, %c0_158] : memref<18x25x32xf32, #tpu.memory_space<vmem>>, vector<16x16x32xf32>
    %167 = vector.shape_cast %166 : vector<16x16x32xf32> to vector<256x32xf32>
    %c2_159 = arith.constant 2 : index
    %c96_160 = arith.constant 96 : index
    %c0_161 = arith.constant 0 : index
    %168 = vector.load %arg2[%c2_159, %c96_160, %c0_161] : memref<3x288x32xf32, #tpu.memory_space<vmem>>, vector<1x32x32xf32>
    %169 = vector.shape_cast %168 : vector<1x32x32xf32> to vector<32x32xf32>
    %cst_162 = arith.constant dense<0.000000e+00> : vector<256x32xf32>
    %170 = tpu.matmul %167, %169, %cst_162 {dimension_numbers = #tpu.dot_dimension_numbers<[1], [0], [0], [1], [0, 0, 1, 1], [], []>} : vector<256x32xf32>, vector<32x32xf32>, vector<256x32xf32> -> vector<256x32xf32>
    %171 = arith.addf %165, %170 : vector<256x32xf32>
    %c1_163 = arith.constant 1 : index
    %c8_164 = arith.constant 8 : index
    %c0_165 = arith.constant 0 : index
    %172 = vector.load %arg5[%c1_163, %c8_164, %c0_165] : memref<18x25x32xf32, #tpu.memory_space<vmem>>, vector<16x16x32xf32>
    %173 = vector.shape_cast %172 : vector<16x16x32xf32> to vector<256x32xf32>
    %c2_166 = arith.constant 2 : index
    %c128_167 = arith.constant 128 : index
    %c0_168 = arith.constant 0 : index
    %174 = vector.load %arg2[%c2_166, %c128_167, %c0_168] : memref<3x288x32xf32, #tpu.memory_space<vmem>>, vector<1x32x32xf32>
    %175 = vector.shape_cast %174 : vector<1x32x32xf32> to vector<32x32xf32>
    %cst_169 = arith.constant dense<0.000000e+00> : vector<256x32xf32>
    %176 = tpu.matmul %173, %175, %cst_169 {dimension_numbers = #tpu.dot_dimension_numbers<[1], [0], [0], [1], [0, 0, 1, 1], [], []>} : vector<256x32xf32>, vector<32x32xf32>, vector<256x32xf32> -> vector<256x32xf32>
    %177 = arith.addf %171, %176 : vector<256x32xf32>
    %c1_170 = arith.constant 1 : index
    %c9_171 = arith.constant 9 : index
    %c0_172 = arith.constant 0 : index
    %178 = vector.load %arg5[%c1_170, %c9_171, %c0_172] : memref<18x25x32xf32, #tpu.memory_space<vmem>>, vector<16x16x32xf32>
    %179 = vector.shape_cast %178 : vector<16x16x32xf32> to vector<256x32xf32>
    %c2_173 = arith.constant 2 : index
    %c160_174 = arith.constant 160 : index
    %c0_175 = arith.constant 0 : index
    %180 = vector.load %arg2[%c2_173, %c160_174, %c0_175] : memref<3x288x32xf32, #tpu.memory_space<vmem>>, vector<1x32x32xf32>
    %181 = vector.shape_cast %180 : vector<1x32x32xf32> to vector<32x32xf32>
    %cst_176 = arith.constant dense<0.000000e+00> : vector<256x32xf32>
    %182 = tpu.matmul %179, %181, %cst_176 {dimension_numbers = #tpu.dot_dimension_numbers<[1], [0], [0], [1], [0, 0, 1, 1], [], []>} : vector<256x32xf32>, vector<32x32xf32>, vector<256x32xf32> -> vector<256x32xf32>
    %183 = arith.addf %177, %182 : vector<256x32xf32>
    %c2_177 = arith.constant 2 : index
    %c7_178 = arith.constant 7 : index
    %c0_179 = arith.constant 0 : index
    %184 = vector.load %arg5[%c2_177, %c7_178, %c0_179] : memref<18x25x32xf32, #tpu.memory_space<vmem>>, vector<16x16x32xf32>
    %185 = vector.shape_cast %184 : vector<16x16x32xf32> to vector<256x32xf32>
    %c2_180 = arith.constant 2 : index
    %c192_181 = arith.constant 192 : index
    %c0_182 = arith.constant 0 : index
    %186 = vector.load %arg2[%c2_180, %c192_181, %c0_182] : memref<3x288x32xf32, #tpu.memory_space<vmem>>, vector<1x32x32xf32>
    %187 = vector.shape_cast %186 : vector<1x32x32xf32> to vector<32x32xf32>
    %cst_183 = arith.constant dense<0.000000e+00> : vector<256x32xf32>
    %188 = tpu.matmul %185, %187, %cst_183 {dimension_numbers = #tpu.dot_dimension_numbers<[1], [0], [0], [1], [0, 0, 1, 1], [], []>} : vector<256x32xf32>, vector<32x32xf32>, vector<256x32xf32> -> vector<256x32xf32>
    %189 = arith.addf %183, %188 : vector<256x32xf32>
    %c2_184 = arith.constant 2 : index
    %c8_185 = arith.constant 8 : index
    %c0_186 = arith.constant 0 : index
    %190 = vector.load %arg5[%c2_184, %c8_185, %c0_186] : memref<18x25x32xf32, #tpu.memory_space<vmem>>, vector<16x16x32xf32>
    %191 = vector.shape_cast %190 : vector<16x16x32xf32> to vector<256x32xf32>
    %c2_187 = arith.constant 2 : index
    %c224_188 = arith.constant 224 : index
    %c0_189 = arith.constant 0 : index
    %192 = vector.load %arg2[%c2_187, %c224_188, %c0_189] : memref<3x288x32xf32, #tpu.memory_space<vmem>>, vector<1x32x32xf32>
    %193 = vector.shape_cast %192 : vector<1x32x32xf32> to vector<32x32xf32>
    %cst_190 = arith.constant dense<0.000000e+00> : vector<256x32xf32>
    %194 = tpu.matmul %191, %193, %cst_190 {dimension_numbers = #tpu.dot_dimension_numbers<[1], [0], [0], [1], [0, 0, 1, 1], [], []>} : vector<256x32xf32>, vector<32x32xf32>, vector<256x32xf32> -> vector<256x32xf32>
    %195 = arith.addf %189, %194 : vector<256x32xf32>
    %c2_191 = arith.constant 2 : index
    %c9_192 = arith.constant 9 : index
    %c0_193 = arith.constant 0 : index
    %196 = vector.load %arg5[%c2_191, %c9_192, %c0_193] : memref<18x25x32xf32, #tpu.memory_space<vmem>>, vector<16x16x32xf32>
    %197 = vector.shape_cast %196 : vector<16x16x32xf32> to vector<256x32xf32>
    %c2_194 = arith.constant 2 : index
    %c256_195 = arith.constant 256 : index
    %c0_196 = arith.constant 0 : index
    %198 = vector.load %arg2[%c2_194, %c256_195, %c0_196] : memref<3x288x32xf32, #tpu.memory_space<vmem>>, vector<1x32x32xf32>
    %199 = vector.shape_cast %198 : vector<1x32x32xf32> to vector<32x32xf32>
    %cst_197 = arith.constant dense<0.000000e+00> : vector<256x32xf32>
    %200 = tpu.matmul %197, %199, %cst_197 {dimension_numbers = #tpu.dot_dimension_numbers<[1], [0], [0], [1], [0, 0, 1, 1], [], []>} : vector<256x32xf32>, vector<32x32xf32>, vector<256x32xf32> -> vector<256x32xf32>
    %201 = arith.addf %195, %200 : vector<256x32xf32>
    %c2_198 = arith.constant 2 : index
    %c0_199 = arith.constant 0 : index
    %c0_200 = arith.constant 0 : index
    %202 = vector.load %arg3[%c2_198, %c0_199, %c0_200] : memref<3x1x32xf32, #tpu.memory_space<vmem>>, vector<1x1x32xf32>
    %203 = vector.shape_cast %202 : vector<1x1x32xf32> to vector<1x32xf32>
    %204 = vector.broadcast %203 : vector<1x32xf32> to vector<256x32xf32>
    %205 = arith.addf %201, %204 : vector<256x32xf32>
    %206 = vector.shape_cast %205 : vector<256x32xf32> to vector<1x16x16x32xf32>
    %c0_201 = arith.constant 0 : index
    %c0_202 = arith.constant 0 : index
    %c0_203 = arith.constant 0 : index
    %c0_204 = arith.constant 0 : index
    %207 = vector.load %arg4[%c0_201, %c0_202, %c0_203, %c0_204] : memref<1x16x16x32xf32, #tpu.memory_space<vmem>>, vector<1x16x16x32xf32>
    tpu.vector_store %arg4[%c0_201, %c0_202, %c0_203, %c0_204], %206 {strides = array<i32>} : memref<1x16x16x32xf32, #tpu.memory_space<vmem>>, vector<1x16x16x32xf32>,
    return
  }
  func.func @transform_0(%arg0: i32) -> (i32, i32, i32, i32) {
    %c0_i32 = arith.constant 0 : i32
    %c0_i32_0 = arith.constant 0 : i32
    %c0_i32_1 = arith.constant 0 : i32
    %c0_i32_2 = arith.constant 0 : i32
    return %arg0, %c0_i32, %c0_i32_0, %c0_i32_1 : i32, i32, i32, i32
  }
  func.func @transform_1(%arg0: i32) -> (i32, i32, i32) {
    %c0_i32 = arith.constant 0 : i32
    %c0_i32_0 = arith.constant 0 : i32
    %c0_i32_1 = arith.constant 0 : i32
    %c0_i32_2 = arith.constant 0 : i32
    return %c0_i32, %c0_i32_0, %c0_i32_1 : i32, i32, i32
  }
  func.func @transform_2(%arg0: i32) -> (i32, i32, i32) {
    %c0_i32 = arith.constant 0 : i32
    %c0_i32_0 = arith.constant 0 : i32
    %c0_i32_1 = arith.constant 0 : i32
    %c0_i32_2 = arith.constant 0 : i32
    return %c0_i32, %c0_i32_0, %c0_i32_1 : i32, i32, i32
  }
  func.func @transform_3(%arg0: i32) -> (i32, i32, i32, i32) {
    %c0_i32 = arith.constant 0 : i32
    %c0_i32_0 = arith.constant 0 : i32
    %c0_i32_1 = arith.constant 0 : i32
    %c0_i32_2 = arith.constant 0 : i32
    return %arg0, %c0_i32, %c0_i32_0, %c0_i32_1 : i32, i32, i32, i32
  }
}

</mosaic_0001>

<bundles_post_ra>
// kernel: unet_cnn_forward.1
= control target key start
LH: loop header
LB: loop body
LE: loop exit
PB: predicated region body
PF: predicated region fallthrough
CT: control target
= control target key end

     0   :  { %8 = vsyncpa [#allocation4], 0  ;;  %s16418_s0 = inlined_call_operand.vmem [shape: f32[2,16,16,1], index: 0, kind: input, shape index: {}]   ;;  %s16419_s1 = inlined_call_operand.vmem [shape: f32[3,288,32], index: 1, kind: input, shape index: {}]   ;;  %s16420_s2 = inlined_call_operand.vmem [shape: f32[3,1,32], index: 2, kind: input, shape index: {}]   ;;  %s16421_s3 = inlined_call_operand.hbm [shape: f32[2,16,16,32], index: 3, kind: output, shape index: {}]  }
   0x1   :  { %10 = vsyncpa [#allocation4 + $0x1], 0  ;;  %s12969_s12 = smov 0   ;;  %s12971_s13 = smov 0  }
   0x2   :  { %s12973_s14 = smov 0   ;;  %s12975_s15 = smov 0  }
   0x3 LB: > { %s12990_s16 = sadd.s32 4294967295, %s12942_s15   ;;  %s9827_s17 = sadd.s32 4294967294, %s12942_s15   ;;  %s12942_s15 = sphi %s12975_s15, %s16681_s15   ;;  %s12938_s14 = sphi %s12973_s14, %s16680_s14   ;;  %s12934_s13 = sphi %s12971_s13, %s16679_s13   ;;  %s12930_s12 = sphi %s12969_s12, %s16678_s12  }
   0x4   : > { %s12994_s18 = sadd.s32 1, %s12942_s15   ;;  %s91_s19 = sadd.s32 1, %s12938_s14 }
   0x5   : > { %s88_s20 = ssub.s32 %s12942_s15, %s12994_s18  ;;  %p101_p0 = scmp.ne.s32.totalorder %s12938_s14, %s12934_s13 }
   0x6   : > { %p89_p1 = scmp.eq.s32.totalorder %s88_s20, 0  ;;  %p102_p2 = scmp.eq.s32.totalorder %s12990_s16, 1 }
   0x7   : > { %p107_p3 = scmp.ne.s32.totalorder %s12934_s13, %s12930_s12  ;;  %p108_p4 = scmp.eq.s32.totalorder %s9827_s17, 1 }
   0x8   : > { %s13005_s21 = scalar_select %p89_p1, %s12938_s14, %s91_s19  }
   0x9   : > { %p13007_p5 = por %p102_p2, %p101_p0  ;;  %p13011_p6 = por %p108_p4, %p107_p3 }
   0xa   : > { %p9830_p7 = scmp.ge.s32.totalorder %s12942_s15, 1  ;;  %p140_p8 = scmp.lt.s32.totalorder %s12942_s15, 3 }
   0xc   : > { %p141_p9 = pnand %p9830_p7, %p140_p8 }
   0xe   : > { %144 = sbr.rel (%p141_p9) target bundleno = 2196 (0x894), region = 32 }
  0x15   : > { %vm169_vm0 = vcmask 261120   ;;  %vm173_vm1 = vcmask 253952   ;;  %p164_p10 = scmp.lt.s32.totalorder %s12990_s16, 1  ;;  %v12944_v0 = vmov 0   ;;  %v12945_v1 = vmov 0.0   ;;  %v9848_v40 = vld [vmem:[%s16419_s1 + $0x140] sm:$0xff] }
  0x16   : > { %12859 = vset.pattern.permute.xlu1 %v12944_v0  ;;  %12858 = vset.pattern.permute.xlu0 %v12944_v0  ;;  %171 = vst.msk [vmem:[#allocation2 + $0x8] sm:$0xff] %vm169_vm0, %v12945_v1  ;;  %172 = vst.msk [vmem:[#allocation2 + $0x10] sm:$0xff] %vm169_vm0, %v12945_v1  ;;  %vm245_vm2 = vcmask 7168   ;;  %v9849_v41 = vld [vmem:[%s16419_s1 + $0x148] sm:$0xff]  ;;  %v9850_v43 = vld [vmem:[%s16419_s1 + $0x150] sm:$0xff]  ;;  %s161_s11 = sand.u32 1, %s12934_s13  }
  0x17   : > { %170 = vst.msk [vmem:[#allocation2] sm:$0xff] %vm169_vm0, %v12945_v1  ;;  %176 = vst.msk [vmem:[#allocation2 + $0x220] sm:$0xff] %vm169_vm0, %v12945_v1  ;;  %s165_s24 = scalar_select %p164_p10, %s12990_s16, 1  ;;  %v12159_v42 = vpack.c.bf16 %v9849_v41, %v9848_v40  ;;  %v9851_v44 = vld [vmem:[%s16419_s1 + $0x158] sm:$0xff]  ;;  %v13214_v41 = vld [vmem:[%s16419_s1] ss:$0 sm:$0xff] }
  0x18   : > { %177 = vst.msk [vmem:[#allocation2 + $0x228] sm:$0xff] %vm169_vm0, %v12945_v1  ;;  %178 = vst.msk [vmem:[#allocation2 + $0x230] sm:$0xff] %vm169_vm0, %v12945_v1  ;;  %v12163_v47 = vpack.c.bf16 %v9851_v44, %v9850_v43  ;;  %s9831_s17 = sshll.u32 %s161_s11, 8  ;;  %s12946_s4 = smov [#allocation3]  }
  0x19   : > { %174 = vst.msk [vmem:[#allocation2 + $0x18] sm:$0x1] %vm173_vm1, %v12945_v1  ;;  %179 = vst.msk [vmem:[#allocation2 + $0x238] sm:$0x1] %vm173_vm1, %v12945_v1  ;;  %s10501_s25 = sshll.u32 %s165_s24, 8  ;;  %12160 = vmatprep.subr.bf16.mxu0 %v12159_v42  ;;  %s16270_s20 = scalar_lea.vmem [#allocation3], %s9831_s17 }
  0x1a   : > { %181 = vst.msk [vmem:[#allocation2 + $0x27] sm:$0x1] %vm173_vm1, %v12945_v1  ;;  %182 = vst.msk [vmem:[#allocation2 + $0x47] sm:$0x1] %vm173_vm1, %v12945_v1  ;;  %s13064_s28 = scalar_lea.vmem %s16418_s0, %s10501_s25  ;;  %12162 = vmatpush3.bf16.msra.mxu0 %v12159_v42  ;;  %v13219_v42 = vld [vmem:[%s16419_s1 + $0x40] ss:$0 sm:$0xff] }
  0x1b   : > { %183 = vst.msk [vmem:[#allocation2 + $0x67] sm:$0x1] %vm173_vm1, %v12945_v1  ;;  %184 = vst.msk [vmem:[#allocation2 + $0x87] sm:$0x1] %vm173_vm1, %v12945_v1  ;;  %v213_v2 = vld [vmem:[%s13064_s28] sm:$0xff]  ;;  %v214_v3 = vld [vmem:[%s13064_s28 + $0x8] sm:$0xff]  ;;  %12164 = vmatprep.subr.bf16.mxu0 %v12163_v47 }
  0x1c   : > { %185 = vst.msk [vmem:[#allocation2 + $0xa7] sm:$0x1] %vm173_vm1, %v12945_v1  ;;  %186 = vst.msk [vmem:[#allocation2 + $0xc7] sm:$0x1] %vm173_vm1, %v12945_v1  ;;  %v215_v4 = vld [vmem:[%s13064_s28 + $0x10] sm:$0xff]  ;;  %v216_v5 = vld [vmem:[%s13064_s28 + $0x18] sm:$0xff] }
  0x1d   : > { %187 = vst.msk [vmem:[#allocation2 + $0xe7] sm:$0x1] %vm173_vm1, %v12945_v1  ;;  %188 = vst.msk [vmem:[#allocation2 + $0x107] sm:$0x1] %vm173_vm1, %v12945_v1  ;;  %v217_v6 = vld [vmem:[%s13064_s28 + $0x20] sm:$0xff]  ;;  %v218_v7 = vld [vmem:[%s13064_s28 + $0x28] sm:$0xff] }
  0x1e   : > { %189 = vst.msk [vmem:[#allocation2 + $0x127] sm:$0x1] %vm173_vm1, %v12945_v1  ;;  %190 = vst.msk [vmem:[#allocation2 + $0x147] sm:$0x1] %vm173_vm1, %v12945_v1  ;;  %v279_v8 = vld [vmem:[#allocation2 + $0xf] sm:$0xff]  ;;  %v278_v9 = vld [vmem:[#allocation2 + $0x7] sm:$0xff]  ;;  %12166 = vmatpush3.bf16.msra.mxu0 %v12163_v47 }
  0x1f   : > { %191 = vst.msk [vmem:[#allocation2 + $0x167] sm:$0x1] %vm173_vm1, %v12945_v1  ;;  %192 = vst.msk [vmem:[#allocation2 + $0x187] sm:$0x1] %vm173_vm1, %v12945_v1  ;;  %318 = vperm.xlu1 %12859, %v279_v8   ;;  %313 = vperm.xlu0 %12858, %v278_v9   ;;  %v507_v10 = vld [vmem:[#allocation2 + $0x8] sm:$0xff]  ;;  %v13078_v11 = vld [vmem:[#allocation2 + $0x10] sm:$0xff] }
  0x20   : > { %193 = vst.msk [vmem:[#allocation2 + $0x1a7] sm:$0x1] %vm173_vm1, %v12945_v1  ;;  %194 = vst.msk [vmem:[#allocation2 + $0x1c7] sm:$0x1] %vm173_vm1, %v12945_v1  ;;  %v219_v12 = vld [vmem:[%s13064_s28 + $0x30] sm:$0xff]  ;;  %v220_v13 = vld [vmem:[%s13064_s28 + $0x38] sm:$0xff]  ;;  %11159 = vmatprep.mubr.msk.f32.mxu0 %vm169_vm0, %v507_v10 }
  0x21   : > { %195 = vst.msk [vmem:[#allocation2 + $0x1e7] sm:$0x1] %vm173_vm1, %v12945_v1  ;;  %196 = vst.msk [vmem:[#allocation2 + $0x207] sm:$0x1] %vm173_vm1, %v12945_v1  ;;  %v221_v14 = vld [vmem:[%s13064_s28 + $0x40] sm:$0xff]  ;;  %v222_v15 = vld [vmem:[%s13064_s28 + $0x48] sm:$0xff]  ;;  %11160 = vmatmul.mubr.msk.f32.vlgmr.msra.gmra.mrb[0].mxu0 %vm169_vm0, %v13078_v11 }
  0x22   : > { %197 = vst.msk [vmem:[#allocation2 + $0x38] sm:$0x1] %vm173_vm1, %v12945_v1  ;;  %198 = vst.msk [vmem:[#allocation2 + $0x58] sm:$0x1] %vm173_vm1, %v12945_v1  ;;  %v769_v16 = vld [vmem:[#allocation2 + $0x11] sm:$0xff]  ;;  %v768_v17 = vld [vmem:[#allocation2 + $0x9] sm:$0xff] }
  0x23   : > { %199 = vst.msk [vmem:[#allocation2 + $0x78] sm:$0x1] %vm173_vm1, %v12945_v1  ;;  %200 = vst.msk [vmem:[#allocation2 + $0x98] sm:$0x1] %vm173_vm1, %v12945_v1  ;;  %547 = vperm.xlu1 %12859, %v13078_v11   ;;  %542 = vperm.xlu0 %12858, %v507_v10   ;;  %v223_v26 = vld [vmem:[%s13064_s28 + $0x50] sm:$0xff]  ;;  %v224_v29 = vld [vmem:[%s13064_s28 + $0x58] sm:$0xff] }
  0x24   : > { %201 = vst.msk [vmem:[#allocation2 + $0xb8] sm:$0x1] %vm173_vm1, %v12945_v1  ;;  %202 = vst.msk [vmem:[#allocation2 + $0xd8] sm:$0x1] %vm173_vm1, %v12945_v1  ;;  %v225_v35 = vld [vmem:[%s13064_s28 + $0x60] sm:$0xff]  ;;  %v226_v37 = vld [vmem:[%s13064_s28 + $0x68] sm:$0xff] }
  0x25   : > { %203 = vst.msk [vmem:[#allocation2 + $0xf8] sm:$0x1] %vm173_vm1, %v12945_v1  ;;  %204 = vst.msk [vmem:[#allocation2 + $0x118] sm:$0x1] %vm173_vm1, %v12945_v1  ;;  %v227_v49 = vld [vmem:[%s13064_s28 + $0x70] sm:$0xff]  ;;  %v228_v51 = vld [vmem:[%s13064_s28 + $0x78] sm:$0xff] }
  0x26   : > { %205 = vst.msk [vmem:[#allocation2 + $0x138] sm:$0x1] %vm173_vm1, %v12945_v1  ;;  %206 = vst.msk [vmem:[#allocation2 + $0x158] sm:$0x1] %vm173_vm1, %v12945_v1  ;;  %s10502_s24 = sshll.u32 %s12990_s16, 12  ;;  %s9765_s25 = sshll.u32 %s16270_s20, 4  ;;  %s16368_s25 = int_to_ptr.vmem [resolvable:$true] %s9765_s25 }
  0x27   : > { %207 = vst.msk [vmem:[#allocation2 + $0x178] sm:$0x1] %vm173_vm1, %v12945_v1  ;;  %208 = vst.msk [vmem:[#allocation2 + $0x198] sm:$0x1] %vm173_vm1, %v12945_v1  ;;  %808 = vperm.xlu1 %12859, %v769_v16   ;;  %803 = vperm.xlu0 %12858, %v768_v17   ;;  %s16366_s29 = scalar_lea.hbm %s16421_s3, %s10502_s24  ;;  %s16377_s16 = scalar_lea.sflag [#allocation4], %s161_s11 }
  0x28   : > { %209 = vst.msk [vmem:[#allocation2 + $0x1b8] sm:$0x1] %vm173_vm1, %v12945_v1  ;;  %210 = vst.msk [vmem:[#allocation2 + $0x1d8] sm:$0x1] %vm173_vm1, %v12945_v1  ;;  %s12880_s30 = scalar_lea.vmem %s16368_s25, 4096  ;;  %s12884_s5 = sshll.u32 %s12946_s4, 4  ;;  %s12885_s5 = int_to_ptr.vmem [resolvable:$false] %s12884_s5 }
  0x29   : > { %211 = vst.msk [vmem:[#allocation2 + $0x1f8] sm:$0x1] %vm173_vm1, %v12945_v1  ;;  %212 = vst.msk [vmem:[#allocation2 + $0x218] sm:$0x1] %vm173_vm1, %v12945_v1  ;;  %v229_v1 = vld [vmem:[%s13064_s28 + $0x80] sm:$0xff]  ;;  %p12881_p11 = scmp.ne.s32.totalorder %s16368_s25, %s12880_s30  ;;  %s12886_s6 = scalar_lea.vmem %s12885_s5, 8192 }
  0x2a   : > { %246 = vst.msk [vmem:[#allocation2 + $0x28] sm:$0xff] %vm245_vm2, %v213_v2  ;;  %247 = vst.msk [vmem:[#allocation2 + $0x30] sm:$0xff] %vm245_vm2, %v214_v3  ;;  %p12887_p0 = scmp.lt.s32.totalorder %s16368_s25, %s12885_s5  ;;  %p12888_p1 = scmp.lt.s32.totalorder %s12886_s6, %s12880_s30 }
  0x2b   : > { %248 = vst.msk [vmem:[#allocation2 + $0x48] sm:$0xff] %vm245_vm2, %v215_v4  ;;  %249 = vst.msk [vmem:[#allocation2 + $0x50] sm:$0xff] %vm245_vm2, %v216_v5  ;;  %p12882_p12 = pnand %p12881_p11, %p13007_p5 }
  0x2c   : > { %250 = vst.msk [vmem:[#allocation2 + $0x68] sm:$0xff] %vm245_vm2, %v217_v6  ;;  %251 = vst.msk [vmem:[#allocation2 + $0x70] sm:$0xff] %vm245_vm2, %v218_v7  ;;  %v230_v7 = vld [vmem:[%s13064_s28 + $0x88] sm:$0xff]  ;;  %p12889_p2 = por %p12888_p1, %p12887_p0 }
  0x2d   : > { %252 = vst.msk [vmem:[#allocation2 + $0x88] sm:$0xff] %vm245_vm2, %v219_v12  ;;  %253 = vst.msk [vmem:[#allocation2 + $0x90] sm:$0xff] %vm245_vm2, %v220_v13  ;;  %p12883_p13 = pneg %p12882_p12 }
  0x2e   : > { %254 = vst.msk [vmem:[#allocation2 + $0xa8] sm:$0xff] %vm245_vm2, %v221_v14  ;;  %255 = vst.msk [vmem:[#allocation2 + $0xb0] sm:$0xff] %vm245_vm2, %v222_v15 }
  0x2f   : > { %256 = vst.msk [vmem:[#allocation2 + $0xc8] sm:$0xff] %vm245_vm2, %v223_v26  ;;  %257 = vst.msk [vmem:[#allocation2 + $0xd0] sm:$0xff] %vm245_vm2, %v224_v29  ;;  %p12890_p3 = pnand %p12889_p2, %p12883_p13 }
  0x30   : > { %258 = vst.msk [vmem:[#allocation2 + $0xe8] sm:$0xff] %vm245_vm2, %v225_v35  ;;  %259 = vst.msk [vmem:[#allocation2 + $0xf0] sm:$0xff] %vm245_vm2, %v226_v37 }
  0x31   : > { %v509_v18 = vld [vmem:[#allocation2 + $0x28] sm:$0xff]  ;;  %v510_v21 = vld [vmem:[#allocation2 + $0x30] sm:$0xff]  ;;  %260 = vst.msk [vmem:[#allocation2 + $0x108] sm:$0xff] %vm245_vm2, %v227_v49  ;;  %261 = vst.msk [vmem:[#allocation2 + $0x110] sm:$0xff] %vm245_vm2, %v228_v51 }
  0x32   : > { %v280_v19 = vld [vmem:[#allocation2 + $0x27] sm:$0xff]  ;;  %552 = vperm.xlu1 %12859, %v509_v18   ;;  %v281_v20 = vld [vmem:[#allocation2 + $0x2f] sm:$0xff]  ;;  %262 = vst.msk [vmem:[#allocation2 + $0x128] sm:$0xff] %vm245_vm2, %v229_v1  ;;  %263 = vst.msk [vmem:[#allocation2 + $0x130] sm:$0xff] %vm245_vm2, %v230_v7 }
  0x33   : > { %323 = vperm.xlu0 %12858, %v280_v19   ;;  %v770_v22 = vld [vmem:[#allocation2 + $0x29] sm:$0xff]  ;;  %v771_v23 = vld [vmem:[#allocation2 + $0x31] sm:$0xff]  ;;  %v13239_v49 = vld [vmem:[%s16419_s1 + $0x80] ss:$0 sm:$0xff] }
  0x34   : > { %v511_v24 = vld [vmem:[#allocation2 + $0x48] sm:$0xff]  ;;  %v512_v27 = vld [vmem:[#allocation2 + $0x50] sm:$0xff]  ;;  %v13264_v1 = vld [vmem:[%s16419_s1 + $0xc0] ss:$0 sm:$0xff] }
  0x35   : > { %v282_v25 = vld [vmem:[#allocation2 + $0x47] sm:$0xff]  ;;  %v283_v28 = vld [vmem:[#allocation2 + $0x4f] sm:$0xff] }
  0x36   : > { %328 = vperm.xlu1 %12859, %v281_v20   ;;  %v772_v30 = vld [vmem:[#allocation2 + $0x49] sm:$0xff]  ;;  %v773_v31 = vld [vmem:[#allocation2 + $0x51] sm:$0xff] }
  0x37   : > { %1064 = vperm.xlu0 %12858, %v280_v19   ;;  %v513_v32 = vld [vmem:[#allocation2 + $0x68] sm:$0xff]  ;;  %v514_v36 = vld [vmem:[#allocation2 + $0x70] sm:$0xff] }
  0x38   : > { %v284_v33 = vld [vmem:[#allocation2 + $0x67] sm:$0xff]  ;;  %v285_v34 = vld [vmem:[#allocation2 + $0x6f] sm:$0xff] }
  0x39   : > { %v774_v38 = vld [vmem:[#allocation2 + $0x69] sm:$0xff]  ;;  %v775_v39 = vld [vmem:[#allocation2 + $0x71] sm:$0xff] }
  0x3a   : > { %1069 = vperm.xlu1 %12859, %v281_v20   ;;  %v515_v45 = vld [vmem:[#allocation2 + $0x88] sm:$0xff]  ;;  %v516_v50 = vld [vmem:[#allocation2 + $0x90] sm:$0xff] }
  0x3b   : > { %557 = vperm.xlu0 %12858, %v510_v21   ;;  %v286_v46 = vld [vmem:[#allocation2 + $0x87] sm:$0xff]  ;;  %v287_v48 = vld [vmem:[#allocation2 + $0x8f] sm:$0xff] }
  0x3c   : > { %v776_v52 = vld [vmem:[#allocation2 + $0x89] sm:$0xff]  ;;  %v777_v53 = vld [vmem:[#allocation2 + $0x91] sm:$0xff] }
  0x3d   : > { %v517_v56 = vld [vmem:[#allocation2 + $0xa8] sm:$0xff]  ;;  %v518_v2 = vld [vmem:[#allocation2 + $0xb0] sm:$0xff] }
  0x3e   : > { %1325 = vperm.xlu1 %12859, %v509_v18   ;;  %v288_v57 = vld [vmem:[#allocation2 + $0xa7] sm:$0xff]  ;;  %v289_v62 = vld [vmem:[#allocation2 + $0xaf] sm:$0xff] }
  0x3f   : > { %813 = vperm.xlu0 %12858, %v770_v22   ;;  %v778_v8 = vld [vmem:[#allocation2 + $0xa9] sm:$0xff]  ;;  %v13152_v13 = vld [vmem:[#allocation2 + $0xb1] sm:$0xff] }
  0x40   : > { %v13163_v18 = vld [vmem:[#allocation2 + $0xc8] sm:$0xff]  ;;  %v13209_v40 = vld [vmem:[#allocation2 + $0xd1] sm:$0xff] }
  0x41   : > { %v290_v19 = vld [vmem:[#allocation2 + $0xc7] sm:$0xff] }
  0x42   : > { %1330 = vperm.xlu1 %12859, %v510_v21  }
  0x43   : > { %818 = vperm.xlu0 %12858, %v771_v23  }
  0x46   : > { %562 = vperm.xlu1 %12859, %v511_v24  }
  0x47   : > { %333 = vperm.xlu0 %12858, %v282_v25  }
  0x4a   : > { %1586 = vperm.xlu1 %12859, %v770_v22  }
  0x4b   : > { %1074 = vperm.xlu0 %12858, %v282_v25  }
  0x4e   : > { %567 = vperm.xlu1 %12859, %v512_v27  }
  0x4f   : > { %338 = vperm.xlu0 %12858, %v283_v28  }
  0x52   : > { %1591 = vperm.xlu1 %12859, %v771_v23  }
  0x53   : > { %1079 = vperm.xlu0 %12858, %v283_v28  }
  0x56   : > { %1335 = vperm.xlu1 %12859, %v511_v24  }
  0x57   : > { %823 = vperm.xlu0 %12858, %v772_v30  }
  0x5a   : > { %828 = vperm.xlu1 %12859, %v773_v31  }
  0x5b   : > { %1848 = vperm.xlu0 %12858, %v282_v25  }
  0x5e   : > { %1853 = vperm.xlu1 %12859, %v283_v28   ;;  %v13179_v28 = vld [vmem:[#allocation2 + $0xd0] sm:$0xff] }
  0x5f   : > { %1340 = vperm.xlu0 %12858, %v512_v27  }
  0x62   : > { %572 = vperm.xlu1 %12859, %v513_v32  }
  0x63   : > { %343 = vperm.xlu0 %12858, %v284_v33  }
  0x66   : > { %1596 = vperm.xlu1 %12859, %v772_v30  }
  0x67   : > { %1084 = vperm.xlu0 %12858, %v284_v33  }
  0x6a   : > { %348 = vperm.xlu1 %12859, %v285_v34  }
  0x6b   : > { %2109 = vperm.xlu0 %12858, %v511_v24   ;;  %v291_v24 = vld [vmem:[#allocation2 + $0xcf] sm:$0xff] }
  0x6e   : > { %1089 = vperm.xlu1 %12859, %v285_v34  }
  0x6f   : > { %577 = vperm.xlu0 %12858, %v514_v36  }
  0x72   : > { %2114 = vperm.xlu1 %12859, %v512_v27   ;;  %v231_v27 = vld [vmem:[%s13064_s28 + $0x90] sm:$0xff] }
  0x73   : > { %1601 = vperm.xlu0 %12858, %v773_v31   ;;  %264 = vst.msk [vmem:[#allocation2 + $0x148] sm:$0xff] %vm245_vm2, %v231_v27 }
  0x76   : > { %1345 = vperm.xlu1 %12859, %v513_v32  }
  0x77   : > { %833 = vperm.xlu0 %12858, %v774_v38  }
  0x7a   : > { %2370 = vperm.xlu1 %12859, %v772_v30  }
  0x7b   : > { %1858 = vperm.xlu0 %12858, %v284_v33   ;;  %v232_v33 = vld [vmem:[%s13064_s28 + $0x98] sm:$0xff] }
  0x7c   : > { %265 = vst.msk [vmem:[#allocation2 + $0x150] sm:$0xff] %vm245_vm2, %v232_v33 }
  0x7e   : > { %1350 = vperm.xlu1 %12859, %v514_v36  }
  0x7f   : > { %838 = vperm.xlu0 %12858, %v775_v39  }
  0x82   : > { %2375 = vperm.xlu1 %12859, %v773_v31  }
  0x83   : > { %1863 = vperm.xlu0 %12858, %v285_v34   ;;  %v13191_v34 = vld [vmem:[#allocation2 + $0xc9] sm:$0xff] }
  0x86   : > { %582 = vperm.xlu1 %12859, %v515_v45  }
  0x87   : > { %353 = vperm.xlu0 %12858, %v286_v46  }
  0x8a   : > { %1606 = vperm.xlu1 %12859, %v774_v38  }
  0x8b   : > { %1094 = vperm.xlu0 %12858, %v286_v46  }
  0x8e   : > { %358 = vperm.xlu1 %12859, %v287_v48  }
  0x8f   : > { %2119 = vperm.xlu0 %12858, %v513_v32  }
  0x92   : > { %1099 = vperm.xlu1 %12859, %v287_v48  }
  0x93   : > { %587 = vperm.xlu0 %12858, %v516_v50  }
  0x96   : > { %2124 = vperm.xlu1 %12859, %v514_v36  }
  0x97   : > { %1611 = vperm.xlu0 %12858, %v775_v39  }
  0x9a   : > { %1355 = vperm.xlu1 %12859, %v515_v45  }
  0x9b   : > { %843 = vperm.xlu0 %12858, %v776_v52  }
  0x9e   : > { %2380 = vperm.xlu1 %12859, %v774_v38   ;;  %v13116_v54 = vpop.permute.xlu1 %318  ;;  %v13118_v55 = vpop.permute.xlu0 %313 }
  0x9f   : > { %1868 = vperm.xlu0 %12858, %v286_v46   ;;  %v13230_v46 = vld [vmem:[%s16419_s1 + $0x60] ss:$0 sm:$0xff]  ;;  %v475_v47 = vmul.f32 %v13214_v41, %v13118_v55 }
  0xa0   : > { %v13251_v55 = vld [vmem:[%s16419_s1 + $0xa0] ss:$0 sm:$0xff] }
  0xa2   : > { %1360 = vperm.xlu1 %12859, %v516_v50   ;;  %v13120_v58 = vpop.permute.xlu1 %547  ;;  %v13122_v59 = vpop.permute.xlu0 %542 }
  0xa3   : > { %848 = vperm.xlu0 %12858, %v777_v53  }
  0xa6   : > { %2385 = vperm.xlu1 %12859, %v775_v39   ;;  %v13124_v60 = vpop.permute.xlu1 %808  ;;  %v13126_v61 = vpop.permute.xlu0 %803  ;;  %v13207_v39 = vld [vmem:[%s16419_s1 + $0x20] ss:$0 sm:$0xff] }
  0xa7   : > { %1873 = vperm.xlu0 %12858, %v287_v48   ;;  %v965_v48 = vmul.f32 %v13219_v42, %v13126_v61 }
  0xaa   : > { %592 = vperm.xlu1 %12859, %v517_v56  }
  0xab   : > { %363 = vperm.xlu0 %12858, %v288_v57  }
  0xae   : > { %1616 = vperm.xlu1 %12859, %v776_v52  }
  0xaf   : > { %1104 = vperm.xlu0 %12858, %v288_v57  }
  0xb1   : > { %v13128_v63 = vpop.permute.xlu1 %552 }
  0xb2   : > { %v13130_v0 = vpop.permute.xlu0 %323  ;;  %368 = vperm.xlu1 %12859, %v289_v62  }
  0xb3   : > { %2129 = vperm.xlu0 %12858, %v515_v45   ;;  %v704_v45 = vmul.f32 %v13207_v39, %v13122_v59 }
  0xb5   : > { %v13134_v3 = vpop.permute.xlu1 %328 }
  0xb6   : > { %v13136_v4 = vpop.permute.xlu0 %1064  ;;  %1109 = vperm.xlu1 %12859, %v289_v62  }
  0xb7   : > { %597 = vperm.xlu0 %12858, %v518_v2  }
  0xb9   : > { %v13138_v5 = vpop.permute.xlu1 %1069 }
  0xba   : > { %v13140_v6 = vpop.permute.xlu0 %557  ;;  %2134 = vperm.xlu1 %12859, %v516_v50  }
  0xbb   : > { %1621 = vperm.xlu0 %12858, %v777_v53  }
  0xbd   : > { %v13144_v9 = vpop.permute.xlu1 %1325 }
  0xbe   : > { %v13146_v10 = vpop.permute.xlu0 %813  ;;  %1365 = vperm.xlu1 %12859, %v517_v56   ;;  %v1487_v61 = vmul.f32 %v13239_v49, %v13144_v9  ;;  %v476_v9 = vmul.f32 %v13214_v41, %v13116_v54 }
  0xbf   : > { %853 = vperm.xlu0 %12858, %v778_v8  }
  0xc1   : > { %v13148_v11 = vpop.permute.xlu1 %1330 }
  0xc2   : > { %v13150_v12 = vpop.permute.xlu0 %818  ;;  %2390 = vperm.xlu1 %12859, %v776_v52   ;;  %v736_v52 = vadd.f32 %v704_v45, %v475_v47 }
  0xc3   : > { %1878 = vperm.xlu0 %12858, %v288_v57   ;;  %v13255_v57 = vld [vmem:[#allocation2 + $0xe7] sm:$0xff] }
  0xc4   : > { %v997_v59 = vadd.f32 %v965_v48, %v736_v52  ;;  %v13296_v48 = vld [vmem:[#allocation2 + $0xef] sm:$0xff] }
  0xc5   : > { %v13154_v14 = vpop.permute.xlu1 %562 }
  0xc6   : > { %v13156_v15 = vpop.permute.xlu0 %333  ;;  %1370 = vperm.xlu1 %12859, %v518_v2  }
  0xc7   : > { %858 = vperm.xlu0 %12858, %v13152_v13  }
  0xc9   : > { %v13159_v16 = vpop.permute.xlu1 %1586 }
  0xca   : > { %v13161_v17 = vpop.permute.xlu0 %1074  ;;  %2395 = vperm.xlu1 %12859, %v777_v53   ;;  %v1226_v53 = vmul.f32 %v13230_v46, %v13136_v4 }
  0xcb   : > { %1883 = vperm.xlu0 %12858, %v289_v62   ;;  %v705_v62 = vmul.f32 %v13207_v39, %v13120_v58  ;;  %v966_v58 = vmul.f32 %v13219_v42, %v13124_v60 }
  0xcc   : > { %v1258_v7 = vadd.f32 %v1226_v53, %v997_v59 }
  0xcd   : > { %v13165_v20 = vpop.permute.xlu1 %567  ;;  %v737_v27 = vadd.f32 %v705_v62, %v476_v9  ;;  %v13313_v9 = vld [vmem:[#allocation2 + $0xf0] sm:$0xff] }
  0xce   : > { %v13167_v21 = vpop.permute.xlu0 %338  ;;  %602 = vperm.xlu1 %12859, %v13163_v18  }
  0xcf   : > { %373 = vperm.xlu0 %12858, %v290_v19   ;;  %v998_v60 = vadd.f32 %v966_v58, %v737_v27 }
  0xd1   : > { %v13170_v22 = vpop.permute.xlu1 %1591 }
  0xd2   : > { %v13172_v23 = vpop.permute.xlu0 %1079  ;;  %1626 = vperm.xlu1 %12859, %v778_v8  }
  0xd3   : > { %1114 = vperm.xlu0 %12858, %v290_v19  }
  0xd5   : > { %v13174_v25 = vpop.permute.xlu1 %1335 }
  0xd6   : > { %v13176_v26 = vpop.permute.xlu0 %823  ;;  %378 = vperm.xlu1 %12859, %v291_v24  }
  0xd7   : > { %2139 = vperm.xlu0 %12858, %v517_v56   ;;  %v13253_v56 = vld [vmem:[#allocation2 + $0xe8] sm:$0xff] }
  0xd9   : > { %v13182_v29 = vpop.permute.xlu1 %828 }
  0xda   : > { %v1849_v30 = vpop.permute.xlu0 %1848  ;;  %1119 = vperm.xlu1 %12859, %v291_v24  }
  0xdb   : > { %607 = vperm.xlu0 %12858, %v13179_v28  }
  0xdd   : > { %v13185_v31 = vpop.permute.xlu1 %1853 }
  0xde   : > { %v13187_v32 = vpop.permute.xlu0 %1340  ;;  %2144 = vperm.xlu1 %12859, %v518_v2  }
  0xdf   : > { %1631 = vperm.xlu0 %12858, %v13152_v13  }
  0xe1   : > { %v13194_v35 = vpop.permute.xlu1 %572 }
  0xe2   : > { %v13196_v36 = vpop.permute.xlu0 %343  ;;  %1375 = vperm.xlu1 %12859, %v13163_v18  }
  0xe3   : > { %863 = vperm.xlu0 %12858, %v13191_v34  }
  0xe5   : > { %v13200_v37 = vpop.permute.xlu1 %1596 }
  0xe6   : > { %v13202_v38 = vpop.permute.xlu0 %1084  ;;  %2400 = vperm.xlu1 %12859, %v778_v8   ;;  %v1748_v8 = vmul.f32 %v13251_v55, %v13159_v16  ;;  %v1227_v16 = vmul.f32 %v13230_v46, %v13138_v5  ;;  %v1488_v5 = vmul.f32 %v13239_v49, %v13148_v11  ;;  %v13311_v11 = vld [vmem:[%s16420_s2] ss:$0 sm:$0xff] }
  0xe7   : > { %1888 = vperm.xlu0 %12858, %v290_v19   ;;  %v1519_v19 = vadd.f32 %v1487_v61, %v1258_v7  ;;  %v1749_v61 = vmul.f32 %v13251_v55, %v13170_v22  ;;  %v2011_v22 = vmul.f32 %v13264_v1, %v13185_v31 }
  0xe8   : > { %v1259_v53 = vadd.f32 %v1227_v16, %v998_v60 }
  0xe9   : > { %v13221_v43 = vpop.permute.xlu1 %348  ;;  %v1780_v54 = vadd.f32 %v1748_v8, %v1519_v19  ;;  %v233_v8 = vld [vmem:[%s13064_s28 + $0xa0] sm:$0xff] }
  0xea   : > { %v2110_v44 = vpop.permute.xlu0 %2109  ;;  %1380 = vperm.xlu1 %12859, %v13179_v28   ;;  %266 = vst.msk [vmem:[#allocation2 + $0x168] sm:$0xff] %vm245_vm2, %v233_v8  ;;  %v1520_v58 = vadd.f32 %v1488_v5, %v1259_v53 }
  0xeb   : > { %868 = vperm.xlu0 %12858, %v13209_v40  }
  0xed   : > { %v13241_v50 = vpop.permute.xlu1 %1089 }
  0xee   : > { %v13243_v51 = vpop.permute.xlu0 %577  ;;  %2405 = vperm.xlu1 %12859, %v13152_v13   ;;  %v13279_v13 = vld [vmem:[%s16419_s1 + $0xe0] ss:$0 sm:$0xff] }
  0xef   : > { %1893 = vperm.xlu0 %12858, %v291_v24   ;;  %v2010_v24 = vmul.f32 %v13264_v1, %v1849_v30  ;;  %v2271_v47 = vmul.f32 %v13279_v13, %v2110_v44  ;;  %v13294_v30 = vld [vmem:[%s16419_s1 + $0x100] ss:$0 sm:$0xff] }
  0xf1   : > { %v2115_v2 = vpop.permute.xlu1 %2114  ;;  %v2042_v52 = vadd.f32 %v2010_v24, %v1780_v54 }
  0xf2   : > { %v13266_v4 = vpop.permute.xlu0 %1601  ;;  %612 = vperm.xlu1 %12859, %v13253_v56   ;;  %v2272_v16 = vmul.f32 %v13279_v13, %v2115_v2  ;;  %v234_v2 = vld [vmem:[%s13064_s28 + $0xa8] sm:$0xff] }
  0xf3   : > { %383 = vperm.xlu0 %12858, %v13255_v57   ;;  %v2303_v62 = vadd.f32 %v2271_v47, %v2042_v52  ;;  %267 = vst.msk [vmem:[#allocation2 + $0x170] sm:$0xff] %vm245_vm2, %v234_v2  ;;  %v1228_v2 = vmul.f32 %v13230_v46, %v13161_v17 }
  0xf5   : > { %v13284_v33 = vpop.permute.xlu1 %1345 }
  0xf6   : > { %v13286_v45 = vpop.permute.xlu0 %833  ;;  %1636 = vperm.xlu1 %12859, %v13191_v34  }
  0xf7   : > { %1124 = vperm.xlu0 %12858, %v13255_v57  }
  0xf9   : > { %v2371_v59 = vpop.permute.xlu1 %2370 }
  0xfa   : > { %v13300_v44 = vpop.permute.xlu0 %1858  ;;  %v2532_v7 = vmul.f32 %v13294_v30, %v2371_v59  ;;  %388 = vperm.xlu1 %12859, %v13296_v48   ;;  %v13333_v59 = vld [vmem:[#allocation2 + $0xe9] sm:$0xff] }
  0xfb   : > { %2149 = vperm.xlu0 %12858, %v13163_v18   ;;  %v1781_v18 = vadd.f32 %v1749_v61, %v1520_v58 }
  0xfc   : > { %v2564_v19 = vadd.f32 %v2532_v7, %v2303_v62 }
  0xfd   : > { %v13318_v24 = vpop.permute.xlu1 %1350  ;;  %v2043_v47 = vadd.f32 %v2011_v22, %v1781_v18  ;;  %v13351_v18 = vld [vmem:[#allocation2 + $0xf1] sm:$0xff] }
  0xfe   : > { %v13320_v27 = vpop.permute.xlu0 %838  ;;  %v2603_v54 = vadd.f32 %v13311_v11, %v2564_v19  ;;  %1129 = vperm.xlu1 %12859, %v13296_v48  }
  0xff   : > { %617 = vperm.xlu0 %12858, %v13313_v9   ;;  %v2304_v31 = vadd.f32 %v2272_v16, %v2043_v47  ;;  %v706_v47 = vmul.f32 %v13207_v39, %v13128_v63  ;;  %v13372_v63 = vld [vmem:[#allocation2 + $0x108] sm:$0xff] }
 0x100   : > { %v2635_v60 = vmax.f32 %v2603_v54, 0.0 }
 0x101   : > { %v2376_v5 = vpop.permute.xlu1 %2375 }
 0x102   : > { %v13326_v52 = vpop.permute.xlu0 %1863  ;;  %2667 = vst.msk [vmem:[#allocation2 + $0x28] sm:$0xff] %vm169_vm0, %v2635_v60  ;;  %v2533_v53 = vmul.f32 %v13294_v30, %v2376_v5  ;;  %2154 = vperm.xlu1 %12859, %v13179_v28   ;;  %v477_v60 = vmul.f32 %v13214_v41, %v13130_v0  ;;  %v13374_v0 = vld [vmem:[#allocation2 + $0x107] sm:$0xff] }
 0x103   : > { %1641 = vperm.xlu0 %12858, %v13209_v40  }
 0x104   : > { %v2565_v61 = vadd.f32 %v2533_v53, %v2304_v31  ;;  %v738_v53 = vadd.f32 %v706_v47, %v477_v60 }
 0x105   : > { %v13336_v62 = vpop.permute.xlu1 %582 }
 0x106   : > { %v13338_v7 = vpop.permute.xlu0 %353  ;;  %v2604_v8 = vadd.f32 %v13311_v11, %v2565_v61  ;;  %1385 = vperm.xlu1 %12859, %v13253_v56   ;;  %v1489_v61 = vmul.f32 %v13239_v49, %v13174_v25  ;;  %v968_v25 = vmul.f32 %v13219_v42, %v13150_v12  ;;  %v13401_v12 = vld [vmem:[#allocation2 + $0x10f] sm:$0xff] }
 0x107   : > { %873 = vperm.xlu0 %12858, %v13333_v59  }
 0x108   : > { %v2636_v58 = vmax.f32 %v2604_v8, 0.0  ;;  %v707_v8 = vmul.f32 %v13207_v39, %v13140_v6  ;;  %v2012_v6 = vmul.f32 %v13264_v1, %v13300_v44  ;;  %v1490_v44 = vmul.f32 %v13239_v49, %v13187_v32 }
 0x109   : > { %v13343_v28 = vpop.permute.xlu1 %1606  ;;  %v2738_v19 = vld [vmem:[#allocation2 + $0x28] sm:$0xff] }
 0x10a   : > { %v13345_v22 = vpop.permute.xlu0 %1094  ;;  %2668 = vst.msk [vmem:[#allocation2 + $0x30] sm:$0xff] %vm169_vm0, %v2636_v58  ;;  %2410 = vperm.xlu1 %12859, %v13191_v34   ;;  %11162 = vmatprep.mubr.msk.f32.mxu0 %vm169_vm0, %v2738_v19  ;;  %v967_v34 = vmul.f32 %v13219_v42, %v13146_v10 }
 0x10b   : > { %1898 = vperm.xlu0 %12858, %v13255_v57  }
 0x10c   : > { %v999_v10 = vadd.f32 %v967_v34, %v738_v53  ;;  %v1229_v34 = vmul.f32 %v13230_v46, %v13172_v23 }
 0x10d   : > { %v13353_v16 = vpop.permute.xlu1 %358 }
 0x10e   : > { %v2120_v54 = vpop.permute.xlu0 %2119  ;;  %1390 = vperm.xlu1 %12859, %v13313_v9   ;;  %v1260_v17 = vadd.f32 %v1228_v2, %v999_v10 }
 0x10f   : > { %878 = vperm.xlu0 %12858, %v13351_v18   ;;  %v2273_v2 = vmul.f32 %v13279_v13, %v2120_v54 }
 0x110   : > { %v1521_v47 = vadd.f32 %v1489_v61, %v1260_v17  ;;  %v1751_v17 = vmul.f32 %v13251_v55, %v13266_v4 }
 0x111   : > { %v13363_v57 = vpop.permute.xlu1 %1099  ;;  %v2739_v31 = vld [vmem:[#allocation2 + $0x30] sm:$0xff] }
 0x112   : > { %v13365_v5 = vpop.permute.xlu0 %587  ;;  %2415 = vperm.xlu1 %12859, %v13209_v40   ;;  %11163 = vmatmul.mubr.msk.f32.gmra.mrb[2].mxu0 %vm169_vm0, %v2739_v31  ;;  %v1750_v40 = vmul.f32 %v13251_v55, %v13200_v37 }
 0x113   : > { %1903 = vperm.xlu0 %12858, %v13296_v48   ;;  %v478_v48 = vmul.f32 %v13214_v41, %v13134_v3 }
 0x114   : > { %v1782_v53 = vadd.f32 %v1750_v40, %v1521_v47  ;;  %v2013_v47 = vmul.f32 %v13264_v1, %v13326_v52 }
 0x115   : > { %v2125_v58 = vpop.permute.xlu1 %2124  ;;  %v739_v60 = vadd.f32 %v707_v8, %v478_v48  ;;  %v235_v48 = vld [vmem:[%s13064_s28 + $0xb0] sm:$0xff] }
 0x116   : > { %v13380_v19 = vpop.permute.xlu0 %1611  ;;  %622 = vperm.xlu1 %12859, %v13372_v63   ;;  %v2044_v10 = vadd.f32 %v2012_v6, %v1782_v53  ;;  %268 = vst.msk [vmem:[#allocation2 + $0x188] sm:$0xff] %vm245_vm2, %v235_v48  ;;  %v2274_v53 = vmul.f32 %v13279_v13, %v2125_v58  ;;  %v236_v58 = vld [vmem:[%s13064_s28 + $0xb8] sm:$0xff] }
 0x117   : > { %393 = vperm.xlu0 %12858, %v13374_v0   ;;  %v1000_v3 = vadd.f32 %v968_v25, %v739_v60  ;;  %v13413_v25 = vld [vmem:[#allocation2 + $0x110] sm:$0xff]  ;;  %269 = vst.msk [vmem:[#allocation2 + $0x190] sm:$0xff] %vm245_vm2, %v236_v58  ;;  %v1230_v58 = vmul.f32 %v13230_v46, %v13202_v38  ;;  %v480_v38 = vmul.f32 %v13214_v41, %v13167_v21 }
 0x118   : > { %v2305_v40 = vadd.f32 %v2273_v2, %v2044_v10  ;;  %v1231_v21 = vmul.f32 %v13230_v46, %v13241_v50 }
 0x119   : > { %v13394_v31 = vpop.permute.xlu1 %1355  ;;  %v1261_v23 = vadd.f32 %v1229_v34, %v1000_v3 }
 0x11a   : > { %v13396_v37 = vpop.permute.xlu0 %843  ;;  %1646 = vperm.xlu1 %12859, %v13333_v59  }
 0x11b   : > { %1134 = vperm.xlu0 %12858, %v13374_v0   ;;  %v1522_v32 = vadd.f32 %v1490_v44, %v1261_v23 }
 0x11d   : > { %v2381_v61 = vpop.permute.xlu1 %2380  ;;  %v1783_v34 = vadd.f32 %v1751_v17, %v1522_v32 }
 0x11e   : > { %v13405_v8 = vpop.permute.xlu0 %1868  ;;  %v2534_v54 = vmul.f32 %v13294_v30, %v2381_v61  ;;  %398 = vperm.xlu1 %12859, %v13401_v12   ;;  %v13433_v61 = vld [vmem:[#allocation2 + $0x109] sm:$0xff] }
 0x11f   : > { %2159 = vperm.xlu0 %12858, %v13253_v56   ;;  %v2045_v2 = vadd.f32 %v2013_v47, %v1783_v34  ;;  %v13451_v34 = vld [vmem:[#allocation2 + $0x111] sm:$0xff] }
 0x120   : > { %v2566_v6 = vadd.f32 %v2534_v54, %v2305_v40 }
 0x121   : > { %v13418_v60 = vpop.permute.xlu1 %1360  ;;  %v2306_v52 = vadd.f32 %v2274_v53, %v2045_v2  ;;  %v708_v2 = vmul.f32 %v13207_v39, %v13154_v14  ;;  %v13472_v14 = vld [vmem:[#allocation2 + $0x128] sm:$0xff] }
 0x122   : > { %v13420_v4 = vpop.permute.xlu0 %848  ;;  %v2605_v56 = vadd.f32 %v13311_v11, %v2566_v6  ;;  %1139 = vperm.xlu1 %12859, %v13401_v12  }
 0x123   : > { %627 = vperm.xlu0 %12858, %v13413_v25  }
 0x124   : > { %v2637_v3 = vmax.f32 %v2605_v56, 0.0 }
 0x125   : > { %v2386_v44 = vpop.permute.xlu1 %2385 }
 0x126   : > { %v13426_v10 = vpop.permute.xlu0 %1873  ;;  %2669 = vst.msk [vmem:[#allocation2 + $0x48] sm:$0xff] %vm169_vm0, %v2637_v3  ;;  %v2535_v23 = vmul.f32 %v13294_v30, %v2386_v44  ;;  %2164 = vperm.xlu1 %12859, %v13313_v9   ;;  %v479_v3 = vmul.f32 %v13214_v41, %v13156_v15  ;;  %v13474_v15 = vld [vmem:[#allocation2 + $0x127] sm:$0xff] }
 0x127   : > { %1651 = vperm.xlu0 %12858, %v13351_v18  }
 0x128   : > { %v2567_v17 = vadd.f32 %v2535_v23, %v2306_v52  ;;  %v740_v23 = vadd.f32 %v708_v2, %v479_v3 }
 0x129   : > { %v13436_v40 = vpop.permute.xlu1 %592 }
 0x12a   : > { %v13438_v54 = vpop.permute.xlu0 %363  ;;  %v2606_v48 = vadd.f32 %v13311_v11, %v2567_v17  ;;  %1395 = vperm.xlu1 %12859, %v13372_v63   ;;  %v1491_v17 = vmul.f32 %v13239_v49, %v13284_v33  ;;  %v970_v33 = vmul.f32 %v13219_v42, %v13182_v29 }
 0x12b   : > { %883 = vperm.xlu0 %12858, %v13433_v61  }
 0x12c   : > { %v2638_v32 = vmax.f32 %v2606_v48, 0.0  ;;  %v709_v48 = vmul.f32 %v13207_v39, %v13165_v20  ;;  %v2014_v20 = vmul.f32 %v13264_v1, %v13405_v8  ;;  %v1492_v8 = vmul.f32 %v13239_v49, %v13318_v24 }
 0x12d   : > { %v13443_v9 = vpop.permute.xlu1 %1616  ;;  %v2740_v6 = vld [vmem:[#allocation2 + $0x48] sm:$0xff] }
 0x12e   : > { %v13445_v47 = vpop.permute.xlu0 %1104  ;;  %2670 = vst.msk [vmem:[#allocation2 + $0x50] sm:$0xff] %vm169_vm0, %v2638_v32  ;;  %2420 = vperm.xlu1 %12859, %v13333_v59   ;;  %11165 = vmatprep.mubr.msk.f32.mxu0 %vm169_vm0, %v2740_v6  ;;  %v969_v59 = vmul.f32 %v13219_v42, %v13176_v26  ;;  %v1752_v6 = vmul.f32 %v13251_v55, %v13343_v28 }
 0x12f   : > { %1908 = vperm.xlu0 %12858, %v13374_v0   ;;  %v741_v3 = vadd.f32 %v709_v48, %v480_v38  ;;  %v1753_v38 = vmul.f32 %v13251_v55, %v13380_v19 }
 0x130   : > { %v1001_v26 = vadd.f32 %v969_v59, %v740_v23 }
 0x131   : > { %v13453_v53 = vpop.permute.xlu1 %368  ;;  %v1002_v29 = vadd.f32 %v970_v33, %v741_v3  ;;  %v13513_v33 = vld [vmem:[#allocation2 + $0x130] sm:$0xff] }
 0x132   : > { %v2130_v56 = vpop.permute.xlu0 %2129  ;;  %1400 = vperm.xlu1 %12859, %v13413_v25  }
 0x133   : > { %888 = vperm.xlu0 %12858, %v13451_v34   ;;  %v2275_v23 = vmul.f32 %v13279_v13, %v2130_v56  ;;  %v1263_v50 = vadd.f32 %v1231_v21, %v1002_v29 }
 0x135   : > { %v13463_v0 = vpop.permute.xlu1 %1109  ;;  %v2741_v52 = vld [vmem:[#allocation2 + $0x50] sm:$0xff]  ;;  %v1524_v24 = vadd.f32 %v1492_v8, %v1263_v50 }
 0x136   : > { %v13465_v44 = vpop.permute.xlu0 %597  ;;  %2425 = vperm.xlu1 %12859, %v13351_v18   ;;  %11166 = vmatmul.mubr.msk.f32.gmra.mrb[4].mxu0 %vm169_vm0, %v2741_v52 }
 0x137   : > { %1913 = vperm.xlu0 %12858, %v13401_v12   ;;  %v1262_v12 = vadd.f32 %v1230_v58, %v1001_v26  ;;  %v13501_v58 = vld [vmem:[#allocation2 + $0x12f] sm:$0xff]  ;;  %v1785_v21 = vadd.f32 %v1753_v38, %v1524_v24 }
 0x139   : > { %v2135_v32 = vpop.permute.xlu1 %2134  ;;  %v1523_v2 = vadd.f32 %v1491_v17, %v1262_v12 }
 0x13a   : > { %v13482_v18 = vpop.permute.xlu0 %1621  ;;  %632 = vperm.xlu1 %12859, %v13472_v14  }
 0x13b   : > { %403 = vperm.xlu0 %12858, %v13474_v15   ;;  %v1784_v28 = vadd.f32 %v1752_v6, %v1523_v2  ;;  %v237_v6 = vld [vmem:[%s13064_s28 + $0xc0] sm:$0xff]  ;;  %v2015_v2 = vmul.f32 %v13264_v1, %v13426_v10 }
 0x13c   : > { %270 = vst.msk [vmem:[#allocation2 + $0x1a8] sm:$0xff] %vm245_vm2, %v237_v6 }
 0x13d   : > { %v13494_v59 = vpop.permute.xlu1 %1365  ;;  %v2046_v26 = vadd.f32 %v2014_v20, %v1784_v28  ;;  %v2276_v28 = vmul.f32 %v13279_v13, %v2135_v32  ;;  %v238_v32 = vld [vmem:[%s13064_s28 + $0xc8] sm:$0xff] }
 0x13e   : > { %v13496_v52 = vpop.permute.xlu0 %853  ;;  %1656 = vperm.xlu1 %12859, %v13433_v61   ;;  %271 = vst.msk [vmem:[#allocation2 + $0x1b0] sm:$0xff] %vm245_vm2, %v238_v32  ;;  %v1232_v32 = vmul.f32 %v13230_v46, %v13345_v22 }
 0x13f   : > { %1144 = vperm.xlu0 %12858, %v13474_v15   ;;  %v2307_v12 = vadd.f32 %v2275_v23, %v2046_v26  ;;  %v2047_v23 = vadd.f32 %v2015_v2, %v1785_v21  ;;  %v13551_v21 = vld [vmem:[#allocation2 + $0x131] sm:$0xff] }
 0x141   : > { %v2391_v17 = vpop.permute.xlu1 %2390  ;;  %v2308_v10 = vadd.f32 %v2276_v28, %v2047_v23  ;;  %v710_v23 = vmul.f32 %v13207_v39, %v13194_v35  ;;  %v13572_v35 = vld [vmem:[#allocation2 + $0x148] sm:$0xff] }
 0x142   : > { %v13505_v48 = vpop.permute.xlu0 %1878  ;;  %v2536_v56 = vmul.f32 %v13294_v30, %v2391_v17  ;;  %408 = vperm.xlu1 %12859, %v13501_v58   ;;  %v13533_v17 = vld [vmem:[#allocation2 + $0x129] sm:$0xff] }
 0x143   : > { %2169 = vperm.xlu0 %12858, %v13372_v63  }
 0x144   : > { %v2568_v20 = vadd.f32 %v2536_v56, %v2307_v12 }
 0x145   : > { %v13518_v3 = vpop.permute.xlu1 %1370 }
 0x146   : > { %v13520_v19 = vpop.permute.xlu0 %858  ;;  %v2607_v63 = vadd.f32 %v13311_v11, %v2568_v20  ;;  %1149 = vperm.xlu1 %12859, %v13501_v58  }
 0x147   : > { %637 = vperm.xlu0 %12858, %v13513_v33  }
 0x148   : > { %v2639_v29 = vmax.f32 %v2607_v63, 0.0 }
 0x149   : > { %v2396_v8 = vpop.permute.xlu1 %2395 }
 0x14a   : > { %v13526_v26 = vpop.permute.xlu0 %1883  ;;  %2671 = vst.msk [vmem:[#allocation2 + $0x68] sm:$0xff] %vm169_vm0, %v2639_v29  ;;  %v2537_v50 = vmul.f32 %v13294_v30, %v2396_v8  ;;  %2174 = vperm.xlu1 %12859, %v13413_v25   ;;  %v481_v29 = vmul.f32 %v13214_v41, %v13196_v36  ;;  %v13574_v36 = vld [vmem:[#allocation2 + $0x147] sm:$0xff] }
 0x14b   : > { %1661 = vperm.xlu0 %12858, %v13451_v34  }
 0x14c   : > { %v2569_v38 = vadd.f32 %v2537_v50, %v2308_v10  ;;  %v742_v50 = vadd.f32 %v710_v23, %v481_v29 }
 0x14d   : > { %v13536_v12 = vpop.permute.xlu1 %602 }
 0x14e   : > { %v13538_v56 = vpop.permute.xlu0 %373  ;;  %v2608_v6 = vadd.f32 %v13311_v11, %v2569_v38  ;;  %1405 = vperm.xlu1 %12859, %v13472_v14   ;;  %v1493_v38 = vmul.f32 %v13239_v49, %v13394_v31  ;;  %v972_v31 = vmul.f32 %v13219_v42, %v13320_v27  ;;  %v13601_v27 = vld [vmem:[#allocation2 + $0x14f] sm:$0xff] }
 0x14f   : > { %893 = vperm.xlu0 %12858, %v13533_v17  }
 0x150   : > { %v2640_v24 = vmax.f32 %v2608_v6, 0.0  ;;  %v711_v6 = vmul.f32 %v13207_v39, %v13243_v51  ;;  %v2016_v51 = vmul.f32 %v13264_v1, %v13505_v48  ;;  %v1494_v48 = vmul.f32 %v13239_v49, %v13418_v60 }
 0x151   : > { %v13543_v25 = vpop.permute.xlu1 %1626  ;;  %v2742_v20 = vld [vmem:[#allocation2 + $0x68] sm:$0xff] }
 0x152   : > { %v13545_v2 = vpop.permute.xlu0 %1114  ;;  %2672 = vst.msk [vmem:[#allocation2 + $0x70] sm:$0xff] %vm169_vm0, %v2640_v24  ;;  %2430 = vperm.xlu1 %12859, %v13433_v61   ;;  %11168 = vmatprep.mubr.msk.f32.mxu0 %vm169_vm0, %v2742_v20  ;;  %v971_v61 = vmul.f32 %v13219_v42, %v13286_v45 }
 0x153   : > { %1918 = vperm.xlu0 %12858, %v13474_v15  }
 0x154   : > { %v1003_v45 = vadd.f32 %v971_v61, %v742_v50  ;;  %v1233_v61 = vmul.f32 %v13230_v46, %v13363_v57 }
 0x155   : > { %v13553_v28 = vpop.permute.xlu1 %378 }
 0x156   : > { %v2140_v63 = vpop.permute.xlu0 %2139  ;;  %1410 = vperm.xlu1 %12859, %v13513_v33   ;;  %v1264_v22 = vadd.f32 %v1232_v32, %v1003_v45 }
 0x157   : > { %898 = vperm.xlu0 %12858, %v13551_v21   ;;  %v2277_v32 = vmul.f32 %v13279_v13, %v2140_v63 }
 0x158   : > { %v1525_v23 = vadd.f32 %v1493_v38, %v1264_v22  ;;  %v1755_v22 = vmul.f32 %v13251_v55, %v13482_v18 }
 0x159   : > { %v13563_v15 = vpop.permute.xlu1 %1119  ;;  %v2743_v10 = vld [vmem:[#allocation2 + $0x70] sm:$0xff] }
 0x15a   : > { %v13565_v8 = vpop.permute.xlu0 %607  ;;  %2435 = vperm.xlu1 %12859, %v13451_v34   ;;  %11169 = vmatmul.mubr.msk.f32.gmra.mrb[6].mxu0 %vm169_vm0, %v2743_v10  ;;  %v1754_v34 = vmul.f32 %v13251_v55, %v13443_v9 }
 0x15b   : > { %1923 = vperm.xlu0 %12858, %v13501_v58   ;;  %v482_v58 = vmul.f32 %v13214_v41, %v13221_v43 }
 0x15c   : > { %v1786_v50 = vadd.f32 %v1754_v34, %v1525_v23  ;;  %v2017_v23 = vmul.f32 %v13264_v1, %v13526_v26 }
 0x15d   : > { %v2145_v24 = vpop.permute.xlu1 %2144  ;;  %v743_v29 = vadd.f32 %v711_v6, %v482_v58  ;;  %v239_v58 = vld [vmem:[%s13064_s28 + $0xd0] sm:$0xff] }
 0x15e   : > { %v13580_v20 = vpop.permute.xlu0 %1631  ;;  %642 = vperm.xlu1 %12859, %v13572_v35   ;;  %v2048_v45 = vadd.f32 %v2016_v51, %v1786_v50  ;;  %272 = vst.msk [vmem:[#allocation2 + $0x1c8] sm:$0xff] %vm245_vm2, %v239_v58  ;;  %v2278_v50 = vmul.f32 %v13279_v13, %v2145_v24  ;;  %v240_v24 = vld [vmem:[%s13064_s28 + $0xd8] sm:$0xff] }
 0x15f   : > { %413 = vperm.xlu0 %12858, %v13574_v36   ;;  %v1004_v43 = vadd.f32 %v972_v31, %v743_v29  ;;  %v13613_v31 = vld [vmem:[#allocation2 + $0x150] sm:$0xff]  ;;  %273 = vst.msk [vmem:[#allocation2 + $0x1d0] sm:$0xff] %vm245_vm2, %v240_v24  ;;  %v1234_v24 = vmul.f32 %v13230_v46, %v13445_v47 }
 0x160   : > { %v2309_v34 = vadd.f32 %v2277_v32, %v2048_v45 }
 0x161   : > { %v13594_v10 = vpop.permute.xlu1 %1375  ;;  %v1265_v57 = vadd.f32 %v1233_v61, %v1004_v43 }
 0x162   : > { %v13596_v9 = vpop.permute.xlu0 %863  ;;  %1666 = vperm.xlu1 %12859, %v13533_v17  }
 0x163   : > { %1154 = vperm.xlu0 %12858, %v13574_v36   ;;  %v1526_v60 = vadd.f32 %v1494_v48, %v1265_v57 }
 0x165   : > { %v2401_v38 = vpop.permute.xlu1 %2400  ;;  %v1787_v61 = vadd.f32 %v1755_v22, %v1526_v60 }
 0x166   : > { %v13605_v6 = vpop.permute.xlu0 %1888  ;;  %v2538_v63 = vmul.f32 %v13294_v30, %v2401_v38  ;;  %418 = vperm.xlu1 %12859, %v13601_v27   ;;  %v13633_v38 = vld [vmem:[#allocation2 + $0x149] sm:$0xff] }
 0x167   : > { %2179 = vperm.xlu0 %12858, %v13472_v14   ;;  %v2049_v32 = vadd.f32 %v2017_v23, %v1787_v61  ;;  %v13651_v61 = vld [vmem:[#allocation2 + $0x151] sm:$0xff] }
 0x168   : > { %v2570_v51 = vadd.f32 %v2538_v63, %v2309_v34 }
 0x169   : > { %v13618_v29 = vpop.permute.xlu1 %1380  ;;  %v2310_v26 = vadd.f32 %v2278_v50, %v2049_v32  ;;  %v712_v32 = vmul.f32 %v13207_v39, %v13336_v62  ;;  %v13672_v62 = vld [vmem:[#allocation2 + $0x168] sm:$0xff] }
 0x16a   : > { %v13620_v18 = vpop.permute.xlu0 %868  ;;  %v2609_v14 = vadd.f32 %v13311_v11, %v2570_v51  ;;  %1159 = vperm.xlu1 %12859, %v13601_v27  }
 0x16b   : > { %647 = vperm.xlu0 %12858, %v13613_v31  }
 0x16c   : > { %v2641_v43 = vmax.f32 %v2609_v14, 0.0 }
 0x16d   : > { %v2406_v48 = vpop.permute.xlu1 %2405 }
 0x16e   : > { %v13626_v45 = vpop.permute.xlu0 %1893  ;;  %2673 = vst.msk [vmem:[#allocation2 + $0x88] sm:$0xff] %vm169_vm0, %v2641_v43  ;;  %v2539_v57 = vmul.f32 %v13294_v30, %v2406_v48  ;;  %2184 = vperm.xlu1 %12859, %v13513_v33   ;;  %v483_v43 = vmul.f32 %v13214_v41, %v13338_v7  ;;  %v13674_v7 = vld [vmem:[#allocation2 + $0x167] sm:$0xff] }
 0x16f   : > { %1671 = vperm.xlu0 %12858, %v13551_v21  }
 0x170   : > { %v2571_v22 = vadd.f32 %v2539_v57, %v2310_v26  ;;  %v744_v57 = vadd.f32 %v712_v32, %v483_v43 }
 0x171   : > { %v13636_v34 = vpop.permute.xlu1 %612 }
 0x172   : > { %v13638_v63 = vpop.permute.xlu0 %383  ;;  %v2610_v58 = vadd.f32 %v13311_v11, %v2571_v22  ;;  %1415 = vperm.xlu1 %12859, %v13572_v35   ;;  %v1495_v22 = vmul.f32 %v13239_v49, %v13494_v59  ;;  %v974_v59 = vmul.f32 %v13219_v42, %v13420_v4  ;;  %v13701_v4 = vld [vmem:[#allocation2 + $0x16f] sm:$0xff] }
 0x173   : > { %903 = vperm.xlu0 %12858, %v13633_v38  }
 0x174   : > { %v2642_v60 = vmax.f32 %v2610_v58, 0.0  ;;  %v713_v58 = vmul.f32 %v13207_v39, %v13365_v5  ;;  %v2018_v5 = vmul.f32 %v13264_v1, %v13605_v6  ;;  %v1496_v6 = vmul.f32 %v13239_v49, %v13518_v3 }
 0x175   : > { %v13643_v33 = vpop.permute.xlu1 %1636  ;;  %v2744_v51 = vld [vmem:[#allocation2 + $0x88] sm:$0xff] }
 0x176   : > { %v13645_v23 = vpop.permute.xlu0 %1124  ;;  %2674 = vst.msk [vmem:[#allocation2 + $0x90] sm:$0xff] %vm169_vm0, %v2642_v60  ;;  %2440 = vperm.xlu1 %12859, %v13533_v17   ;;  %11171 = vmatprep.mubr.msk.f32.mxu0 %vm169_vm0, %v2744_v51  ;;  %v973_v17 = vmul.f32 %v13219_v42, %v13396_v37 }
 0x177   : > { %1928 = vperm.xlu0 %12858, %v13574_v36  }
 0x178   : > { %v1005_v37 = vadd.f32 %v973_v17, %v744_v57  ;;  %v1235_v17 = vmul.f32 %v13230_v46, %v13463_v0 }
 0x179   : > { %v13653_v50 = vpop.permute.xlu1 %388 }
 0x17a   : > { %v2150_v14 = vpop.permute.xlu0 %2149  ;;  %1420 = vperm.xlu1 %12859, %v13613_v31   ;;  %v1266_v47 = vadd.f32 %v1234_v24, %v1005_v37 }
 0x17b   : > { %908 = vperm.xlu0 %12858, %v13651_v61   ;;  %v2279_v24 = vmul.f32 %v13279_v13, %v2150_v14 }
 0x17c   : > { %v1527_v32 = vadd.f32 %v1495_v22, %v1266_v47  ;;  %v1757_v47 = vmul.f32 %v13251_v55, %v13580_v20 }
 0x17d   : > { %v13663_v36 = vpop.permute.xlu1 %1129  ;;  %v2745_v26 = vld [vmem:[#allocation2 + $0x90] sm:$0xff] }
 0x17e   : > { %v13665_v48 = vpop.permute.xlu0 %617  ;;  %2445 = vperm.xlu1 %12859, %v13551_v21   ;;  %11172 = vmatmul.mubr.msk.f32.gmra.mrb[8].mxu0 %vm169_vm0, %v2745_v26  ;;  %v1756_v21 = vmul.f32 %v13251_v55, %v13543_v25 }
 0x17f   : > { %1933 = vperm.xlu0 %12858, %v13601_v27   ;;  %v484_v27 = vmul.f32 %v13214_v41, %v13353_v16 }
 0x180   : > { %v1788_v57 = vadd.f32 %v1756_v21, %v1527_v32  ;;  %v2019_v32 = vmul.f32 %v13264_v1, %v13626_v45 }
 0x181   : > { %v2155_v60 = vpop.permute.xlu1 %2154  ;;  %v745_v43 = vadd.f32 %v713_v58, %v484_v27  ;;  %v241_v27 = vld [vmem:[%s13064_s28 + $0xe0] sm:$0xff] }
 0x182   : > { %v13680_v51 = vpop.permute.xlu0 %1641  ;;  %652 = vperm.xlu1 %12859, %v13672_v62   ;;  %v2050_v37 = vadd.f32 %v2018_v5, %v1788_v57  ;;  %274 = vst.msk [vmem:[#allocation2 + $0x1e8] sm:$0xff] %vm245_vm2, %v241_v27  ;;  %v2280_v57 = vmul.f32 %v13279_v13, %v2155_v60  ;;  %v13734_v60 = vld [vmem:[#allocation2 + $0x169] sm:$0xff] }
 0x183   : > { %423 = vperm.xlu0 %12858, %v13674_v7   ;;  %v1006_v16 = vadd.f32 %v974_v59, %v745_v43  ;;  %v13713_v59 = vld [vmem:[#allocation2 + $0x170] sm:$0xff] }
 0x184   : > { %v2311_v21 = vadd.f32 %v2279_v24, %v2050_v37 }
 0x185   : > { %v13694_v26 = vpop.permute.xlu1 %1385  ;;  %v1267_v0 = vadd.f32 %v1235_v17, %v1006_v16 }
 0x186   : > { %v13696_v25 = vpop.permute.xlu0 %873  ;;  %1676 = vperm.xlu1 %12859, %v13633_v38  }
 0x187   : > { %1164 = vperm.xlu0 %12858, %v13674_v7   ;;  %v1528_v3 = vadd.f32 %v1496_v6, %v1267_v0 }
 0x189   : > { %v2411_v22 = vpop.permute.xlu1 %2410  ;;  %v1789_v17 = vadd.f32 %v1757_v47, %v1528_v3 }
 0x18a   : > { %v13705_v58 = vpop.permute.xlu0 %1898  ;;  %v2540_v14 = vmul.f32 %v13294_v30, %v2411_v22  ;;  %428 = vperm.xlu1 %12859, %v13701_v4  }
 0x18b   : > { %2189 = vperm.xlu0 %12858, %v13572_v35   ;;  %v242_v35 = vld [vmem:[%s13064_s28 + $0xe8] sm:$0xff]  ;;  %v2051_v16 = vadd.f32 %v2019_v32, %v1789_v17  ;;  %v13751_v17 = vld [vmem:[#allocation2 + $0x171] sm:$0xff] }
 0x18c   : > { %v2572_v5 = vadd.f32 %v2540_v14, %v2311_v21  ;;  %275 = vst.msk [vmem:[#allocation2 + $0x1f0] sm:$0xff] %vm245_vm2, %v242_v35  ;;  %v714_v35 = vmul.f32 %v13207_v39, %v13436_v40  ;;  %v13772_v40 = vld [vmem:[#allocation2 + $0x188] sm:$0xff] }
 0x18d   : > { %v13718_v43 = vpop.permute.xlu1 %1390  ;;  %v2312_v0 = vadd.f32 %v2280_v57, %v2051_v16  ;;  %v485_v16 = vmul.f32 %v13214_v41, %v13438_v54  ;;  %v13774_v54 = vld [vmem:[#allocation2 + $0x187] sm:$0xff] }
 0x18e   : > { %v13720_v20 = vpop.permute.xlu0 %878  ;;  %v2611_v24 = vadd.f32 %v13311_v11, %v2572_v5  ;;  %1169 = vperm.xlu1 %12859, %v13701_v4  }
 0x18f   : > { %657 = vperm.xlu0 %12858, %v13713_v59  }
 0x190   : > { %v2643_v6 = vmax.f32 %v2611_v24, 0.0 }
 0x191   : > { %v2416_v45 = vpop.permute.xlu1 %2415 }
 0x192   : > { %v13728_v37 = vpop.permute.xlu0 %1903  ;;  %2675 = vst.msk [vmem:[#allocation2 + $0xa8] sm:$0xff] %vm169_vm0, %v2643_v6  ;;  %v2541_v22 = vmul.f32 %v13294_v30, %v2416_v45  ;;  %2194 = vperm.xlu1 %12859, %v13613_v31  }
 0x193   : > { %1681 = vperm.xlu0 %12858, %v13651_v61  }
 0x194   : > { %v2573_v47 = vadd.f32 %v2541_v22, %v2312_v0  ;;  %v746_v0 = vadd.f32 %v714_v35, %v485_v16  ;;  %v1236_v22 = vmul.f32 %v13230_v46, %v13545_v2  ;;  %v1237_v16 = vmul.f32 %v13230_v46, %v13563_v15 }
 0x195   : > { %v13736_v21 = vpop.permute.xlu1 %622  ;;  %v1498_v46 = vmul.f32 %v13239_v49, %v13618_v29  ;;  %v2021_v29 = vmul.f32 %v13264_v1, %v13728_v37 }
 0x196   : > { %v13738_v14 = vpop.permute.xlu0 %393  ;;  %v2612_v27 = vadd.f32 %v13311_v11, %v2573_v47  ;;  %1425 = vperm.xlu1 %12859, %v13672_v62   ;;  %v1497_v47 = vmul.f32 %v13239_v49, %v13594_v10  ;;  %v976_v10 = vmul.f32 %v13219_v42, %v13520_v19 }
 0x197   : > { %913 = vperm.xlu0 %12858, %v13734_v60  }
 0x198   : > { %v2644_v3 = vmax.f32 %v2612_v27, 0.0  ;;  %v715_v27 = vmul.f32 %v13207_v39, %v13465_v44  ;;  %v2020_v39 = vmul.f32 %v13264_v1, %v13705_v58 }
 0x199   : > { %v13743_v32 = vpop.permute.xlu1 %1646  ;;  %v2746_v31 = vld [vmem:[#allocation2 + $0xa8] sm:$0xff] }
 0x19a   : > { %v13745_v5 = vpop.permute.xlu0 %1134  ;;  %2676 = vst.msk [vmem:[#allocation2 + $0xb0] sm:$0xff] %vm169_vm0, %v2644_v3  ;;  %2450 = vperm.xlu1 %12859, %v13633_v38   ;;  %11174 = vmatprep.mubr.msk.f32.mxu0 %vm169_vm0, %v2746_v31  ;;  %v975_v38 = vmul.f32 %v13219_v42, %v13496_v52 }
 0x19b   : > { %1938 = vperm.xlu0 %12858, %v13674_v7  }
 0x19c   : > { %v1007_v52 = vadd.f32 %v975_v38, %v746_v0 }
 0x19d   : > { %v13753_v57 = vpop.permute.xlu1 %398 }
 0x19e   : > { %v2160_v24 = vpop.permute.xlu0 %2159  ;;  %1430 = vperm.xlu1 %12859, %v13713_v59   ;;  %v1268_v2 = vadd.f32 %v1236_v22, %v1007_v52 }
 0x19f   : > { %918 = vperm.xlu0 %12858, %v13751_v17   ;;  %v2281_v0 = vmul.f32 %v13279_v13, %v2160_v24  ;;  %v1759_v24 = vmul.f32 %v13251_v55, %v13680_v51 }
 0x1a0   : > { %v1529_v35 = vadd.f32 %v1497_v47, %v1268_v2  ;;  %v13815_v2 = vld [vmem:[#allocation2 + $0x190] sm:$0xff] }
 0x1a1   : > { %v13763_v7 = vpop.permute.xlu1 %1139  ;;  %v2747_v45 = vld [vmem:[#allocation2 + $0xb0] sm:$0xff] }
 0x1a2   : > { %v13765_v6 = vpop.permute.xlu0 %627  ;;  %2455 = vperm.xlu1 %12859, %v13651_v61   ;;  %11175 = vmatmul.mubr.msk.f32.gmra.mrb[10].mxu0 %vm169_vm0, %v2747_v45  ;;  %v1758_v61 = vmul.f32 %v13251_v55, %v13643_v33 }
 0x1a3   : > { %1943 = vperm.xlu0 %12858, %v13701_v4   ;;  %v486_v4 = vmul.f32 %v13214_v41, %v13453_v53  ;;  %v243_v41 = vld [vmem:[%s13064_s28 + $0xf0] sm:$0xff] }
 0x1a4   : > { %v1790_v45 = vadd.f32 %v1758_v61, %v1529_v35  ;;  %v13802_v53 = vld [vmem:[#allocation2 + $0x18f] sm:$0xff]  ;;  %276 = vst.msk [vmem:[#allocation2 + $0x208] sm:$0xff] %vm245_vm2, %v243_v41 }
 0x1a5   : > { %v2165_v3 = vpop.permute.xlu1 %2164  ;;  %v747_v44 = vadd.f32 %v715_v27, %v486_v4  ;;  %v244_v27 = vld [vmem:[%s13064_s28 + $0xf8] sm:$0xff] }
 0x1a6   : > { %v13780_v31 = vpop.permute.xlu0 %1651  ;;  %662 = vperm.xlu1 %12859, %v13772_v40   ;;  %v2052_v19 = vadd.f32 %v2020_v39, %v1790_v45  ;;  %277 = vst.msk [vmem:[#allocation2 + $0x210] sm:$0xff] %vm245_vm2, %v244_v27 }
 0x1a7   : > { %433 = vperm.xlu0 %12858, %v13774_v54   ;;  %v1008_v42 = vadd.f32 %v976_v10, %v747_v44  ;;  %v2282_v10 = vmul.f32 %v13279_v13, %v2165_v3  ;;  %v13834_v13 = vld [vmem:[#allocation2 + $0x189] sm:$0xff] }
 0x1a8   : > { %v2313_v52 = vadd.f32 %v2281_v0, %v2052_v19  ;;  %v13851_v19 = vld [vmem:[#allocation2 + $0x191] sm:$0xff] }
 0x1a9   : > { %v13794_v38 = vpop.permute.xlu1 %1395  ;;  %v1269_v15 = vadd.f32 %v1237_v16, %v1008_v42 }
 0x1aa   : > { %v13796_v33 = vpop.permute.xlu0 %883  ;;  %1686 = vperm.xlu1 %12859, %v13734_v60  }
 0x1ab   : > { %1174 = vperm.xlu0 %12858, %v13774_v54   ;;  %v1530_v49 = vadd.f32 %v1498_v46, %v1269_v15 }
 0x1ad   : > { %v2421_v58 = vpop.permute.xlu1 %2420  ;;  %v1791_v51 = vadd.f32 %v1759_v24, %v1530_v49 }
 0x1ae   : > { %v13807_v22 = vpop.permute.xlu0 %1908  ;;  %v2542_v47 = vmul.f32 %v13294_v30, %v2421_v58  ;;  %438 = vperm.xlu1 %12859, %v13802_v53   ;;  %v13858_v58 = vld [vmem:[%s16419_s1 + $0x20] ss:$0 sm:$0xff] }
 0x1af   : > { %2199 = vperm.xlu0 %12858, %v13672_v62   ;;  %v2053_v62 = vadd.f32 %v2021_v29, %v1791_v51  ;;  %v716_v24 = vmul.f32 %v13858_v58, %v13536_v12  ;;  %v13894_v51 = vld [vmem:[#allocation2 + $0x1a7] sm:$0xff] }
 0x1b0   : > { %v2574_v61 = vadd.f32 %v2542_v47, %v2313_v52  ;;  %v13874_v52 = vld [vmem:[%s16419_s1 + $0x40] ss:$0 sm:$0xff] }
 0x1b1   : > { %v13820_v4 = vpop.permute.xlu1 %1400  ;;  %v2314_v1 = vadd.f32 %v2282_v10, %v2053_v62  ;;  %v977_v12 = vmul.f32 %v13874_v52, %v13596_v9  ;;  %v13892_v9 = vld [vmem:[#allocation2 + $0x1a8] sm:$0xff] }
 0x1b2   : > { %v13822_v55 = vpop.permute.xlu0 %888  ;;  %v2613_v35 = vadd.f32 %v13311_v11, %v2574_v61  ;;  %1179 = vperm.xlu1 %12859, %v13802_v53  }
 0x1b3   : > { %667 = vperm.xlu0 %12858, %v13815_v2  }
 0x1b4   : > { %v2645_v39 = vmax.f32 %v2613_v35, 0.0  ;;  %v13899_v35 = vld [vmem:[%s16419_s1 + $0x80] ss:$0 sm:$0xff] }
 0x1b5   : > { %v2426_v44 = vpop.permute.xlu1 %2425  ;;  %v1499_v62 = vmul.f32 %v13899_v35, %v13694_v26 }
 0x1b6   : > { %v13828_v16 = vpop.permute.xlu0 %1913  ;;  %2677 = vst.msk [vmem:[#allocation2 + $0xc8] sm:$0xff] %vm169_vm0, %v2645_v39  ;;  %v2543_v37 = vmul.f32 %v13294_v30, %v2426_v44  ;;  %2204 = vperm.xlu1 %12859, %v13713_v59   ;;  %v13910_v44 = vld [vmem:[%s16419_s1 + $0xa0] ss:$0 sm:$0xff] }
 0x1b7   : > { %1691 = vperm.xlu0 %12858, %v13751_v17  }
 0x1b8   : > { %v2575_v3 = vadd.f32 %v2543_v37, %v2314_v1  ;;  %v1760_v1 = vmul.f32 %v13910_v44, %v13743_v32 }
 0x1b9   : > { %v13836_v45 = vpop.permute.xlu1 %632 }
 0x1ba   : > { %v13838_v0 = vpop.permute.xlu0 %403  ;;  %v2614_v41 = vadd.f32 %v13311_v11, %v2575_v3  ;;  %1435 = vperm.xlu1 %12859, %v13772_v40   ;;  %v13923_v3 = vld [vmem:[%s16419_s1 + $0xc0] ss:$0 sm:$0xff] }
 0x1bb   : > { %923 = vperm.xlu0 %12858, %v13834_v13  }
 0x1bc   : > { %v2646_v42 = vmax.f32 %v2614_v41, 0.0  ;;  %v2022_v41 = vmul.f32 %v13923_v3, %v13807_v22 }
 0x1bd   : > { %v13843_v46 = vpop.permute.xlu1 %1656  ;;  %v2748_v59 = vld [vmem:[#allocation2 + $0xc8] sm:$0xff] }
 0x1be   : > { %v13845_v30 = vpop.permute.xlu0 %1144  ;;  %2678 = vst.msk [vmem:[#allocation2 + $0xd0] sm:$0xff] %vm169_vm0, %v2646_v42  ;;  %2460 = vperm.xlu1 %12859, %v13734_v60   ;;  %11177 = vmatprep.mubr.msk.f32.mxu0 %vm169_vm0, %v2748_v59  ;;  %v13865_v60 = vld [vmem:[%s16419_s1] ss:$0 sm:$0xff] }
 0x1bf   : > { %1948 = vperm.xlu0 %12858, %v13774_v54   ;;  %v487_v54 = vmul.f32 %v13865_v60, %v13538_v56  ;;  %v13885_v56 = vld [vmem:[%s16419_s1 + $0x60] ss:$0 sm:$0xff]  ;;  %v488_v26 = vmul.f32 %v13865_v60, %v13553_v28 }
 0x1c0   : > { %v1238_v61 = vmul.f32 %v13885_v56, %v13645_v23  ;;  %v717_v23 = vmul.f32 %v13858_v58, %v13565_v8  ;;  %v978_v8 = vmul.f32 %v13874_v52, %v13620_v18  ;;  %v1239_v42 = vmul.f32 %v13885_v56, %v13663_v36  ;;  %v13936_v18 = vld [vmem:[%s16419_s1 + $0xe0] ss:$0 sm:$0xff] }
 0x1c1   : > { %v13853_v11 = vpop.permute.xlu1 %408  ;;  %v748_v29 = vadd.f32 %v716_v24, %v487_v54  ;;  %v1500_v36 = vmul.f32 %v13899_v35, %v13718_v43  ;;  %v13954_v43 = vld [vmem:[#allocation2 + $0x1b0] sm:$0xff] }
 0x1c2   : > { %v2170_v15 = vpop.permute.xlu0 %2169  ;;  %1440 = vperm.xlu1 %12859, %v13815_v2   ;;  %v749_v32 = vadd.f32 %v717_v23, %v488_v26  ;;  %v2023_v26 = vmul.f32 %v13923_v3, %v13828_v16 }
 0x1c3   : > { %928 = vperm.xlu0 %12858, %v13851_v19   ;;  %v1009_v10 = vadd.f32 %v977_v12, %v748_v29  ;;  %v2283_v54 = vmul.f32 %v13936_v18, %v2170_v15  ;;  %v305_v12 = vld [vmem:[#allocation2 + $0x1af] sm:$0xff]  ;;  %v13950_v15 = vld [vmem:[%s16419_s1 + $0x100] ss:$0 sm:$0xff] }
 0x1c4   : > { %v1010_v22 = vadd.f32 %v978_v8, %v749_v32 }
 0x1c5   : > { %v13878_v47 = vpop.permute.xlu1 %1149  ;;  %v2749_v49 = vld [vmem:[#allocation2 + $0xd0] sm:$0xff]  ;;  %v1270_v39 = vadd.f32 %v1238_v61, %v1009_v10 }
 0x1c6   : > { %v13880_v27 = vpop.permute.xlu0 %637  ;;  %2465 = vperm.xlu1 %12859, %v13751_v17   ;;  %11178 = vmatmul.mubr.msk.f32.gmra.mrb[12].mxu0 %vm169_vm0, %v2749_v49  ;;  %v1271_v29 = vadd.f32 %v1239_v42, %v1010_v22  ;;  %v13966_v42 = vld [vmem:[%s16420_s2] ss:$0 sm:$0xff] }
 0x1c7   : > { %1953 = vperm.xlu0 %12858, %v13802_v53   ;;  %v1531_v37 = vadd.f32 %v1499_v62, %v1270_v39  ;;  %v1761_v62 = vmul.f32 %v13910_v44, %v13780_v31 }
 0x1c9   : > { %v2175_v17 = vpop.permute.xlu1 %2174  ;;  %v1792_v28 = vadd.f32 %v1760_v1, %v1531_v37  ;;  %v1532_v1 = vadd.f32 %v1500_v36, %v1271_v29 }
 0x1ca   : > { %v13905_v53 = vpop.permute.xlu0 %1661  ;;  %672 = vperm.xlu1 %12859, %v13892_v9   ;;  %v2284_v32 = vmul.f32 %v13936_v18, %v2175_v17 }
 0x1cb   : > { %443 = vperm.xlu0 %12858, %v13894_v51   ;;  %v2054_v49 = vadd.f32 %v2022_v41, %v1792_v28  ;;  %v1793_v41 = vadd.f32 %v1761_v62, %v1532_v1 }
 0x1cd   : > { %v13929_v59 = vpop.permute.xlu1 %1405  ;;  %v2315_v23 = vadd.f32 %v2283_v54, %v2054_v49  ;;  %v2055_v28 = vadd.f32 %v2023_v26, %v1793_v41  ;;  %v13976_v49 = vld [vmem:[#allocation2 + $0x1a9] sm:$0xff] }
 0x1ce   : > { %v13931_v24 = vpop.permute.xlu0 %893  ;;  %1696 = vperm.xlu1 %12859, %v13834_v13  }
 0x1cf   : > { %1184 = vperm.xlu0 %12858, %v13894_v51   ;;  %v2316_v36 = vadd.f32 %v2284_v32, %v2055_v28  ;;  %v489_v28 = vmul.f32 %v13865_v60, %v13638_v63  ;;  %v14015_v63 = vld [vmem:[#allocation2 + $0x1c7] sm:$0xff] }
 0x1d1   : > { %v2431_v61 = vpop.permute.xlu1 %2430 }
 0x1d2   : > { %v13943_v10 = vpop.permute.xlu0 %1918  ;;  %v2544_v39 = vmul.f32 %v13950_v15, %v2431_v61  ;;  %448 = vperm.xlu1 %12859, %v305_v12  }
 0x1d3   : > { %2209 = vperm.xlu0 %12858, %v13772_v40  }
 0x1d4   : > { %v2576_v8 = vadd.f32 %v2544_v39, %v2315_v23 }
 0x1d5   : > { %v13958_v37 = vpop.permute.xlu1 %1410 }
 0x1d6   : > { %v13960_v31 = vpop.permute.xlu0 %898  ;;  %v2615_v40 = vadd.f32 %v13966_v42, %v2576_v8  ;;  %1189 = vperm.xlu1 %12859, %v305_v12   ;;  %v13993_v8 = vld [vmem:[#allocation2 + $0x1b1] sm:$0xff] }
 0x1d7   : > { %677 = vperm.xlu0 %12858, %v13954_v43  }
 0x1d8   : > { %v2647_v16 = vmax.f32 %v2615_v40, 0.0  ;;  %v718_v40 = vmul.f32 %v13858_v58, %v13636_v34  ;;  %v14013_v34 = vld [vmem:[#allocation2 + $0x1c8] sm:$0xff] }
 0x1d9   : > { %v2436_v54 = vpop.permute.xlu1 %2435 }
 0x1da   : > { %v13970_v22 = vpop.permute.xlu0 %1923  ;;  %2679 = vst.msk [vmem:[#allocation2 + $0xe8] sm:$0xff] %vm169_vm0, %v2647_v16  ;;  %v2545_v17 = vmul.f32 %v13950_v15, %v2436_v54  ;;  %2214 = vperm.xlu1 %12859, %v13815_v2  }
 0x1db   : > { %1701 = vperm.xlu0 %12858, %v13851_v19  }
 0x1dc   : > { %v2577_v29 = vadd.f32 %v2545_v17, %v2316_v36  ;;  %v750_v36 = vadd.f32 %v718_v40, %v489_v28  ;;  %v1240_v17 = vmul.f32 %v13885_v56, %v13745_v5 }
 0x1dd   : > { %v13978_v61 = vpop.permute.xlu1 %642 }
 0x1de   : > { %v13980_v62 = vpop.permute.xlu0 %413  ;;  %v2616_v23 = vadd.f32 %v13966_v42, %v2577_v29  ;;  %1445 = vperm.xlu1 %12859, %v13892_v9  }
 0x1df   : > { %933 = vperm.xlu0 %12858, %v13976_v49  }
 0x1e0   : > { %v2648_v39 = vmax.f32 %v2616_v23, 0.0  ;;  %v719_v23 = vmul.f32 %v13858_v58, %v13665_v48  ;;  %v2024_v48 = vmul.f32 %v13923_v3, %v13943_v10  ;;  %v1502_v10 = vmul.f32 %v13899_v35, %v13820_v4 }
 0x1e1   : > { %v13985_v1 = vpop.permute.xlu1 %1666  ;;  %v2750_v2 = vld [vmem:[#allocation2 + $0xe8] sm:$0xff]  ;;  %v2025_v4 = vmul.f32 %v13923_v3, %v13970_v22 }
 0x1e2   : > { %v13987_v26 = vpop.permute.xlu0 %1154  ;;  %2680 = vst.msk [vmem:[#allocation2 + $0xf0] sm:$0xff] %vm169_vm0, %v2648_v39  ;;  %2470 = vperm.xlu1 %12859, %v13834_v13   ;;  %11180 = vmatprep.mubr.msk.f32.mxu0 %vm169_vm0, %v2750_v2  ;;  %v979_v13 = vmul.f32 %v13874_v52, %v13696_v25  ;;  %v1501_v25 = vmul.f32 %v13899_v35, %v13794_v38 }
 0x1e3   : > { %1958 = vperm.xlu0 %12858, %v13894_v51   ;;  %v980_v38 = vmul.f32 %v13874_v52, %v13720_v20  ;;  %v307_v20 = vld [vmem:[#allocation2 + $0x1cf] sm:$0xff] }
 0x1e4   : > { %v1011_v29 = vadd.f32 %v979_v13, %v750_v36  ;;  %v1241_v13 = vmul.f32 %v13885_v56, %v13763_v7 }
 0x1e5   : > { %v13995_v41 = vpop.permute.xlu1 %418 }
 0x1e6   : > { %v2180_v32 = vpop.permute.xlu0 %2179  ;;  %1450 = vperm.xlu1 %12859, %v13954_v43   ;;  %v1272_v5 = vadd.f32 %v1240_v17, %v1011_v29 }
 0x1e7   : > { %938 = vperm.xlu0 %12858, %v13993_v8   ;;  %v2285_v17 = vmul.f32 %v13936_v18, %v2180_v32 }
 0x1e8   : > { %v1533_v40 = vadd.f32 %v1501_v25, %v1272_v5  ;;  %v1763_v5 = vmul.f32 %v13910_v44, %v13905_v53 }
 0x1e9   : > { %v14005_v51 = vpop.permute.xlu1 %1159  ;;  %v2751_v54 = vld [vmem:[#allocation2 + $0xf0] sm:$0xff] }
 0x1ea   : > { %v14007_v16 = vpop.permute.xlu0 %647  ;;  %2475 = vperm.xlu1 %12859, %v13851_v19   ;;  %11181 = vmatmul.mubr.msk.f32.gmra.mrb[14].mxu0 %vm169_vm0, %v2751_v54  ;;  %v1762_v19 = vmul.f32 %v13910_v44, %v13843_v46 }
 0x1eb   : > { %1963 = vperm.xlu0 %12858, %v305_v12   ;;  %v490_v12 = vmul.f32 %v13865_v60, %v13653_v50 }
 0x1ec   : > { %v1794_v36 = vadd.f32 %v1762_v19, %v1533_v40 }
 0x1ed   : > { %v2185_v39 = vpop.permute.xlu1 %2184  ;;  %v751_v28 = vadd.f32 %v719_v23, %v490_v12  ;;  %v14050_v12 = vld [vmem:[#allocation2 + $0x1d0] sm:$0xff] }
 0x1ee   : > { %v14021_v2 = vpop.permute.xlu0 %1671  ;;  %682 = vperm.xlu1 %12859, %v14013_v34   ;;  %v2056_v29 = vadd.f32 %v2024_v48, %v1794_v36  ;;  %v2286_v53 = vmul.f32 %v13936_v18, %v2185_v39  ;;  %v14067_v39 = vld [vmem:[#allocation2 + $0x1c9] sm:$0xff] }
 0x1ef   : > { %453 = vperm.xlu0 %12858, %v14015_v63   ;;  %v1012_v50 = vadd.f32 %v980_v38, %v751_v28 }
 0x1f0   : > { %v2317_v19 = vadd.f32 %v2285_v17, %v2056_v29 }
 0x1f1   : > { %v14035_v54 = vpop.permute.xlu1 %1415  ;;  %v1273_v25 = vadd.f32 %v1241_v13, %v1012_v50 }
 0x1f2   : > { %v14037_v46 = vpop.permute.xlu0 %903  ;;  %1706 = vperm.xlu1 %12859, %v13976_v49  }
 0x1f3   : > { %1194 = vperm.xlu0 %12858, %v14015_v63   ;;  %v1534_v38 = vadd.f32 %v1502_v10, %v1273_v25 }
 0x1f5   : > { %v2441_v23 = vpop.permute.xlu1 %2440  ;;  %v1795_v13 = vadd.f32 %v1763_v5, %v1534_v38 }
 0x1f6   : > { %v14044_v7 = vpop.permute.xlu0 %1928  ;;  %v2546_v32 = vmul.f32 %v13950_v15, %v2441_v23  ;;  %458 = vperm.xlu1 %12859, %v307_v20  }
 0x1f7   : > { %2219 = vperm.xlu0 %12858, %v13892_v9   ;;  %v2057_v9 = vadd.f32 %v2025_v4, %v1795_v13 }
 0x1f8   : > { %v2578_v40 = vadd.f32 %v2546_v32, %v2317_v19 }
 0x1f9   : > { %v14054_v48 = vpop.permute.xlu1 %1420  ;;  %v2318_v29 = vadd.f32 %v2286_v53, %v2057_v9  ;;  %v491_v9 = vmul.f32 %v13865_v60, %v13738_v14 }
 0x1fa   : > { %v14056_v28 = vpop.permute.xlu0 %908  ;;  %v2617_v36 = vadd.f32 %v13966_v42, %v2578_v40  ;;  %1199 = vperm.xlu1 %12859, %v307_v20   ;;  %v14084_v40 = vld [vmem:[#allocation2 + $0x1d1] sm:$0xff] }
 0x1fb   : > { %687 = vperm.xlu0 %12858, %v14050_v12  }
 0x1fc   : > { %v2649_v17 = vmax.f32 %v2617_v36, 0.0  ;;  %v720_v36 = vmul.f32 %v13858_v58, %v13736_v21  ;;  %v14104_v21 = vld [vmem:[#allocation2 + $0x1e7] sm:$0xff] }
 0x1fd   : > { %v2446_v50 = vpop.permute.xlu1 %2445 }
 0x1fe   : > { %v14061_v10 = vpop.permute.xlu0 %1933  ;;  %2681 = vst.msk [vmem:[#allocation2 + $0x108] sm:$0xff] %vm169_vm0, %v2649_v17  ;;  %v2547_v22 = vmul.f32 %v13950_v15, %v2446_v50  ;;  %2224 = vperm.xlu1 %12859, %v13954_v43  }
 0x1ff   : > { %1711 = vperm.xlu0 %12858, %v13993_v8  }
 0x200   : > { %v2579_v25 = vadd.f32 %v2547_v22, %v2318_v29  ;;  %v752_v29 = vadd.f32 %v720_v36, %v491_v9  ;;  %v1242_v22 = vmul.f32 %v13885_v56, %v13845_v30  ;;  %v1764_v30 = vmul.f32 %v13910_v44, %v13985_v1 }
 0x201   : > { %v14069_v23 = vpop.permute.xlu1 %652  ;;  %v2026_v36 = vmul.f32 %v13923_v3, %v14044_v7  ;;  %v1243_v1 = vmul.f32 %v13885_v56, %v13878_v47  ;;  %v9845_v7 = vld [vmem:[%s16419_s1 + $0x128] sm:$0xff] }
 0x202   : > { %v14071_v5 = vpop.permute.xlu0 %423  ;;  %v2618_v19 = vadd.f32 %v13966_v42, %v2579_v25  ;;  %1455 = vperm.xlu1 %12859, %v14013_v34   ;;  %v721_v25 = vmul.f32 %v13858_v58, %v13765_v6 }
 0x203   : > { %943 = vperm.xlu0 %12858, %v14067_v39  }
 0x204   : > { %v2650_v32 = vmax.f32 %v2618_v19, 0.0 }
 0x205   : > { %v14076_v38 = vpop.permute.xlu1 %1676  ;;  %v2752_v43 = vld [vmem:[#allocation2 + $0x108] sm:$0xff] }
 0x206   : > { %v14078_v4 = vpop.permute.xlu0 %1164  ;;  %2682 = vst.msk [vmem:[#allocation2 + $0x110] sm:$0xff] %vm169_vm0, %v2650_v32  ;;  %2480 = vperm.xlu1 %12859, %v13976_v49   ;;  %11183 = vmatprep.mubr.msk.f32.mxu0 %vm169_vm0, %v2752_v43  ;;  %v981_v49 = vmul.f32 %v13874_v52, %v13796_v33  ;;  %v1503_v33 = vmul.f32 %v13899_v35, %v13929_v59 }
 0x207   : > { %1968 = vperm.xlu0 %12858, %v14015_v63   ;;  %v982_v59 = vmul.f32 %v13874_v52, %v13822_v55  ;;  %v9844_v55 = vld [vmem:[%s16419_s1 + $0x120] sm:$0xff] }
 0x208   : > { %v1013_v14 = vadd.f32 %v981_v49, %v752_v29 }
 0x209   : > { %v14086_v13 = vpop.permute.xlu1 %428 }
 0x20a   : > { %v2190_v53 = vpop.permute.xlu0 %2189  ;;  %1460 = vperm.xlu1 %12859, %v14050_v12   ;;  %v1274_v43 = vadd.f32 %v1242_v22, %v1013_v14  ;;  %v12167_v22 = vpack.c.bf16 %v9845_v7, %v9844_v55  ;;  %v1504_v14 = vmul.f32 %v13899_v35, %v13958_v37 }
 0x20b   : > { %948 = vperm.xlu0 %12858, %v14084_v40  }
 0x20c   : > { %v1535_v6 = vadd.f32 %v1503_v33, %v1274_v43  ;;  %12168 = vmatprep.subr.bf16.mxu0 %v12167_v22 }
 0x20d   : > { %v14096_v63 = vpop.permute.xlu1 %1169  ;;  %v2753_v50 = vld [vmem:[#allocation2 + $0x110] sm:$0xff]  ;;  %12170 = vmatpush3.bf16.msra.mxu0 %v12167_v22 }
 0x20e   : > { %v14098_v17 = vpop.permute.xlu0 %657  ;;  %2485 = vperm.xlu1 %12859, %v13993_v8   ;;  %11184 = vmatmul.mubr.msk.f32.gmra.mrb[16].mxu0 %vm169_vm0, %v2753_v50  ;;  %v492_v8 = vmul.f32 %v13865_v60, %v13753_v57  ;;  %v1796_v29 = vadd.f32 %v1764_v30, %v1535_v6  ;;  %v2287_v57 = vmul.f32 %v13936_v18, %v2190_v53 }
 0x20f   : > { %1973 = vperm.xlu0 %12858, %v307_v20   ;;  %v14120_v20 = vld [vmem:[#allocation2 + $0x1ef] sm:$0xff]  ;;  %v2027_v6 = vmul.f32 %v13923_v3, %v14061_v10 }
 0x210   : > { %v753_v9 = vadd.f32 %v721_v25, %v492_v8  ;;  %v2058_v33 = vadd.f32 %v2026_v36, %v1796_v29 }
 0x211   : > { %v2195_v19 = vpop.permute.xlu1 %2194 }
 0x212   : > { %v14110_v32 = vpop.permute.xlu0 %1681  ;;  %1716 = vperm.xlu1 %12859, %v14067_v39   ;;  %v1014_v47 = vadd.f32 %v982_v59, %v753_v9  ;;  %v2319_v30 = vadd.f32 %v2287_v57, %v2058_v33  ;;  %v14148_v59 = vld [vmem:[#allocation2 + $0x1e8] sm:$0xff]  ;;  %v2288_v29 = vmul.f32 %v13936_v18, %v2195_v19 }
 0x213   : > { %1204 = vperm.xlu0 %12858, %v14104_v21  }
 0x214   : > { %v1275_v25 = vadd.f32 %v1243_v1, %v1014_v47 }
 0x215   : > { %v14126_v49 = vpop.permute.xlu1 %1425 }
 0x216   : > { %v14128_v50 = vpop.permute.xlu0 %913  ;;  %1209 = vperm.xlu1 %12859, %v14120_v20   ;;  %v1536_v37 = vadd.f32 %v1504_v14, %v1275_v25 }
 0x217   : > { %2229 = vperm.xlu0 %12858, %v14013_v34   ;;  %v1765_v34 = vmul.f32 %v13910_v44, %v14021_v2 }
 0x219   : > { %v2451_v53 = vpop.permute.xlu1 %2450  ;;  %v1797_v2 = vadd.f32 %v1765_v34, %v1536_v37 }
 0x21a   : > { %v14141_v43 = vpop.permute.xlu0 %1938  ;;  %v2548_v8 = vmul.f32 %v13950_v15, %v2451_v53  ;;  %2234 = vperm.xlu1 %12859, %v14050_v12   ;;  %v14160_v12 = vld [vmem:[#allocation2 + $0x1f0] sm:$0xff] }
 0x21b   : > { %1721 = vperm.xlu0 %12858, %v14084_v40   ;;  %v2059_v55 = vadd.f32 %v2027_v6, %v1797_v2 }
 0x21c   : > { %v2580_v36 = vadd.f32 %v2548_v8, %v2319_v30  ;;  %v14173_v8 = vld [vmem:[#allocation2 + $0x1e9] sm:$0xff] }
 0x21d   : > { %v14152_v9 = vpop.permute.xlu1 %1430  ;;  %v2320_v22 = vadd.f32 %v2288_v29, %v2059_v55  ;;  %v722_v29 = vmul.f32 %v13858_v58, %v13836_v45  ;;  %v726_v45 = vmul.f32 %v13858_v58, %v14069_v23  ;;  %v1505_v23 = vmul.f32 %v13899_v35, %v14035_v54 }
 0x21e   : > { %16532 = vst [vmem:[#allocation6_spill] sm:$0xff] %v14152_v9  ;;  %v14154_v1 = vpop.permute.xlu0 %918  ;;  %v2619_v57 = vadd.f32 %v13966_v42, %v2580_v36  ;;  %1978 = vperm.xlu1 %12859, %v14104_v21   ;;  %v1766_v54 = vmul.f32 %v13910_v44, %v14076_v38  ;;  %v2028_v38 = vmul.f32 %v13923_v3, %v14141_v43 }
 0x21f   : > { %1465 = vperm.xlu0 %12858, %v14148_v59   ;;  %v1506_v43 = vmul.f32 %v13899_v35, %v14054_v48  ;;  %v1767_v48 = vmul.f32 %v13910_v44, %v14110_v32 }
 0x220   : > { %v2651_v7 = vmax.f32 %v2619_v57, 0.0  ;;  %v493_v57 = vmul.f32 %v13865_v60, %v13838_v0  ;;  %v497_v0 = vmul.f32 %v13865_v60, %v14071_v5  ;;  %v987_v5 = vmul.f32 %v13874_v52, %v14128_v50 }
 0x221   : > { %v2456_v47 = vpop.permute.xlu1 %2455 }
 0x222   : > { %v14162_v10 = vpop.permute.xlu0 %1943  ;;  %2683 = vst.msk [vmem:[#allocation2 + $0x128] sm:$0xff] %vm169_vm0, %v2651_v7  ;;  %v2549_v14 = vmul.f32 %v13950_v15, %v2456_v47  ;;  %1470 = vperm.xlu1 %12859, %v14160_v12   ;;  %v983_v47 = vmul.f32 %v13874_v52, %v13931_v24 }
 0x223   : > { %2490 = vperm.xlu0 %12858, %v14067_v39  }
 0x224   : > { %v2581_v19 = vadd.f32 %v2549_v14, %v2320_v22  ;;  %v14193_v22 = vld [vmem:[#allocation2 + $0x207] sm:$0xff]  ;;  %v754_v14 = vadd.f32 %v722_v29, %v493_v57 }
 0x225   : > { %v663_v33 = vpop.permute.xlu1 %662 }
 0x226   : > { %v434_v25 = vpop.permute.xlu0 %433  ;;  %v2620_v53 = vadd.f32 %v13966_v42, %v2581_v19  ;;  %v728_v34 = vmul.f32 %v13858_v58, %v663_v33  ;;  %2495 = vperm.xlu1 %12859, %v14084_v40   ;;  %v14183_v40 = vld [vmem:[#allocation2 + $0x1f1] sm:$0xff]  ;;  %v1244_v19 = vmul.f32 %v13885_v56, %v13987_v26  ;;  %v1015_v26 = vadd.f32 %v983_v47, %v754_v14 }
 0x227   : > { %v499_v30 = vmul.f32 %v13865_v60, %v434_v25  ;;  %1983 = vperm.xlu0 %12858, %v14120_v20  }
 0x228   : > { %v2652_v37 = vmax.f32 %v2620_v53, 0.0  ;;  %v1276_v57 = vadd.f32 %v1244_v19, %v1015_v26 }
 0x229   : > { %v14175_v6 = vadd.f32 %v728_v34, %v499_v30  ;;  %v14177_v36 = vpop.permute.xlu1 %1686  ;;  %v2754_v2 = vld [vmem:[#allocation2 + $0x128] sm:$0xff]  ;;  %v723_v34 = vmul.f32 %v13858_v58, %v13880_v27  ;;  %v494_v27 = vmul.f32 %v13865_v60, %v13853_v11 }
 0x22a   : > { %v1175_v39 = vpop.permute.xlu0 %1174  ;;  %2684 = vst.msk [vmem:[#allocation2 + $0x130] sm:$0xff] %vm169_vm0, %v2652_v37  ;;  %2239 = vperm.xlu1 %12859, %v14148_v59   ;;  %11186 = vmatprep.mubr.msk.f32.mxu0 %vm169_vm0, %v2754_v2  ;;  %v14212_v37 = vld [vmem:[#allocation2 + $0x20f] sm:$0xff]  ;;  %v984_v2 = vmul.f32 %v13874_v52, %v13960_v31  ;;  %v1537_v11 = vadd.f32 %v1505_v23, %v1276_v57 }
 0x22b   : > { %1726 = vperm.xlu0 %12858, %v14173_v8   ;;  %v1248_v47 = vmul.f32 %v13885_v56, %v1175_v39  ;;  %v14227_v31 = vld [vmem:[#allocation2 + $0x210] sm:$0xff]  ;;  %v1245_v39 = vmul.f32 %v13885_v56, %v14005_v51 }
 0x22c   : > { %v9846_v51 = vld [vmem:[%s16419_s1 + $0x130] sm:$0xff] }
 0x22d   : > { %v439_v55 = vpop.permute.xlu1 %438  ;;  %v14254_v57 = vld [vmem:[#allocation2 + $0x211] sm:$0xff] }
 0x22e   : > { %v2200_v7 = vpop.permute.xlu0 %2199  ;;  %2244 = vperm.xlu1 %12859, %v14160_v12   ;;  %v500_v24 = vmul.f32 %v13865_v60, %v439_v55  ;;  %v758_v55 = vadd.f32 %v726_v45, %v497_v0  ;;  %v1798_v45 = vadd.f32 %v1766_v54, %v1537_v11  ;;  %v727_v0 = vmul.f32 %v13858_v58, %v14098_v17  ;;  %v9847_v17 = vld [vmem:[%s16419_s1 + $0x138] sm:$0xff] }
 0x22f   : > { %1731 = vperm.xlu0 %12858, %v14183_v40   ;;  %v2289_v23 = vmul.f32 %v13936_v18, %v2200_v7  ;;  %v498_v7 = vmul.f32 %v13865_v60, %v14086_v13  ;;  %v12171_v54 = vpack.c.bf16 %v9847_v17, %v9846_v51 }
 0x231   : > { %v1180_v33 = vpop.permute.xlu1 %1179  ;;  %v2755_v53 = vld [vmem:[#allocation2 + $0x130] sm:$0xff]  ;;  %12172 = vmatprep.subr.bf16.mxu0 %v12171_v54 }
 0x232   : > { %v668_v25 = vpop.permute.xlu0 %667  ;;  %2500 = vperm.xlu1 %12859, %v14173_v8   ;;  %11187 = vmatmul.mubr.msk.f32.gmra.mrb[18].mxu0 %vm169_vm0, %v2755_v53  ;;  %v1019_v53 = vadd.f32 %v987_v5, %v758_v55  ;;  %v14256_v55 = vld [vmem:[#allocation2 + $0x209] sm:$0xff]  ;;  %v1249_v13 = vmul.f32 %v13885_v56, %v1180_v33 }
 0x233   : > { %v729_v30 = vmul.f32 %v13858_v58, %v668_v25  ;;  %1988 = vperm.xlu0 %12858, %v14193_v22   ;;  %v755_v25 = vadd.f32 %v723_v34, %v494_v27  ;;  %12174 = vmatpush3.bf16.msra.mxu0 %v12171_v54 }
 0x234   : > { %v1280_v34 = vadd.f32 %v1248_v47, %v1019_v53  ;;  %v2060_v47 = vadd.f32 %v2028_v38, %v1798_v45 }
 0x235   : > { %v14218_v29 = vadd.f32 %v729_v30, %v500_v24  ;;  %v2205_v50 = vpop.permute.xlu1 %2204  ;;  %v14229_v24 = vld [vmem:[#allocation2 + $0x208] sm:$0xff]  ;;  %v1016_v19 = vadd.f32 %v984_v2, %v755_v25  ;;  %v988_v2 = vmul.f32 %v13874_v52, %v14154_v1 }
 0x236   : > { %v14223_v14 = vpop.permute.xlu0 %1691  ;;  %2505 = vperm.xlu1 %12859, %v14183_v40   ;;  %v2321_v1 = vadd.f32 %v2289_v23, %v2060_v47  ;;  %v2290_v45 = vmul.f32 %v13936_v18, %v2205_v50 }
 0x237   : > { %16533 = vst [vmem:[#allocation7_spill] sm:$0xff] %v14223_v14  ;;  %1993 = vperm.xlu0 %12858, %v14212_v37   ;;  %v1277_v53 = vadd.f32 %v1245_v39, %v1016_v19  ;;  %v2029_v19 = vmul.f32 %v13923_v3, %v14162_v10 }
 0x239   : > { %v1436_v30 = vpop.permute.xlu1 %1435  ;;  %v1538_v38 = vadd.f32 %v1506_v43, %v1277_v53 }
 0x23a   : > { %v924_v26 = vpop.permute.xlu0 %923  ;;  %v1509_v5 = vmul.f32 %v13899_v35, %v1436_v30  ;;  %2254 = vperm.xlu1 %12859, %v14227_v31   ;;  %v759_v30 = vadd.f32 %v727_v0, %v498_v7 }
 0x23b   : > { %v989_v27 = vmul.f32 %v13874_v52, %v924_v26  ;;  %2249 = vperm.xlu0 %12858, %v14229_v24   ;;  %v1799_v39 = vadd.f32 %v1767_v48, %v1538_v38 }
 0x23c   : > { %v14258_v25 = vadd.f32 %v1509_v5, %v1280_v34 }
 0x23d   : > { %v1021_v11 = vadd.f32 %v989_v27, %v14175_v6  ;;  %v2461_v26 = vpop.permute.xlu1 %2460  ;;  %v1020_v6 = vadd.f32 %v988_v2, %v759_v30  ;;  %v2061_v51 = vadd.f32 %v2029_v19, %v1799_v39 }
 0x23e   : > { %v14264_v14 = vpop.permute.xlu0 %1948  ;;  %v2550_v9 = vmul.f32 %v13950_v15, %v2461_v26  ;;  %2515 = vperm.xlu1 %12859, %v14254_v57  }
 0x23f   : > { %2510 = vperm.xlu0 %12858, %v14256_v55   ;;  %v1281_v33 = vadd.f32 %v1249_v13, %v1020_v6  ;;  %v2322_v7 = vadd.f32 %v2290_v45, %v2061_v51  ;;  %v1844_v45 = vld [vmem:[#allocation2 + $0x22f] sm:$0xff] }
 0x240   : > { %v2582_v32 = vadd.f32 %v2550_v9, %v2321_v1  ;;  %v495_v1 = vmul.f32 %v13865_v60, %v13980_v62  ;;  %v1246_v62 = vmul.f32 %v13885_v56, %v14078_v4 }
 0x241   : > { %v1441_v0 = vpop.permute.xlu1 %1440 }
 0x242   : > { %v929_v34 = vpop.permute.xlu0 %928  ;;  %v2621_v23 = vadd.f32 %v13966_v42, %v2582_v32  ;;  %v1510_v5 = vmul.f32 %v13899_v35, %v1441_v0  ;;  %692 = vperm.xlu1 %12859, %v14148_v59   ;;  %v1843_v0 = vld [vmem:[#allocation2 + $0x227] sm:$0xff] }
 0x243   : > { %v990_v27 = vmul.f32 %v13874_v52, %v929_v34  ;;  %463 = vperm.xlu0 %12858, %v14104_v21   ;;  %v1507_v34 = vmul.f32 %v13899_v35, %v14126_v49  ;;  %v986_v49 = vmul.f32 %v13874_v52, %v14056_v28 }
 0x244   : > { %v2653_v17 = vmax.f32 %v2621_v23, 0.0  ;;  %v14277_v10 = vadd.f32 %v1510_v5, %v1281_v33 }
 0x245   : > { %v1022_v9 = vadd.f32 %v990_v27, %v14218_v29  ;;  %v2466_v43 = vpop.permute.xlu1 %2465  ;;  %v725_v27 = vmul.f32 %v13858_v58, %v14007_v16  ;;  %v2030_v16 = vmul.f32 %v13923_v3, %v14264_v14 }
 0x246   : > { %v14280_v50 = vpop.permute.xlu0 %1953  ;;  %2685 = vst.msk [vmem:[#allocation2 + $0x148] sm:$0xff] %vm169_vm0, %v2653_v17  ;;  %v2551_v2 = vmul.f32 %v13950_v15, %v2466_v43  ;;  %697 = vperm.xlu1 %12859, %v14160_v12   ;;  %v1768_v17 = vmul.f32 %v13910_v44, %v14177_v36  ;;  %v496_v43 = vmul.f32 %v13865_v60, %v13995_v41 }
 0x247   : > { %468 = vperm.xlu0 %12858, %v14120_v20  }
 0x248   : > { %v2583_v59 = vadd.f32 %v2551_v2, %v2322_v7  ;;  %v2104_v7 = vld [vmem:[#allocation2 + $0x228] sm:$0xff] }
 0x249   : > { %v673_v21 = vpop.permute.xlu1 %672 }
 0x24a   : > { %v444_v54 = vpop.permute.xlu0 %443  ;;  %v2622_v47 = vadd.f32 %v13966_v42, %v2583_v59  ;;  %v730_v53 = vmul.f32 %v13858_v58, %v673_v21  ;;  %958 = vperm.xlu1 %12859, %v14183_v40   ;;  %v757_v59 = vadd.f32 %v725_v27, %v496_v43  ;;  %v1247_v21 = vmul.f32 %v13885_v56, %v14096_v63 }
 0x24b   : > { %v501_v29 = vmul.f32 %v13865_v60, %v444_v54  ;;  %953 = vperm.xlu0 %12858, %v14173_v8   ;;  %v724_v8 = vmul.f32 %v13858_v58, %v13978_v61  ;;  %v9917_v61 = vld [vmem:[%s16419_s1 + $0x168] sm:$0xff] }
 0x24c   : > { %v2654_v30 = vmax.f32 %v2622_v47, 0.0  ;;  %v1018_v28 = vadd.f32 %v986_v49, %v757_v59 }
 0x24d   : > { %v14291_v48 = vadd.f32 %v730_v53, %v501_v29  ;;  %v14293_v13 = vpop.permute.xlu1 %1696  ;;  %v2756_v20 = vld [vmem:[#allocation2 + $0x148] sm:$0xff]  ;;  %v2366_v29 = vld [vmem:[#allocation2 + $0x231] sm:$0xff] }
 0x24e   : > { %v1185_v12 = vpop.permute.xlu0 %1184  ;;  %2686 = vst.msk [vmem:[#allocation2 + $0x150] sm:$0xff] %vm169_vm0, %v2654_v30  ;;  %1219 = vperm.xlu1 %12859, %v14212_v37   ;;  %11189 = vmatprep.mubr.msk.f32.mxu0 %vm169_vm0, %v2756_v20  ;;  %v985_v37 = vmul.f32 %v13874_v52, %v14037_v46  ;;  %v2365_v30 = vld [vmem:[#allocation2 + $0x229] sm:$0xff] }
 0x24f   : > { %v1250_v26 = vmul.f32 %v13885_v56, %v1185_v12  ;;  %1214 = vperm.xlu0 %12858, %v14193_v22   ;;  %v9916_v22 = vld [vmem:[%s16419_s1 + $0x160] sm:$0xff] }
 0x250   : > { %v14318_v39 = vpack.c.bf16 %v9917_v61, %v9916_v22  ;;  %v16534_v12 = vld [vmem:[#allocation6_spill] sm:$0xff]  ;;  %v2031_v61 = vmul.f32 %v13923_v3, %v14280_v50 }
 0x251   : > { %v14300_v40 = vadd.f32 %v1250_v26, %v1021_v11  ;;  %v449_v38 = vpop.permute.xlu1 %448  ;;  %v756_v11 = vadd.f32 %v724_v8, %v495_v1  ;;  %v1508_v14 = vmul.f32 %v13899_v35, %v16534_v12  ;;  %v16535_v1 = vld [vmem:[#allocation7_spill] sm:$0xff] }
 0x252   : > { %v2210_v6 = vpop.permute.xlu0 %2209  ;;  %1480 = vperm.xlu1 %12859, %v14227_v31   ;;  %12176 = vmatprep.subr.bf16.mxu0 %v14318_v39 }
 0x253   : > { %1475 = vperm.xlu0 %12858, %v14229_v24   ;;  %v502_v24 = vmul.f32 %v13865_v60, %v449_v38  ;;  %v1017_v4 = vadd.f32 %v985_v37, %v756_v11  ;;  %v2291_v53 = vmul.f32 %v13936_v18, %v2210_v6  ;;  %v1769_v38 = vmul.f32 %v13910_v44, %v16535_v1 }
 0x255   : > { %v1190_v19 = vpop.permute.xlu1 %1189  ;;  %v2757_v31 = vld [vmem:[#allocation2 + $0x150] sm:$0xff] }
 0x256   : > { %v678_v32 = vpop.permute.xlu0 %677  ;;  %v1251_v46 = vmul.f32 %v13885_v56, %v1190_v19  ;;  %1741 = vperm.xlu1 %12859, %v14254_v57   ;;  %11190 = vmatmul.mubr.msk.f32.gmra.mrb[20].mxu0 %vm169_vm0, %v2757_v31  ;;  %v1279_v56 = vadd.f32 %v1247_v21, %v1018_v28 }
 0x257   : > { %v731_v33 = vmul.f32 %v13858_v58, %v678_v32  ;;  %1736 = vperm.xlu0 %12858, %v14256_v55   ;;  %v1278_v55 = vadd.f32 %v1246_v62, %v1017_v4 }
 0x258   : > { %v14329_v23 = vadd.f32 %v1251_v46, %v1022_v9  ;;  %v2105_v9 = vld [vmem:[#allocation2 + $0x230] sm:$0xff]  ;;  %v1540_v22 = vadd.f32 %v1508_v14, %v1279_v56 }
 0x259   : > { %v763_v5 = vadd.f32 %v731_v33, %v502_v24  ;;  %v2215_v51 = vpop.permute.xlu1 %2214  ;;  %v1539_v2 = vadd.f32 %v1507_v34, %v1278_v55 }
 0x25a   : > { %v14333_v57 = vpop.permute.xlu0 %1701  ;;  %2003 = vperm.xlu1 %12859, %v1844_v45   ;;  %v1801_v19 = vadd.f32 %v1769_v38, %v1540_v22  ;;  %v2292_v32 = vmul.f32 %v13936_v18, %v2215_v51 }
 0x25b   : > { %1998 = vperm.xlu0 %12858, %v1843_v0   ;;  %v1800_v47 = vadd.f32 %v1768_v17, %v1539_v2 }
 0x25c   : > { %v2063_v46 = vadd.f32 %v2031_v61, %v1801_v19 }
 0x25d   : > { %v14345_v54 = vpop.permute.xlu1 %1445  ;;  %v2062_v20 = vadd.f32 %v2030_v16, %v1800_v47 }
 0x25e   : > { %v934_v36 = vpop.permute.xlu0 %933  ;;  %2264 = vperm.xlu1 %12859, %v2105_v9   ;;  %v2324_v34 = vadd.f32 %v2292_v32, %v2063_v46 }
 0x25f   : > { %v991_v41 = vmul.f32 %v13874_v52, %v934_v36  ;;  %2259 = vperm.xlu0 %12858, %v2104_v7   ;;  %v2323_v6 = vadd.f32 %v2291_v53, %v2062_v20  ;;  %v1770_v53 = vmul.f32 %v13910_v44, %v14293_v13 }
 0x261   : > { %v14352_v26 = vadd.f32 %v991_v41, %v14291_v48  ;;  %v2471_v63 = vpop.permute.xlu1 %2470 }
 0x262   : > { %v1959_v8 = vpop.permute.xlu0 %1958  ;;  %v2552_v37 = vmul.f32 %v13950_v15, %v2471_v63  ;;  %2525 = vperm.xlu1 %12859, %v2366_v29   ;;  %v1771_v63 = vmul.f32 %v13910_v44, %v14333_v57 }
 0x263   : > { %2520 = vperm.xlu0 %12858, %v2365_v30   ;;  %v2032_v41 = vmul.f32 %v13923_v3, %v1959_v8  ;;  %v1802_v30 = vadd.f32 %v1770_v53, %v14258_v25 }
 0x264   : > { %v2584_v11 = vadd.f32 %v2552_v37, %v2323_v6  ;;  %v1803_v25 = vadd.f32 %v1771_v63, %v14277_v10 }
 0x265   : > { %v14359_v62 = vpop.permute.xlu1 %1450  ;;  %v2064_v14 = vadd.f32 %v2032_v41, %v1802_v30  ;;  %v14451_v41 = vld [vmem:[%s16419_s1 + $0xc0] ss:$0 sm:$0xff] }
 0x266   : > { %v939_v48 = vpop.permute.xlu0 %938  ;;  %v2623_v31 = vadd.f32 %v13966_v42, %v2584_v11 }
 0x267   : > { %v992_v24 = vmul.f32 %v13874_v52, %v939_v48 }
 0x268   : > { %v2655_v33 = vmax.f32 %v2623_v31, 0.0 }
 0x269   : > { %v14364_v45 = vadd.f32 %v992_v24, %v763_v5  ;;  %v2476_v0 = vpop.permute.xlu1 %2475 }
 0x26a   : > { %v1964_v4 = vpop.permute.xlu0 %1963  ;;  %2687 = vst.msk [vmem:[#allocation2 + $0x168] sm:$0xff] %vm169_vm0, %v2655_v33  ;;  %v2553_v50 = vmul.f32 %v13950_v15, %v2476_v0 }
 0x26b   : > { %v2033_v13 = vmul.f32 %v13923_v3, %v1964_v4 }
 0x26c   : > { %v2585_v27 = vadd.f32 %v2553_v50, %v2324_v34 }
 0x26d   : > { %v683_v55 = vpop.permute.xlu1 %682  ;;  %v2065_v11 = vadd.f32 %v2033_v13, %v1803_v25 }
 0x26e   : > { %v454_v17 = vpop.permute.xlu0 %453  ;;  %v2624_v51 = vadd.f32 %v13966_v42, %v2585_v27  ;;  %v732_v43 = vmul.f32 %v13858_v58, %v683_v55  ;;  %v1511_v27 = vmul.f32 %v13899_v35, %v14345_v54 }
 0x26f   : > { %v503_v52 = vmul.f32 %v13865_v60, %v454_v17 }
 0x270   : > { %v2656_v49 = vmax.f32 %v2624_v51, 0.0 }
 0x271   : > { %v14371_v9 = vadd.f32 %v732_v43, %v503_v52  ;;  %v1707_v5 = vpop.permute.xlu1 %1706  ;;  %v14375_v2 = vld [vmem:[#allocation2 + $0x168] sm:$0xff]  ;;  %v1543_v43 = vadd.f32 %v1511_v27, %v14300_v40  ;;  %v14429_v52 = vld [vmem:[%s16419_s1 + $0x80] ss:$0 sm:$0xff] }
 0x272   : > { %v14373_v7 = vpop.permute.xlu0 %1194  ;;  %2688 = vst.msk [vmem:[#allocation2 + $0x170] sm:$0xff] %vm169_vm0, %v2656_v49  ;;  %11192 = vmatprep.mubr.msk.f32.mxu0 %vm169_vm0, %v14375_v2  ;;  %v1772_v51 = vmul.f32 %v13910_v44, %v1707_v5  ;;  %v1512_v49 = vmul.f32 %v14429_v52, %v14359_v62  ;;  %v14441_v44 = vld [vmem:[%s16419_s1 + $0xa0] ss:$0 sm:$0xff] }
 0x274   : > { %v1804_v54 = vadd.f32 %v1772_v51, %v1543_v43 }
 0x275   : > { %v14380_v16 = vpop.permute.xlu1 %458 }
 0x276   : > { %v2220_v59 = vpop.permute.xlu0 %2219 }
 0x277   : > { %v2293_v12 = vmul.f32 %v13936_v18, %v2220_v59 }
 0x279   : > { %v14382_v21 = vpop.permute.xlu1 %1199  ;;  %v14386_v60 = vld [vmem:[#allocation2 + $0x170] sm:$0xff]  ;;  %v2325_v1 = vadd.f32 %v2293_v12, %v2064_v14 }
 0x27a   : > { %v14384_v58 = vpop.permute.xlu0 %687  ;;  %11193 = vmatmul.mubr.msk.f32.gmra.mrb[22].mxu0 %vm169_vm0, %v14386_v60 }
 0x27d   : > { %v2225_v36 = vpop.permute.xlu1 %2224 }
 0x27e   : > { %v1712_v47 = vpop.permute.xlu0 %1711  ;;  %v2294_v22 = vmul.f32 %v13936_v18, %v2225_v36 }
 0x27f   : > { %v1773_v40 = vmul.f32 %v14441_v44, %v1712_v47 }
 0x280   : > { %v2326_v32 = vadd.f32 %v2294_v22, %v2065_v11 }
 0x281   : > { %v14393_v28 = vpop.permute.xlu1 %1455 }
 0x282   : > { %v14395_v29 = vpop.permute.xlu0 %943 }
 0x285   : > { %v2481_v20 = vpop.permute.xlu1 %2480 }
 0x286   : > { %v1969_v56 = vpop.permute.xlu0 %1968  ;;  %v2554_v38 = vmul.f32 %v13950_v15, %v2481_v20 }
 0x287   : > { %v2034_v59 = vmul.f32 %v13923_v3, %v1969_v56  ;;  %v1544_v3 = vadd.f32 %v1512_v49, %v14329_v23 }
 0x288   : > { %v2586_v8 = vadd.f32 %v2554_v38, %v2325_v1 }
 0x289   : > { %v14403_v6 = vpop.permute.xlu1 %1460  ;;  %v2066_v62 = vadd.f32 %v2034_v59, %v1804_v54  ;;  %v1805_v20 = vadd.f32 %v1773_v40, %v1544_v3 }
 0x28a   : > { %v14405_v37 = vpop.permute.xlu0 %948  ;;  %v2625_v61 = vadd.f32 %v13966_v42, %v2586_v8  ;;  %v14459_v8 = vld [vmem:[%s16419_s1 + $0x60] ss:$0 sm:$0xff] }
 0x28b   : > { %v1252_v25 = vmul.f32 %v14459_v8, %v14373_v7 }
 0x28c   : > { %v2657_v48 = vmax.f32 %v2625_v61, 0.0 }
 0x28d   : > { %v2486_v19 = vpop.permute.xlu1 %2485 }
 0x28e   : > { %v1974_v57 = vpop.permute.xlu0 %1973  ;;  %2689 = vst.msk [vmem:[#allocation2 + $0x188] sm:$0xff] %vm169_vm0, %v2657_v48  ;;  %v2555_v31 = vmul.f32 %v13950_v15, %v2486_v19 }
 0x28f   : > { %v2035_v30 = vmul.f32 %v14451_v41, %v1974_v57 }
 0x290   : > { %v2587_v24 = vadd.f32 %v2555_v31, %v2326_v32  ;;  %v1284_v31 = vadd.f32 %v1252_v25, %v14352_v26  ;;  %v14479_v26 = vld [vmem:[%s16419_s1 + $0x20] ss:$0 sm:$0xff] }
 0x291   : > { %v1717_v46 = vpop.permute.xlu1 %1716  ;;  %v2067_v1 = vadd.f32 %v2035_v30, %v1805_v20 }
 0x292   : > { %v14412_v33 = vpop.permute.xlu0 %1204  ;;  %v2626_v0 = vadd.f32 %v13966_v42, %v2587_v24  ;;  %v1253_v24 = vmul.f32 %v14459_v8, %v14382_v21  ;;  %v733_v21 = vmul.f32 %v14479_v26, %v14384_v58  ;;  %v14495_v58 = vld [vmem:[%s16419_s1] ss:$0 sm:$0xff] }
 0x293   : > { %v1254_v3 = vmul.f32 %v14459_v8, %v14412_v33 }
 0x294   : > { %v2658_v10 = vmax.f32 %v2626_v0, 0.0  ;;  %v1774_v0 = vmul.f32 %v14441_v44, %v1717_v46 }
 0x295   : > { %v14415_v4 = vpop.permute.xlu1 %1209  ;;  %v14417_v50 = vld [vmem:[#allocation2 + $0x188] sm:$0xff] }
 0x296   : > { %v2230_v34 = vpop.permute.xlu0 %2229  ;;  %2690 = vst.msk [vmem:[#allocation2 + $0x190] sm:$0xff] %vm169_vm0, %v2658_v10  ;;  %11195 = vmatprep.mubr.msk.f32.mxu0 %vm169_vm0, %v14417_v50 }
 0x297   : > { %v2295_v5 = vmul.f32 %v13936_v18, %v2230_v34 }
 0x299   : > { %v2235_v55 = vpop.permute.xlu1 %2234  ;;  %v2327_v56 = vadd.f32 %v2295_v5, %v2066_v62 }
 0x29a   : > { %v1722_v17 = vpop.permute.xlu0 %1721  ;;  %v2296_v47 = vmul.f32 %v13936_v18, %v2235_v55  ;;  %v1513_v18 = vmul.f32 %v14429_v52, %v14393_v28  ;;  %v1285_v55 = vadd.f32 %v1253_v24, %v14364_v45  ;;  %v504_v45 = vmul.f32 %v14495_v58, %v14380_v16 }
 0x29b   : > { %v1775_v51 = vmul.f32 %v14441_v44, %v1722_v17  ;;  %v14502_v17 = vld [vmem:[%s16419_s1 + $0x40] ss:$0 sm:$0xff]  ;;  %v1255_v16 = vmul.f32 %v14459_v8, %v14415_v4 }
 0x29c   : > { %v2328_v22 = vadd.f32 %v2296_v47, %v2067_v1  ;;  %v1545_v10 = vadd.f32 %v1513_v18, %v1284_v31  ;;  %v993_v49 = vmul.f32 %v14502_v17, %v14395_v29  ;;  %v994_v59 = vmul.f32 %v14502_v17, %v14405_v37  ;;  %v14519_v37 = vld [vmem:[%s16419_s1 + $0x100] ss:$0 sm:$0xff] }
 0x29d   : > { %v1979_v36 = vpop.permute.xlu1 %1978  ;;  %v14436_v35 = vld [vmem:[#allocation2 + $0x190] sm:$0xff]  ;;  %v765_v5 = vadd.f32 %v733_v21, %v504_v45 }
 0x29e   : > { %v14434_v53 = vpop.permute.xlu0 %1465  ;;  %11196 = vmatmul.mubr.msk.f32.gmra.mrb[24].mxu0 %vm169_vm0, %v14436_v35  ;;  %v2036_v28 = vmul.f32 %v14451_v41, %v1979_v36  ;;  %v1025_v33 = vadd.f32 %v993_v49, %v14371_v9  ;;  %v14535_v9 = vld [vmem:[%s16420_s2] ss:$0 sm:$0xff] }
 0x29f   : > { %v1026_v4 = vadd.f32 %v994_v59, %v765_v5 }
 0x2a1   : > { %v1471_v12 = vpop.permute.xlu1 %1470  ;;  %v1287_v25 = vadd.f32 %v1255_v16, %v1026_v4 }
 0x2a2   : > { %v2491_v14 = vpop.permute.xlu0 %2490  ;;  %v1516_v1 = vmul.f32 %v14429_v52, %v1471_v12 }
 0x2a3   : > { %v2556_v63 = vmul.f32 %v13950_v15, %v2491_v14 }
 0x2a5   : > { %v2588_v38 = vadd.f32 %v2556_v63, %v2327_v56  ;;  %v2496_v13 = vpop.permute.xlu1 %2495  ;;  %v1515_v63 = vmul.f32 %v14429_v52, %v14434_v53 }
 0x2a6   : > { %v1984_v23 = vpop.permute.xlu0 %1983  ;;  %v2557_v11 = vmul.f32 %v13950_v15, %v2496_v13  ;;  %v1514_v15 = vmul.f32 %v14429_v52, %v14403_v6  ;;  %v14489_v6 = vld [vmem:[%s16419_s1 + $0xe0] ss:$0 sm:$0xff] }
 0x2a7   : > { %v2627_v61 = vadd.f32 %v13966_v42, %v2588_v38  ;;  %v2037_v40 = vmul.f32 %v14451_v41, %v1984_v23  ;;  %v1286_v23 = vadd.f32 %v1254_v3, %v1025_v33 }
 0x2a8   : > { %v2589_v19 = vadd.f32 %v2557_v11, %v2328_v22  ;;  %v1546_v36 = vadd.f32 %v1514_v15, %v1285_v55 }
 0x2a9   : > { %v2659_v48 = vmax.f32 %v2627_v61, 0.0  ;;  %v2240_v57 = vpop.permute.xlu1 %2239 }
 0x2aa   : > { %v1727_v32 = vpop.permute.xlu0 %1726  ;;  %v2628_v7 = vadd.f32 %v13966_v42, %v2589_v19  ;;  %v1806_v42 = vadd.f32 %v1774_v0, %v1545_v10  ;;  %v2297_v43 = vmul.f32 %v14489_v6, %v2240_v57  ;;  %v1807_v20 = vadd.f32 %v1775_v51, %v1546_v36 }
 0x2ab   : > { %2691 = vst.msk [vmem:[#allocation2 + $0x1a8] sm:$0xff] %vm169_vm0, %v2659_v48  ;;  %v1776_v22 = vmul.f32 %v14441_v44, %v1727_v32  ;;  %v1547_v57 = vadd.f32 %v1515_v63, %v1286_v23  ;;  %v1548_v32 = vadd.f32 %v1516_v1, %v1287_v25 }
 0x2ac   : > { %v2660_v34 = vmax.f32 %v2628_v7, 0.0  ;;  %v2068_v54 = vadd.f32 %v2036_v28, %v1806_v42  ;;  %v2069_v38 = vadd.f32 %v2037_v40, %v1807_v20 }
 0x2ad   : > { %v2245_v46 = vpop.permute.xlu1 %2244  ;;  %v1808_v10 = vadd.f32 %v1776_v22, %v1547_v57  ;;  %v2699_v22 = vld [vmem:[#allocation2 + $0x7] sm:$0xff] }
 0x2ae   : > { %v1732_v27 = vpop.permute.xlu0 %1731  ;;  %2692 = vst.msk [vmem:[#allocation2 + $0x1b0] sm:$0xff] %vm169_vm0, %v2660_v34  ;;  %v2329_v29 = vadd.f32 %v2297_v43, %v2068_v54  ;;  %v2298_v56 = vmul.f32 %v14489_v6, %v2245_v46 }
 0x2af   : > { %v1777_v19 = vmul.f32 %v14441_v44, %v1732_v27 }
 0x2b0   : > { %v2330_v48 = vadd.f32 %v2298_v56, %v2069_v38 }
 0x2b1   : > { %v2501_v62 = vpop.permute.xlu1 %2500  ;;  %v1809_v34 = vadd.f32 %v1777_v19, %v1548_v32 }
 0x2b2   : > { %v1989_v30 = vpop.permute.xlu0 %1988  ;;  %v14513_v14 = vld [vmem:[#allocation2 + $0x1a8] sm:$0xff]  ;;  %v2558_v47 = vmul.f32 %v14519_v37, %v2501_v62 }
 0x2b3   : > { %11198 = vmatprep.mubr.msk.f32.mxu0 %vm169_vm0, %v14513_v14  ;;  %v2038_v24 = vmul.f32 %v14451_v41, %v1989_v30 }
 0x2b4   : > { %v2590_v13 = vadd.f32 %v2558_v47, %v2329_v29 }
 0x2b5   : > { %v2506_v61 = vpop.permute.xlu1 %2505  ;;  %v14529_v18 = vld [vmem:[#allocation2 + $0x1b0] sm:$0xff]  ;;  %v2070_v55 = vadd.f32 %v2038_v24, %v1808_v10 }
 0x2b6   : > { %v1994_v11 = vpop.permute.xlu0 %1993  ;;  %v2629_v53 = vadd.f32 %v14535_v9, %v2590_v13  ;;  %v2559_v12 = vmul.f32 %v14519_v37, %v2506_v61  ;;  %11199 = vmatmul.mubr.msk.f32.gmra.mrb[26].mxu0 %vm169_vm0, %v14529_v18  ;;  %v9918_v61 = vld [vmem:[%s16419_s1 + $0x170] sm:$0xff] }
 0x2b7   : > { %v2039_v7 = vmul.f32 %v14451_v41, %v1994_v11  ;;  %v9919_v11 = vld [vmem:[%s16419_s1 + $0x178] sm:$0xff] }
 0x2b8   : > { %v2661_v31 = vmax.f32 %v2629_v53, 0.0  ;;  %v2591_v0 = vadd.f32 %v2559_v12, %v2330_v48  ;;  %v2700_v48 = vld [vmem:[#allocation2 + $0xf] sm:$0xff]  ;;  %v12179_v32 = vpack.c.bf16 %v9919_v11, %v9918_v61 }
 0x2b9   : > { %v2255_v15 = vpop.permute.xlu1 %2254  ;;  %v2071_v51 = vadd.f32 %v2039_v7, %v1809_v34  ;;  %v9953_v7 = vld [vmem:[%s16419_s1 + $0x188] sm:$0xff] }
 0x2ba   : > { %v2250_v28 = vpop.permute.xlu0 %2249  ;;  %2693 = vst.msk [vmem:[#allocation2 + $0x1c8] sm:$0xff] %vm169_vm0, %v2661_v31  ;;  %v2630_v21 = vadd.f32 %v14535_v9, %v2591_v0  ;;  %v2300_v46 = vmul.f32 %v14489_v6, %v2255_v15  ;;  %v9952_v0 = vld [vmem:[%s16419_s1 + $0x180] sm:$0xff] }
 0x2bb   : > { %v2299_v27 = vmul.f32 %v14489_v6, %v2250_v28  ;;  %v14589_v15 = vld [vmem:[#allocation2 + $0x27] sm:$0xff] }
 0x2bc   : > { %v2662_v42 = vmax.f32 %v2630_v21, 0.0  ;;  %v2332_v49 = vadd.f32 %v2300_v46, %v2071_v51  ;;  %v14595_v21 = vpack.c.bf16 %v9953_v7, %v9952_v0  ;;  %v14644_v0 = vld [vmem:[#allocation2 + $0xaf] sm:$0xff] }
 0x2bd   : > { %v2516_v43 = vpop.permute.xlu1 %2515  ;;  %v2331_v59 = vadd.f32 %v2299_v27, %v2070_v55 }
 0x2be   : > { %v2511_v45 = vpop.permute.xlu0 %2510  ;;  %2694 = vst.msk [vmem:[#allocation2 + $0x1d0] sm:$0xff] %vm169_vm0, %v2662_v42  ;;  %v2561_v36 = vmul.f32 %v14519_v37, %v2516_v43  ;;  %v14599_v42 = vld [vmem:[#allocation2 + $0x2f] sm:$0xff] }
 0x2bf   : > { %v2560_v54 = vmul.f32 %v14519_v37, %v2511_v45 }
 0x2c0   : > { %v2593_v40 = vadd.f32 %v2561_v36, %v2332_v49 }
 0x2c1   : > { %v2592_v5 = vadd.f32 %v2560_v54, %v2331_v59  ;;  %v693_v3 = vpop.permute.xlu1 %692  ;;  %v14550_v62 = vld [vmem:[#allocation2 + $0x1c8] sm:$0xff] }
 0x2c2   : > { %v464_v16 = vpop.permute.xlu0 %463  ;;  %v2632_v30 = vadd.f32 %v14535_v9, %v2593_v40  ;;  %11201 = vmatprep.mubr.msk.f32.mxu0 %vm169_vm0, %v14550_v62  ;;  %v734_v31 = vmul.f32 %v14479_v26, %v693_v3 }
 0x2c3   : > { %v2631_v20 = vadd.f32 %v14535_v9, %v2592_v5  ;;  %v505_v24 = vmul.f32 %v14495_v58, %v464_v16  ;;  %v14612_v5 = vld [vmem:[#allocation2 + $0x4f] sm:$0xff] }
 0x2c4   : > { %v2664_v29 = vmax.f32 %v2632_v30, 0.0 }
 0x2c5   : > { %v2663_v56 = vmax.f32 %v2631_v20, 0.0  ;;  %v698_v47 = vpop.permute.xlu1 %697  ;;  %v14556_v4 = vld [vmem:[#allocation2 + $0x1d0] sm:$0xff]  ;;  %v766_v46 = vadd.f32 %v734_v31, %v505_v24 }
 0x2c6   : > { %v469_v33 = vpop.permute.xlu0 %468  ;;  %2696 = vst.msk [vmem:[#allocation2 + $0x1f0] sm:$0xff] %vm169_vm0, %v2664_v29  ;;  %11202 = vmatmul.mubr.msk.f32.gmra.mrb[28].mxu0 %vm169_vm0, %v14556_v4  ;;  %v735_v19 = vmul.f32 %v14479_v26, %v698_v47 }
 0x2c7   : > { %2695 = vst.msk [vmem:[#allocation2 + $0x1e8] sm:$0xff] %vm169_vm0, %v2663_v56  ;;  %v506_v53 = vmul.f32 %v14495_v58, %v469_v33 }
 0x2c9   : > { %v959_v63 = vpop.permute.xlu1 %958  ;;  %v767_v26 = vadd.f32 %v735_v19, %v506_v53  ;;  %v14634_v53 = vld [vmem:[#allocation2 + $0x8f] sm:$0xff] }
 0x2ca   : > { %v954_v1 = vpop.permute.xlu0 %953  ;;  %v996_v10 = vmul.f32 %v14502_v17, %v959_v63 }
 0x2cb   : > { %v995_v28 = vmul.f32 %v14502_v17, %v954_v1  ;;  %v14624_v1 = vld [vmem:[#allocation2 + $0x6f] sm:$0xff] }
 0x2cc   : > { %v1028_v51 = vadd.f32 %v996_v10, %v767_v26  ;;  %v14662_v26 = vld [vmem:[#allocation2 + $0xef] sm:$0xff] }
 0x2cd   : > { %v1220_v38 = vpop.permute.xlu1 %1219  ;;  %v14564_v25 = vld [vmem:[#allocation2 + $0x1f0] sm:$0xff]  ;;  %v1027_v17 = vadd.f32 %v995_v28, %v766_v46  ;;  %v14674_v46 = vld [vmem:[#allocation2 + $0x127] sm:$0xff] }
 0x2ce   : > { %v1215_v13 = vpop.permute.xlu0 %1214  ;;  %v14562_v23 = vld [vmem:[#allocation2 + $0x1e8] sm:$0xff]  ;;  %v1257_v27 = vmul.f32 %v14459_v8, %v1220_v38 }
 0x2cf   : > { %11204 = vmatprep.mubr.msk.f32.mxu0 %vm169_vm0, %v14562_v23  ;;  %v1256_v55 = vmul.f32 %v14459_v8, %v1215_v13  ;;  %v14628_v38 = vld [vmem:[#allocation2 + $0x87] sm:$0xff]  ;;  %v14654_v28 = vld [vmem:[#allocation2 + $0xcf] sm:$0xff] }
 0x2d0   : > { %11205 = vmatmul.mubr.msk.f32.gmra.mrb[30].mxu0 %vm169_vm0, %v14564_v25  ;;  %v1289_v8 = vadd.f32 %v1257_v27, %v1028_v51  ;;  %v14678_v27 = vld [vmem:[#allocation2 + $0x12f] sm:$0xff] }
 0x2d1   : > { %11215 = vmatprep.mubr.msk.f32.mxu0 %vm169_vm0, %v2699_v22  ;;  %v1481_v12 = vpop.permute.xlu1 %1480  ;;  %v1288_v36 = vadd.f32 %v1256_v55, %v1027_v17  ;;  %v14682_v55 = vld [vmem:[#allocation2 + $0x147] sm:$0xff]  ;;  %v14686_v51 = vld [vmem:[#allocation2 + $0x14f] sm:$0xff] }
 0x2d2   : > { %v1476_v57 = vpop.permute.xlu0 %1475  ;;  %v1518_v43 = vmul.f32 %v14429_v52, %v1481_v12  ;;  %v14638_v12 = vld [vmem:[#allocation2 + $0xa7] sm:$0xff] }
 0x2d3   : > { %v1517_v45 = vmul.f32 %v14429_v52, %v1476_v57  ;;  %v14616_v52 = vld [vmem:[#allocation2 + $0x67] sm:$0xff] }
 0x2d4   : > { %11216 = vmatmul.mubr.msk.f32.vlgmr.msra.gmra.mrb[0].mxu0 %vm169_vm0, %v2700_v48  ;;  %v1550_v3 = vadd.f32 %v1518_v43, %v1289_v8  ;;  %v14690_v17 = vld [vmem:[#allocation2 + $0x167] sm:$0xff]  ;;  %v14694_v43 = vld [vmem:[#allocation2 + $0x16f] sm:$0xff] }
 0x2d5   : > { %12178 = vmatpush3.bf16.msra.mxu0 %v14318_v39  ;;  %11218 = vmatprep.mubr.msk.f32.mxu0 %vm169_vm0, %v14589_v15  ;;  %v1742_v58 = vpop.permute.xlu1 %1741  ;;  %v14603_v39 = vld [vmem:[#allocation2 + $0x47] sm:$0xff]  ;;  %v1549_v16 = vadd.f32 %v1517_v45, %v1288_v36  ;;  %v14710_v8 = vld [vmem:[#allocation2 + $0x1af] sm:$0xff] }
 0x2d6   : > { %v1737_v34 = vpop.permute.xlu0 %1736  ;;  %12180 = vmatprep.subr.bf16.mxu0 %v12179_v32  ;;  %v1779_v54 = vmul.f32 %v14441_v44, %v1742_v58  ;;  %v14666_v58 = vld [vmem:[#allocation2 + $0x107] sm:$0xff] }
 0x2d7   : > { %v1778_v40 = vmul.f32 %v14441_v44, %v1737_v34  ;;  %v14670_v34 = vld [vmem:[#allocation2 + $0x10f] sm:$0xff]  ;;  %v14698_v45 = vld [vmem:[#allocation2 + $0x187] sm:$0xff] }
 0x2d8   : > { %11219 = vmatmul.mubr.msk.f32.gmra.mrb[2].mxu0 %vm169_vm0, %v14599_v42  ;;  %v1811_v47 = vadd.f32 %v1779_v54, %v1550_v3  ;;  %v14714_v36 = vld [vmem:[#allocation2 + $0x1c7] sm:$0xff]  ;;  %v14718_v54 = vld [vmem:[#allocation2 + $0x1cf] sm:$0xff] }
 0x2d9   : > { %11221 = vmatprep.mubr.msk.f32.mxu0 %vm169_vm0, %v14603_v39  ;;  %12182 = vmatpush3.bf16.msra.mxu0 %v12179_v32  ;;  %v2004_v49 = vpop.permute.xlu1 %2003  ;;  %v1810_v44 = vadd.f32 %v1778_v40, %v1549_v16  ;;  %v14722_v40 = vld [vmem:[#allocation2 + $0x1e7] sm:$0xff]  ;;  %v14726_v16 = vld [vmem:[#allocation2 + $0x1ef] sm:$0xff] }
 0x2da   : > { %v1999_v59 = vpop.permute.xlu0 %1998  ;;  %12184 = vmatprep.subr.bf16.mxu0 %v14595_v21  ;;  %v2041_v30 = vmul.f32 %v14451_v41, %v2004_v49  ;;  %v14702_v49 = vld [vmem:[#allocation2 + $0x18f] sm:$0xff]  ;;  %16536 = vst [vmem:[#allocation6_spill] sm:$0xff] %v14726_v16 }
 0x2db   : > { %v2040_v20 = vmul.f32 %v14451_v41, %v1999_v59  ;;  %v14706_v59 = vld [vmem:[#allocation2 + $0x1a7] sm:$0xff] }
 0x2dc   : > { %11222 = vmatmul.mubr.msk.f32.gmra.mrb[4].mxu0 %vm169_vm0, %v14612_v5  ;;  %v2073_v13 = vadd.f32 %v2041_v30, %v1811_v47  ;;  %v3414_v3 = vld [vmem:[#allocation2 + $0x9] sm:$0xff]  ;;  %v9988_v47 = vld [vmem:[%s16419_s1 + $0x1a0] sm:$0xff] }
 0x2dd   : > { %11224 = vmatprep.mubr.msk.f32.mxu0 %vm169_vm0, %v14616_v52  ;;  %v2265_v29 = vpop.permute.xlu1 %2264  ;;  %v2072_v41 = vadd.f32 %v2040_v20, %v1810_v44  ;;  %v9954_v30 = vld [vmem:[%s16419_s1 + $0x190] sm:$0xff]  ;;  %v9955_v20 = vld [vmem:[%s16419_s1 + $0x198] sm:$0xff]  ;;  %v9989_v44 = vld [vmem:[%s16419_s1 + $0x1a8] sm:$0xff] }
 0x2de   : > { %v2260_v56 = vpop.permute.xlu0 %2259  ;;  %v2302_v33 = vmul.f32 %v14489_v6, %v2265_v29  ;;  %v3415_v29 = vld [vmem:[#allocation2 + $0x11] sm:$0xff] }
 0x2df   : > { %v2301_v63 = vmul.f32 %v14489_v6, %v2260_v56  ;;  %v12187_v56 = vpack.c.bf16 %v9955_v20, %v9954_v30  ;;  %v14816_v30 = vld [vmem:[#allocation2 + $0x131] sm:$0xff]  ;;  %v14820_v20 = vld [vmem:[#allocation2 + $0x149] sm:$0xff] }
 0x2e0   : > { %11225 = vmatmul.mubr.msk.f32.gmra.mrb[6].mxu0 %vm169_vm0, %v14624_v1  ;;  %v2334_v11 = vadd.f32 %v2302_v33, %v2073_v13  ;;  %v14744_v33 = vld [vmem:[#allocation2 + $0x29] sm:$0xff]  ;;  %v14751_v13 = vld [vmem:[#allocation2 + $0x31] sm:$0xff]  ;;  %16537 = vst [vmem:[#allocation7_spill] sm:$0xff] %v14816_v30  ;;  %16538 = vst [vmem:[#allocation8_spill] sm:$0xff] %v14820_v20 }
 0x2e1   : > { %11227 = vmatprep.mubr.msk.f32.mxu0 %vm169_vm0, %v14628_v38  ;;  %v2526_v22 = vpop.permute.xlu1 %2525  ;;  %v2333_v48 = vadd.f32 %v2301_v63, %v2072_v41  ;;  %v14749_v63 = vpack.c.bf16 %v9989_v44, %v9988_v47  ;;  %v14755_v41 = vld [vmem:[#allocation2 + $0x49] sm:$0xff]  ;;  %v14832_v47 = vld [vmem:[#allocation2 + $0x171] sm:$0xff] }
 0x2e2   : > { %v2521_v61 = vpop.permute.xlu0 %2520  ;;  %v2563_v19 = vmul.f32 %v14519_v37, %v2526_v22  ;;  %v14764_v22 = vld [vmem:[#allocation2 + $0x69] sm:$0xff]  ;;  %16541 = vst [vmem:[#allocation11_spill] sm:$0xff] %v14832_v47 }
 0x2e3   : > { %v2562_v6 = vmul.f32 %v14519_v37, %v2521_v61  ;;  %v14648_v37 = vld [vmem:[#allocation2 + $0xc7] sm:$0xff]  ;;  %v14768_v61 = vld [vmem:[#allocation2 + $0x71] sm:$0xff] }
 0x2e4   : > { %11228 = vmatmul.mubr.msk.f32.gmra.mrb[8].mxu0 %vm169_vm0, %v14634_v53  ;;  %v2595_v57 = vadd.f32 %v2563_v19, %v2334_v11  ;;  %v14772_v11 = vld [vmem:[#allocation2 + $0x89] sm:$0xff] }
 0x2e5   : > { %v2594_v32 = vadd.f32 %v2562_v6, %v2333_v48  ;;  %11230 = vmatprep.mubr.msk.f32.mxu0 %vm169_vm0, %v14638_v12  ;;  %v14776_v48 = vld [vmem:[#allocation2 + $0x91] sm:$0xff]  ;;  %v14780_v19 = vld [vmem:[#allocation2 + $0xa9] sm:$0xff] }
 0x2e6   : > { %v2634_v31 = vadd.f32 %v14535_v9, %v2595_v57  ;;  %v14784_v6 = vld [vmem:[#allocation2 + $0xb1] sm:$0xff]  ;;  %v14788_v57 = vld [vmem:[#allocation2 + $0xc9] sm:$0xff] }
 0x2e7   : > { %v2633_v24 = vadd.f32 %v14535_v9, %v2594_v32  ;;  %v14658_v9 = vld [vmem:[#allocation2 + $0xe7] sm:$0xff]  ;;  %v14792_v32 = vld [vmem:[#allocation2 + $0xd1] sm:$0xff] }
 0x2e8   : > { %11231 = vmatmul.mubr.msk.f32.gmra.mrb[10].mxu0 %vm169_vm0, %v14644_v0  ;;  %v2666_v7 = vmax.f32 %v2634_v31, 0.0  ;;  %v14796_v31 = vld [vmem:[#allocation2 + $0xe9] sm:$0xff] }
 0x2e9   : > { %v2665_v10 = vmax.f32 %v2633_v24, 0.0  ;;  %11233 = vmatprep.mubr.msk.f32.mxu0 %vm169_vm0, %v14648_v37  ;;  %v14800_v24 = vld [vmem:[#allocation2 + $0xf1] sm:$0xff]  ;;  %v14836_v44 = vld [vmem:[#allocation2 + $0x189] sm:$0xff] }
 0x2ea   : > { %2698 = vst.msk [vmem:[#allocation2 + $0x210] sm:$0xff] %vm169_vm0, %v2666_v7  ;;  %v14804_v7 = vld [vmem:[#allocation2 + $0x109] sm:$0xff]  ;;  %16542 = vst [vmem:[#allocation12_spill] sm:$0xff] %v14836_v44 }
 0x2eb   : > { %2697 = vst.msk [vmem:[#allocation2 + $0x208] sm:$0xff] %vm169_vm0, %v2665_v10  ;;  %v14808_v10 = vld [vmem:[#allocation2 + $0x111] sm:$0xff] }
 0x2ec   : > { %11234 = vmatmul.mubr.msk.f32.gmra.mrb[12].mxu0 %vm169_vm0, %v14654_v28 }
 0x2ed   : > { %11236 = vmatprep.mubr.msk.f32.mxu0 %vm169_vm0, %v14658_v9 }
 0x2f0   : > { %11237 = vmatmul.mubr.msk.f32.gmra.mrb[14].mxu0 %vm169_vm0, %v14662_v26 }
 0x2f1   : > { %11239 = vmatprep.mubr.msk.f32.mxu0 %vm169_vm0, %v14666_v58 }
 0x2f4   : > { %11240 = vmatmul.mubr.msk.f32.gmra.mrb[16].mxu0 %vm169_vm0, %v14670_v34 }
 0x2f5   : > { %11242 = vmatprep.mubr.msk.f32.mxu0 %vm169_vm0, %v14674_v46 }
 0x2f8   : > { %11243 = vmatmul.mubr.msk.f32.gmra.mrb[18].mxu0 %vm169_vm0, %v14678_v27 }
 0x2f9   : > { %11245 = vmatprep.mubr.msk.f32.mxu0 %vm169_vm0, %v14682_v55 }
 0x2fc   : > { %11246 = vmatmul.mubr.msk.f32.gmra.mrb[20].mxu0 %vm169_vm0, %v14686_v51 }
 0x2fd   : > { %11248 = vmatprep.mubr.msk.f32.mxu0 %vm169_vm0, %v14690_v17 }
 0x300   : > { %11249 = vmatmul.mubr.msk.f32.gmra.mrb[22].mxu0 %vm169_vm0, %v14694_v43 }
 0x301   : > { %11251 = vmatprep.mubr.msk.f32.mxu0 %vm169_vm0, %v14698_v45 }
 0x304   : > { %11252 = vmatmul.mubr.msk.f32.gmra.mrb[24].mxu0 %vm169_vm0, %v14702_v49 }
 0x305   : > { %11254 = vmatprep.mubr.msk.f32.mxu0 %vm169_vm0, %v14706_v59 }
 0x308   : > { %11255 = vmatmul.mubr.msk.f32.gmra.mrb[26].mxu0 %vm169_vm0, %v14710_v8 }
 0x309   : > { %11257 = vmatprep.mubr.msk.f32.mxu0 %vm169_vm0, %v14714_v36 }
 0x30c   : > { %11258 = vmatmul.mubr.msk.f32.gmra.mrb[28].mxu0 %vm169_vm0, %v14718_v54 }
 0x30d   : > { %11260 = vmatprep.mubr.msk.f32.mxu0 %vm169_vm0, %v14722_v40 }
 0x310   : > { %11261 = vmatmul.mubr.msk.f32.gmra.mrb[30].mxu0 %vm169_vm0, %v14726_v16 }
 0x311   : > { %11271 = vmatprep.mubr.msk.f32.mxu0 %vm169_vm0, %v3414_v3  ;;  %v14812_v3 = vld [vmem:[#allocation2 + $0x129] sm:$0xff] }
 0x314   : > { %11272 = vmatmul.mubr.msk.f32.vlgmr.msra.gmra.mrb[0].mxu0 %vm169_vm0, %v3415_v29  ;;  %v14824_v29 = vld [vmem:[#allocation2 + $0x151] sm:$0xff] }
 0x315   : > { %12186 = vmatpush3.bf16.msra.mxu0 %v14595_v21  ;;  %11274 = vmatprep.mubr.msk.f32.mxu0 %vm169_vm0, %v14744_v33  ;;  %v14760_v21 = vld [vmem:[#allocation2 + $0x51] sm:$0xff]  ;;  %16539 = vst [vmem:[#allocation9_spill] sm:$0xff] %v14824_v29 }
 0x316   : > { %12188 = vmatprep.subr.bf16.mxu0 %v12187_v56 }
 0x318   : > { %11275 = vmatmul.mubr.msk.f32.gmra.mrb[2].mxu0 %vm169_vm0, %v14751_v13 }
 0x319   : > { %11277 = vmatprep.mubr.msk.f32.mxu0 %vm169_vm0, %v14755_v41  ;;  %12190 = vmatpush3.bf16.msra.mxu0 %v12187_v56  ;;  %v14828_v56 = vld [vmem:[#allocation2 + $0x169] sm:$0xff] }
 0x31a   : > { %12192 = vmatprep.subr.bf16.mxu0 %v14749_v63  ;;  %16540 = vst [vmem:[#allocation10_spill] sm:$0xff] %v14828_v56 }
 0x31c   : > { %11278 = vmatmul.mubr.msk.f32.gmra.mrb[4].mxu0 %vm169_vm0, %v14760_v21 }
 0x31d   : > { %11280 = vmatprep.mubr.msk.f32.mxu0 %vm169_vm0, %v14764_v22 }
 0x320   : > { %11281 = vmatmul.mubr.msk.f32.gmra.mrb[6].mxu0 %vm169_vm0, %v14768_v61 }
 0x321   : > { %11283 = vmatprep.mubr.msk.f32.mxu0 %vm169_vm0, %v14772_v11 }
 0x324   : > { %11284 = vmatmul.mubr.msk.f32.gmra.mrb[8].mxu0 %vm169_vm0, %v14776_v48 }
 0x325   : > { %11286 = vmatprep.mubr.msk.f32.mxu0 %vm169_vm0, %v14780_v19 }
 0x328   : > { %11287 = vmatmul.mubr.msk.f32.gmra.mrb[10].mxu0 %vm169_vm0, %v14784_v6 }
 0x329   : > { %11289 = vmatprep.mubr.msk.f32.mxu0 %vm169_vm0, %v14788_v57 }
 0x32c   : > { %11290 = vmatmul.mubr.msk.f32.gmra.mrb[12].mxu0 %vm169_vm0, %v14792_v32 }
 0x32d   : > { %11292 = vmatprep.mubr.msk.f32.mxu0 %vm169_vm0, %v14796_v31 }
 0x330   : > { %11293 = vmatmul.mubr.msk.f32.gmra.mrb[14].mxu0 %vm169_vm0, %v14800_v24 }
 0x331   : > { %11295 = vmatprep.mubr.msk.f32.mxu0 %vm169_vm0, %v14804_v7 }
 0x334   : > { %11296 = vmatmul.mubr.msk.f32.gmra.mrb[16].mxu0 %vm169_vm0, %v14808_v10 }
 0x335   : > { %11298 = vmatprep.mubr.msk.f32.mxu0 %vm169_vm0, %v14812_v3 }
 0x338   : > { %11299 = vmatmul.mubr.msk.f32.gmra.mrb[18].mxu0 %vm169_vm0, %v14816_v30  ;;  %v10025_v30 = vld [vmem:[%s16419_s1 + $0x1c8] sm:$0xff] }
 0x339   : > { %11301 = vmatprep.mubr.msk.f32.mxu0 %vm169_vm0, %v14820_v20  ;;  %v14840_v20 = vld [vmem:[#allocation2 + $0x191] sm:$0xff] }
 0x33a   : > { %16543 = vst [vmem:[#allocation13_spill] sm:$0xff] %v14840_v20 }
 0x33c   : > { %11302 = vmatmul.mubr.msk.f32.gmra.mrb[20].mxu0 %vm169_vm0, %v14824_v29  ;;  %v14844_v29 = vld [vmem:[#allocation2 + $0x1a9] sm:$0xff] }
 0x33d   : > { %11304 = vmatprep.mubr.msk.f32.mxu0 %vm169_vm0, %v14828_v56  ;;  %16544 = vst [vmem:[#allocation14_spill] sm:$0xff] %v14844_v29  ;;  %v14848_v56 = vld [vmem:[#allocation2 + $0x1b1] sm:$0xff] }
 0x33e   : > { %16545 = vst [vmem:[#allocation15_spill] sm:$0xff] %v14848_v56 }
 0x340   : > { %11305 = vmatmul.mubr.msk.f32.gmra.mrb[22].mxu0 %vm169_vm0, %v14832_v47  ;;  %v14852_v47 = vld [vmem:[#allocation2 + $0x1c9] sm:$0xff] }
 0x341   : > { %11307 = vmatprep.mubr.msk.f32.mxu0 %vm169_vm0, %v14836_v44  ;;  %16546 = vst [vmem:[#allocation16_spill] sm:$0xff] %v14852_v47  ;;  %v14856_v44 = vld [vmem:[#allocation2 + $0x1d1] sm:$0xff] }
 0x342   : > { %16547 = vst [vmem:[#allocation17_spill] sm:$0xff] %v14856_v44 }
 0x344   : > { %11308 = vmatmul.mubr.msk.f32.gmra.mrb[24].mxu0 %vm169_vm0, %v14840_v20  ;;  %v14860_v20 = vld [vmem:[#allocation2 + $0x1e9] sm:$0xff] }
 0x345   : > { %11310 = vmatprep.mubr.msk.f32.mxu0 %vm169_vm0, %v14844_v29  ;;  %16548 = vst [vmem:[#allocation18_spill] sm:$0xff] %v14860_v20  ;;  %v14864_v29 = vld [vmem:[#allocation2 + $0x1f1] sm:$0xff] }
 0x346   : > { %16549 = vst [vmem:[#allocation19_spill] sm:$0xff] %v14864_v29 }
 0x348   : > { %11311 = vmatmul.mubr.msk.f32.gmra.mrb[26].mxu0 %vm169_vm0, %v14848_v56  ;;  %v9990_v56 = vld [vmem:[%s16419_s1 + $0x1b0] sm:$0xff] }
 0x349   : > { %11313 = vmatprep.mubr.msk.f32.mxu0 %vm169_vm0, %v14852_v47  ;;  %v9991_v47 = vld [vmem:[%s16419_s1 + $0x1b8] sm:$0xff] }
 0x34c   : > { %11314 = vmatmul.mubr.msk.f32.gmra.mrb[28].mxu0 %vm169_vm0, %v14856_v44  ;;  %v12195_v44 = vpack.c.bf16 %v9991_v47, %v9990_v56  ;;  %v4193_v47 = vld [vmem:[#allocation2 + $0x30] sm:$0xff] }
 0x34d   : > { %11316 = vmatprep.mubr.msk.f32.mxu0 %vm169_vm0, %v14860_v20  ;;  %v10024_v20 = vld [vmem:[%s16419_s1 + $0x1c0] sm:$0xff] }
 0x350   : > { %11317 = vmatmul.mubr.msk.f32.gmra.mrb[30].mxu0 %vm169_vm0, %v14864_v29  ;;  %v12199_v29 = vpack.c.bf16 %v10025_v30, %v10024_v20  ;;  %v10027_v30 = vld [vmem:[%s16419_s1 + $0x1d8] sm:$0xff]  ;;  %v4192_v20 = vld [vmem:[#allocation2 + $0x28] sm:$0xff] }
 0x351   : > { %11327 = vmatprep.mubr.msk.f32.mxu0 %vm169_vm0, %v14589_v15  ;;  %v14941_v15 = vld [vmem:[#allocation2 + $0x207] sm:$0xff] }
 0x352   : > { %16550 = vst [vmem:[#allocation20_spill] sm:$0xff] %v14941_v15 }
 0x354   : > { %11328 = vmatmul.mubr.msk.f32.vlgmr.msra.gmra.mrb[0].mxu0 %vm169_vm0, %v14599_v42  ;;  %v14945_v42 = vld [vmem:[#allocation2 + $0x20f] sm:$0xff] }
 0x355   : > { %12194 = vmatpush3.bf16.msra.mxu0 %v14749_v63  ;;  %11330 = vmatprep.mubr.msk.f32.mxu0 %vm169_vm0, %v14603_v39  ;;  %v10026_v63 = vld [vmem:[%s16419_s1 + $0x1d0] sm:$0xff] }
 0x356   : > { %12196 = vmatprep.subr.bf16.mxu0 %v12195_v44  ;;  %v12203_v56 = vpack.c.bf16 %v10027_v30, %v10026_v63  ;;  %v14967_v63 = vld [vmem:[#allocation2 + $0x50] sm:$0xff]  ;;  %v14971_v30 = vld [vmem:[#allocation2 + $0x68] sm:$0xff] }
 0x358   : > { %11331 = vmatmul.mubr.msk.f32.gmra.mrb[2].mxu0 %vm169_vm0, %v14612_v5 }
 0x359   : > { %11333 = vmatprep.mubr.msk.f32.mxu0 %vm169_vm0, %v14616_v52  ;;  %12198 = vmatpush3.bf16.msra.mxu0 %v12195_v44  ;;  %v10060_v44 = vld [vmem:[%s16419_s1 + $0x1e0] sm:$0xff] }
 0x35a   : > { %12200 = vmatprep.subr.bf16.mxu0 %v12199_v29 }
 0x35c   : > { %11334 = vmatmul.mubr.msk.f32.gmra.mrb[4].mxu0 %vm169_vm0, %v14624_v1 }
 0x35d   : > { %11336 = vmatprep.mubr.msk.f32.mxu0 %vm169_vm0, %v14628_v38 }
 0x360   : > { %11337 = vmatmul.mubr.msk.f32.gmra.mrb[6].mxu0 %vm169_vm0, %v14634_v53 }
 0x361   : > { %11339 = vmatprep.mubr.msk.f32.mxu0 %vm169_vm0, %v14638_v12 }
 0x364   : > { %11340 = vmatmul.mubr.msk.f32.gmra.mrb[8].mxu0 %vm169_vm0, %v14644_v0 }
 0x365   : > { %11342 = vmatprep.mubr.msk.f32.mxu0 %vm169_vm0, %v14648_v37 }
 0x368   : > { %11343 = vmatmul.mubr.msk.f32.gmra.mrb[10].mxu0 %vm169_vm0, %v14654_v28 }
 0x369   : > { %11345 = vmatprep.mubr.msk.f32.mxu0 %vm169_vm0, %v14658_v9 }
 0x36c   : > { %11346 = vmatmul.mubr.msk.f32.gmra.mrb[12].mxu0 %vm169_vm0, %v14662_v26 }
 0x36d   : > { %11348 = vmatprep.mubr.msk.f32.mxu0 %vm169_vm0, %v14666_v58 }
 0x370   : > { %11349 = vmatmul.mubr.msk.f32.gmra.mrb[14].mxu0 %vm169_vm0, %v14670_v34 }
 0x371   : > { %11351 = vmatprep.mubr.msk.f32.mxu0 %vm169_vm0, %v14674_v46 }
 0x374   : > { %11352 = vmatmul.mubr.msk.f32.gmra.mrb[16].mxu0 %vm169_vm0, %v14678_v27 }
 0x375   : > { %11354 = vmatprep.mubr.msk.f32.mxu0 %vm169_vm0, %v14682_v55 }
 0x378   : > { %11355 = vmatmul.mubr.msk.f32.gmra.mrb[18].mxu0 %vm169_vm0, %v14686_v51 }
 0x379   : > { %11357 = vmatprep.mubr.msk.f32.mxu0 %vm169_vm0, %v14690_v17 }
 0x37c   : > { %11358 = vmatmul.mubr.msk.f32.gmra.mrb[20].mxu0 %vm169_vm0, %v14694_v43 }
 0x37d   : > { %11360 = vmatprep.mubr.msk.f32.mxu0 %vm169_vm0, %v14698_v45 }
 0x380   : > { %11361 = vmatmul.mubr.msk.f32.gmra.mrb[22].mxu0 %vm169_vm0, %v14702_v49 }
 0x381   : > { %11363 = vmatprep.mubr.msk.f32.mxu0 %vm169_vm0, %v14706_v59 }
 0x384   : > { %11364 = vmatmul.mubr.msk.f32.gmra.mrb[24].mxu0 %vm169_vm0, %v14710_v8 }
 0x385   : > { %11366 = vmatprep.mubr.msk.f32.mxu0 %vm169_vm0, %v14714_v36 }
 0x388   : > { %11367 = vmatmul.mubr.msk.f32.gmra.mrb[26].mxu0 %vm169_vm0, %v14718_v54 }
 0x389   : > { %11369 = vmatprep.mubr.msk.f32.mxu0 %vm169_vm0, %v14722_v40 }
 0x38c   : > { %11370 = vmatmul.mubr.msk.f32.gmra.mrb[28].mxu0 %vm169_vm0, %v14726_v16  ;;  %v14963_v16 = vld [vmem:[#allocation2 + $0x48] sm:$0xff] }
 0x38d   : > { %11372 = vmatprep.mubr.msk.f32.mxu0 %vm169_vm0, %v14941_v15  ;;  %v10061_v15 = vld [vmem:[%s16419_s1 + $0x1e8] sm:$0xff] }
 0x390   : > { %11373 = vmatmul.mubr.msk.f32.gmra.mrb[30].mxu0 %vm169_vm0, %v14945_v42 }
 0x391   : > { %11383 = vmatprep.mubr.msk.f32.mxu0 %vm169_vm0, %v4192_v20  ;;  %v12207_v20 = vpack.c.bf16 %v10061_v15, %v10060_v44  ;;  %v14983_v15 = vld [vmem:[#allocation2 + $0x90] sm:$0xff]  ;;  %v14987_v44 = vld [vmem:[#allocation2 + $0xa8] sm:$0xff] }
 0x392   : > { %16553 = vst [vmem:[#allocation23_spill] sm:$0xff] %v14983_v15  ;;  %16554 = vst [vmem:[#allocation24_spill] sm:$0xff] %v14987_v44 }
 0x394   : > { %11384 = vmatmul.mubr.msk.f32.vlgmr.msra.gmra.mrb[0].mxu0 %vm169_vm0, %v4193_v47  ;;  %v14975_v47 = vld [vmem:[#allocation2 + $0x70] sm:$0xff] }
 0x395   : > { %12202 = vmatpush3.bf16.msra.mxu0 %v12199_v29  ;;  %11386 = vmatprep.mubr.msk.f32.mxu0 %vm169_vm0, %v14963_v16  ;;  %16551 = vst [vmem:[#allocation21_spill] sm:$0xff] %v14975_v47  ;;  %v14979_v29 = vld [vmem:[#allocation2 + $0x88] sm:$0xff] }
 0x396   : > { %12204 = vmatprep.subr.bf16.mxu0 %v12203_v56  ;;  %16552 = vst [vmem:[#allocation22_spill] sm:$0xff] %v14979_v29 }
 0x398   : > { %11387 = vmatmul.mubr.msk.f32.gmra.mrb[2].mxu0 %vm169_vm0, %v14967_v63 }
 0x399   : > { %11389 = vmatprep.mubr.msk.f32.mxu0 %vm169_vm0, %v14971_v30  ;;  %12206 = vmatpush3.bf16.msra.mxu0 %v12203_v56  ;;  %v14991_v56 = vld [vmem:[#allocation2 + $0xb0] sm:$0xff] }
 0x39a   : > { %12208 = vmatprep.subr.bf16.mxu0 %v12207_v20  ;;  %16555 = vst [vmem:[#allocation25_spill] sm:$0xff] %v14991_v56 }
 0x39c   : > { %11390 = vmatmul.mubr.msk.f32.gmra.mrb[4].mxu0 %vm169_vm0, %v14975_v47  ;;  %v14995_v47 = vld [vmem:[#allocation2 + $0xc8] sm:$0xff] }
 0x39d   : > { %11392 = vmatprep.mubr.msk.f32.mxu0 %vm169_vm0, %v14979_v29  ;;  %16556 = vst [vmem:[#allocation26_spill] sm:$0xff] %v14995_v47  ;;  %v14999_v29 = vld [vmem:[#allocation2 + $0xd0] sm:$0xff] }
 0x39e   : > { %16557 = vst [vmem:[#allocation27_spill] sm:$0xff] %v14999_v29 }
 0x3a0   : > { %11393 = vmatmul.mubr.msk.f32.gmra.mrb[6].mxu0 %vm169_vm0, %v14983_v15  ;;  %v15003_v15 = vld [vmem:[#allocation2 + $0xe8] sm:$0xff] }
 0x3a1   : > { %11395 = vmatprep.mubr.msk.f32.mxu0 %vm169_vm0, %v14987_v44  ;;  %16558 = vst [vmem:[#allocation28_spill] sm:$0xff] %v15003_v15  ;;  %v15007_v44 = vld [vmem:[#allocation2 + $0xf0] sm:$0xff] }
 0x3a2   : > { %16559 = vst [vmem:[#allocation29_spill] sm:$0xff] %v15007_v44 }
 0x3a4   : > { %11396 = vmatmul.mubr.msk.f32.gmra.mrb[8].mxu0 %vm169_vm0, %v14991_v56  ;;  %v15011_v56 = vld [vmem:[#allocation2 + $0x108] sm:$0xff] }
 0x3a5   : > { %11398 = vmatprep.mubr.msk.f32.mxu0 %vm169_vm0, %v14995_v47  ;;  %16560 = vst [vmem:[#allocation30_spill] sm:$0xff] %v15011_v56  ;;  %v15015_v47 = vld [vmem:[#allocation2 + $0x110] sm:$0xff] }
 0x3a8   : > { %11399 = vmatmul.mubr.msk.f32.gmra.mrb[10].mxu0 %vm169_vm0, %v14999_v29  ;;  %v15019_v29 = vld [vmem:[#allocation2 + $0x128] sm:$0xff] }
 0x3a9   : > { %11401 = vmatprep.mubr.msk.f32.mxu0 %vm169_vm0, %v15003_v15  ;;  %v15023_v15 = vld [vmem:[#allocation2 + $0x130] sm:$0xff] }
 0x3ac   : > { %11402 = vmatmul.mubr.msk.f32.gmra.mrb[12].mxu0 %vm169_vm0, %v15007_v44  ;;  %v15027_v44 = vld [vmem:[#allocation2 + $0x148] sm:$0xff] }
 0x3ad   : > { %11404 = vmatprep.mubr.msk.f32.mxu0 %vm169_vm0, %v15011_v56  ;;  %v15031_v56 = vld [vmem:[#allocation2 + $0x150] sm:$0xff] }
 0x3b0   : > { %11405 = vmatmul.mubr.msk.f32.gmra.mrb[14].mxu0 %vm169_vm0, %v15015_v47 }
 0x3b1   : > { %11407 = vmatprep.mubr.msk.f32.mxu0 %vm169_vm0, %v15019_v29 }
 0x3b4   : > { %11408 = vmatmul.mubr.msk.f32.gmra.mrb[16].mxu0 %vm169_vm0, %v15023_v15 }
 0x3b5   : > { %11410 = vmatprep.mubr.msk.f32.mxu0 %vm169_vm0, %v15027_v44 }
 0x3b8   : > { %11411 = vmatmul.mubr.msk.f32.gmra.mrb[18].mxu0 %vm169_vm0, %v15031_v56 }
 0x3b9   : > { %11413 = vmatprep.mubr.msk.f32.mxu0 %vm169_vm0, %v14375_v2  ;;  %v15055_v2 = vld [vmem:[#allocation2 + $0x208] sm:$0xff] }
 0x3bc   : > { %11414 = vmatmul.mubr.msk.f32.gmra.mrb[20].mxu0 %vm169_vm0, %v14386_v60  ;;  %v15059_v60 = vld [vmem:[#allocation2 + $0x210] sm:$0xff] }
 0x3bd   : > { %11416 = vmatprep.mubr.msk.f32.mxu0 %vm169_vm0, %v14417_v50  ;;  %v10062_v50 = vld [vmem:[%s16419_s1 + $0x1f0] sm:$0xff] }
 0x3c0   : > { %11417 = vmatmul.mubr.msk.f32.gmra.mrb[22].mxu0 %vm169_vm0, %v14436_v35  ;;  %v10063_v35 = vld [vmem:[%s16419_s1 + $0x1f8] sm:$0xff] }
 0x3c1   : > { %11419 = vmatprep.mubr.msk.f32.mxu0 %vm169_vm0, %v14513_v14  ;;  %v12211_v14 = vpack.c.bf16 %v10063_v35, %v10062_v50  ;;  %v16566_v50 = vld [vmem:[#allocation12_spill] sm:$0xff]  ;;  %v16567_v35 = vld [vmem:[#allocation13_spill] sm:$0xff] }
 0x3c4   : > { %11420 = vmatmul.mubr.msk.f32.gmra.mrb[24].mxu0 %vm169_vm0, %v14529_v18  ;;  %v10096_v18 = vld [vmem:[%s16419_s1 + $0x200] sm:$0xff] }
 0x3c5   : > { %11422 = vmatprep.mubr.msk.f32.mxu0 %vm169_vm0, %v14550_v62  ;;  %v10097_v62 = vld [vmem:[%s16419_s1 + $0x208] sm:$0xff] }
 0x3c8   : > { %11423 = vmatmul.mubr.msk.f32.gmra.mrb[26].mxu0 %vm169_vm0, %v14556_v4  ;;  %v12215_v4 = vpack.c.bf16 %v10097_v62, %v10096_v18  ;;  %v16569_v18 = vld [vmem:[#allocation15_spill] sm:$0xff]  ;;  %v16570_v62 = vld [vmem:[#allocation16_spill] sm:$0xff] }
 0x3c9   : > { %11425 = vmatprep.mubr.msk.f32.mxu0 %vm169_vm0, %v14562_v23  ;;  %v16561_v23 = vld [vmem:[#allocation7_spill] sm:$0xff] }
 0x3cc   : > { %11426 = vmatmul.mubr.msk.f32.gmra.mrb[28].mxu0 %vm169_vm0, %v14564_v25  ;;  %v16562_v25 = vld [vmem:[#allocation8_spill] sm:$0xff] }
 0x3cd   : > { %11428 = vmatprep.mubr.msk.f32.mxu0 %vm169_vm0, %v15055_v2 }
 0x3d0   : > { %11429 = vmatmul.mubr.msk.f32.gmra.mrb[30].mxu0 %vm169_vm0, %v15059_v60 }
 0x3d1   : > { %11439 = vmatprep.mubr.msk.f32.mxu0 %vm169_vm0, %v14744_v33  ;;  %v16563_v33 = vld [vmem:[#allocation9_spill] sm:$0xff] }
 0x3d4   : > { %11440 = vmatmul.mubr.msk.f32.vlgmr.msra.gmra.mrb[0].mxu0 %vm169_vm0, %v14751_v13  ;;  %v16564_v13 = vld [vmem:[#allocation10_spill] sm:$0xff] }
 0x3d5   : > { %12210 = vmatpush3.bf16.msra.mxu0 %v12207_v20  ;;  %11442 = vmatprep.mubr.msk.f32.mxu0 %vm169_vm0, %v14755_v41  ;;  %v16565_v20 = vld [vmem:[#allocation11_spill] sm:$0xff] }
 0x3d6   : > { %12212 = vmatprep.subr.bf16.mxu0 %v12211_v14 }
 0x3d8   : > { %11443 = vmatmul.mubr.msk.f32.gmra.mrb[2].mxu0 %vm169_vm0, %v14760_v21 }
 0x3d9   : > { %11445 = vmatprep.mubr.msk.f32.mxu0 %vm169_vm0, %v14764_v22  ;;  %12214 = vmatpush3.bf16.msra.mxu0 %v12211_v14  ;;  %v16568_v14 = vld [vmem:[#allocation14_spill] sm:$0xff] }
 0x3da   : > { %12216 = vmatprep.subr.bf16.mxu0 %v12215_v4 }
 0x3dc   : > { %11446 = vmatmul.mubr.msk.f32.gmra.mrb[4].mxu0 %vm169_vm0, %v14768_v61 }
 0x3dd   : > { %11448 = vmatprep.mubr.msk.f32.mxu0 %vm169_vm0, %v14772_v11 }
 0x3e0   : > { %11449 = vmatmul.mubr.msk.f32.gmra.mrb[6].mxu0 %vm169_vm0, %v14776_v48 }
 0x3e1   : > { %11451 = vmatprep.mubr.msk.f32.mxu0 %vm169_vm0, %v14780_v19 }
 0x3e4   : > { %11452 = vmatmul.mubr.msk.f32.gmra.mrb[8].mxu0 %vm169_vm0, %v14784_v6 }
 0x3e5   : > { %11454 = vmatprep.mubr.msk.f32.mxu0 %vm169_vm0, %v14788_v57 }
 0x3e8   : > { %11455 = vmatmul.mubr.msk.f32.gmra.mrb[10].mxu0 %vm169_vm0, %v14792_v32 }
 0x3e9   : > { %11457 = vmatprep.mubr.msk.f32.mxu0 %vm169_vm0, %v14796_v31 }
 0x3ec   : > { %11458 = vmatmul.mubr.msk.f32.gmra.mrb[12].mxu0 %vm169_vm0, %v14800_v24 }
 0x3ed   : > { %11460 = vmatprep.mubr.msk.f32.mxu0 %vm169_vm0, %v14804_v7 }
 0x3f0   : > { %11461 = vmatmul.mubr.msk.f32.gmra.mrb[14].mxu0 %vm169_vm0, %v14808_v10 }
 0x3f1   : > { %11463 = vmatprep.mubr.msk.f32.mxu0 %vm169_vm0, %v14812_v3 }
 0x3f4   : > { %11464 = vmatmul.mubr.msk.f32.gmra.mrb[16].mxu0 %vm169_vm0, %v16561_v23 }
 0x3f5   : > { %11466 = vmatprep.mubr.msk.f32.mxu0 %vm169_vm0, %v16562_v25 }
 0x3f8   : > { %11467 = vmatmul.mubr.msk.f32.gmra.mrb[18].mxu0 %vm169_vm0, %v16563_v33  ;;  %v16571_v33 = vld [vmem:[#allocation17_spill] sm:$0xff] }
 0x3f9   : > { %11469 = vmatprep.mubr.msk.f32.mxu0 %vm169_vm0, %v16564_v13  ;;  %v16572_v13 = vld [vmem:[#allocation18_spill] sm:$0xff] }
 0x3fc   : > { %11470 = vmatmul.mubr.msk.f32.gmra.mrb[20].mxu0 %vm169_vm0, %v16565_v20  ;;  %v16573_v20 = vld [vmem:[#allocation19_spill] sm:$0xff] }
 0x3fd   : > { %11472 = vmatprep.mubr.msk.f32.mxu0 %vm169_vm0, %v16566_v50  ;;  %v15135_v50 = vld [vmem:[#allocation2 + $0x209] sm:$0xff] }
 0x3fe   : > { %16574 = vst [vmem:[#allocation7_spill] sm:$0xff] %v15135_v50 }
 0x400   : > { %11473 = vmatmul.mubr.msk.f32.gmra.mrb[22].mxu0 %vm169_vm0, %v16567_v35 }
 0x401   : > { %11475 = vmatprep.mubr.msk.f32.mxu0 %vm169_vm0, %v16568_v14  ;;  %v15139_v14 = vld [vmem:[#allocation2 + $0x211] sm:$0xff] }
 0x402   : > { %16575 = vst [vmem:[#allocation8_spill] sm:$0xff] %v15139_v14 }
 0x404   : > { %11476 = vmatmul.mubr.msk.f32.gmra.mrb[24].mxu0 %vm169_vm0, %v16569_v18 }
 0x405   : > { %11478 = vmatprep.mubr.msk.f32.mxu0 %vm169_vm0, %v16570_v62  ;;  %v10098_v62 = vld [vmem:[%s16419_s1 + $0x210] sm:$0xff] }
 0x408   : > { %11479 = vmatmul.mubr.msk.f32.gmra.mrb[26].mxu0 %vm169_vm0, %v16571_v33  ;;  %v10099_v33 = vld [vmem:[%s16419_s1 + $0x218] sm:$0xff] }
 0x409   : > { %11481 = vmatprep.mubr.msk.f32.mxu0 %vm169_vm0, %v16572_v13  ;;  %v10133_v13 = vld [vmem:[%s16419_s1 + $0x228] sm:$0xff] }
 0x40c   : > { %11482 = vmatmul.mubr.msk.f32.gmra.mrb[28].mxu0 %vm169_vm0, %v16573_v20  ;;  %v12219_v20 = vpack.c.bf16 %v10099_v33, %v10098_v62  ;;  %v10242_v33 = vld [vmem:[%s16419_s1 + $0x280] sm:$0xff] }
 0x40d   : > { %11484 = vmatprep.mubr.msk.f32.mxu0 %vm169_vm0, %v15135_v50  ;;  %v10132_v50 = vld [vmem:[%s16419_s1 + $0x220] sm:$0xff] }
 0x410   : > { %11485 = vmatmul.mubr.msk.f32.gmra.mrb[30].mxu0 %vm169_vm0, %v15139_v14  ;;  %v12223_v14 = vpack.c.bf16 %v10133_v13, %v10132_v50  ;;  %v10243_v13 = vld [vmem:[%s16419_s1 + $0x288] sm:$0xff]  ;;  %v15375_v50 = vld [vmem:[%s16420_s2 + $0x1] ss:$0 sm:$0xff] }
 0x411   : > { %11495 = vmatprep.mubr.msk.f32.mxu0 %vm169_vm0, %v14603_v39  ;;  %v16576_v39 = vld [vmem:[#allocation6_spill] sm:$0xff] }
 0x414   : > { %11496 = vmatmul.mubr.msk.f32.vlgmr.msra.gmra.mrb[0].mxu0 %vm169_vm0, %v14612_v5  ;;  %v16577_v5 = vld [vmem:[#allocation20_spill] sm:$0xff] }
 0x415   : > { %12218 = vmatpush3.bf16.msra.mxu0 %v12215_v4  ;;  %11498 = vmatprep.mubr.msk.f32.mxu0 %vm169_vm0, %v14616_v52  ;;  %v5000_v52 = vld [vmem:[#allocation2 + $0x227] sm:$0xff]  ;;  %v10172_v4 = vld [vmem:[%s16419_s1 + $0x250] sm:$0xff] }
 0x416   : > { %12220 = vmatprep.subr.bf16.mxu0 %v12219_v20 }
 0x418   : > { %11499 = vmatmul.mubr.msk.f32.gmra.mrb[2].mxu0 %vm169_vm0, %v14624_v1  ;;  %v5001_v1 = vld [vmem:[#allocation2 + $0x22f] sm:$0xff] }
 0x419   : > { %11501 = vmatprep.mubr.msk.f32.mxu0 %vm169_vm0, %v14628_v38  ;;  %12222 = vmatpush3.bf16.msra.mxu0 %v12219_v20  ;;  %v10134_v38 = vld [vmem:[%s16419_s1 + $0x230] sm:$0xff]  ;;  %v15369_v20 = vpack.c.bf16 %v10243_v13, %v10242_v33 }
 0x41a   : > { %12224 = vmatprep.subr.bf16.mxu0 %v12223_v14 }
 0x41c   : > { %11502 = vmatmul.mubr.msk.f32.gmra.mrb[4].mxu0 %vm169_vm0, %v14634_v53  ;;  %v10135_v53 = vld [vmem:[%s16419_s1 + $0x238] sm:$0xff] }
 0x41d   : > { %11504 = vmatprep.mubr.msk.f32.mxu0 %vm169_vm0, %v14638_v12  ;;  %v12227_v12 = vpack.c.bf16 %v10135_v53, %v10134_v38 }
 0x420   : > { %11505 = vmatmul.mubr.msk.f32.gmra.mrb[6].mxu0 %vm169_vm0, %v14644_v0  ;;  %v16578_v0 = vld [vmem:[#allocation21_spill] sm:$0xff] }
 0x421   : > { %11507 = vmatprep.mubr.msk.f32.mxu0 %vm169_vm0, %v14648_v37  ;;  %v16579_v37 = vld [vmem:[#allocation22_spill] sm:$0xff] }
 0x424   : > { %11508 = vmatmul.mubr.msk.f32.gmra.mrb[8].mxu0 %vm169_vm0, %v14654_v28  ;;  %v16580_v28 = vld [vmem:[#allocation23_spill] sm:$0xff] }
 0x425   : > { %11510 = vmatprep.mubr.msk.f32.mxu0 %vm169_vm0, %v14658_v9  ;;  %v16581_v9 = vld [vmem:[#allocation24_spill] sm:$0xff] }
 0x428   : > { %11511 = vmatmul.mubr.msk.f32.gmra.mrb[10].mxu0 %vm169_vm0, %v14662_v26  ;;  %v16582_v26 = vld [vmem:[#allocation25_spill] sm:$0xff] }
 0x429   : > { %11513 = vmatprep.mubr.msk.f32.mxu0 %vm169_vm0, %v14666_v58  ;;  %v16583_v58 = vld [vmem:[#allocation26_spill] sm:$0xff] }
 0x42c   : > { %11514 = vmatmul.mubr.msk.f32.gmra.mrb[12].mxu0 %vm169_vm0, %v14670_v34  ;;  %v16584_v34 = vld [vmem:[#allocation27_spill] sm:$0xff] }
 0x42d   : > { %11516 = vmatprep.mubr.msk.f32.mxu0 %vm169_vm0, %v14674_v46  ;;  %v16585_v46 = vld [vmem:[#allocation28_spill] sm:$0xff] }
 0x430   : > { %11517 = vmatmul.mubr.msk.f32.gmra.mrb[14].mxu0 %vm169_vm0, %v14678_v27  ;;  %v16586_v27 = vld [vmem:[#allocation29_spill] sm:$0xff] }
 0x431   : > { %11519 = vmatprep.mubr.msk.f32.mxu0 %vm169_vm0, %v14682_v55  ;;  %v16587_v55 = vld [vmem:[#allocation30_spill] sm:$0xff] }
 0x434   : > { %11520 = vmatmul.mubr.msk.f32.gmra.mrb[16].mxu0 %vm169_vm0, %v14686_v51  ;;  %v5377_v51 = vld [vmem:[#allocation2 + $0x168] sm:$0xff] }
 0x435   : > { %11522 = vmatprep.mubr.msk.f32.mxu0 %vm169_vm0, %v14690_v17  ;;  %v5378_v17 = vld [vmem:[#allocation2 + $0x170] sm:$0xff] }
 0x438   : > { %11523 = vmatmul.mubr.msk.f32.gmra.mrb[18].mxu0 %vm169_vm0, %v14694_v43  ;;  %v5379_v43 = vld [vmem:[#allocation2 + $0x188] sm:$0xff] }
 0x439   : > { %11525 = vmatprep.mubr.msk.f32.mxu0 %vm169_vm0, %v14698_v45  ;;  %v5380_v45 = vld [vmem:[#allocation2 + $0x190] sm:$0xff] }
 0x43c   : > { %11526 = vmatmul.mubr.msk.f32.gmra.mrb[20].mxu0 %vm169_vm0, %v14702_v49  ;;  %v5381_v49 = vld [vmem:[#allocation2 + $0x1a8] sm:$0xff] }
 0x43d   : > { %11528 = vmatprep.mubr.msk.f32.mxu0 %vm169_vm0, %v14706_v59  ;;  %v5382_v59 = vld [vmem:[#allocation2 + $0x1b0] sm:$0xff] }
 0x440   : > { %11529 = vmatmul.mubr.msk.f32.gmra.mrb[22].mxu0 %vm169_vm0, %v14710_v8  ;;  %v5383_v8 = vld [vmem:[#allocation2 + $0x1c8] sm:$0xff] }
 0x441   : > { %11531 = vmatprep.mubr.msk.f32.mxu0 %vm169_vm0, %v14714_v36  ;;  %v5384_v36 = vld [vmem:[#allocation2 + $0x1d0] sm:$0xff] }
 0x444   : > { %11532 = vmatmul.mubr.msk.f32.gmra.mrb[24].mxu0 %vm169_vm0, %v14718_v54  ;;  %v5385_v54 = vld [vmem:[#allocation2 + $0x1e8] sm:$0xff] }
 0x445   : > { %11534 = vmatprep.mubr.msk.f32.mxu0 %vm169_vm0, %v14722_v40  ;;  %v5386_v40 = vld [vmem:[#allocation2 + $0x1f0] sm:$0xff] }
 0x448   : > { %11535 = vmatmul.mubr.msk.f32.gmra.mrb[26].mxu0 %vm169_vm0, %v16576_v39 }
 0x449   : > { %11537 = vmatprep.mubr.msk.f32.mxu0 %vm169_vm0, %v16577_v5 }
 0x44c   : > { %11538 = vmatmul.mubr.msk.f32.gmra.mrb[28].mxu0 %vm169_vm0, %v14945_v42  ;;  %v5390_v42 = vld [vmem:[#allocation2 + $0x230] sm:$0xff] }
 0x44d   : > { %11540 = vmatprep.mubr.msk.f32.mxu0 %vm169_vm0, %v5000_v52 }
 0x450   : > { %11541 = vmatmul.mubr.msk.f32.gmra.mrb[30].mxu0 %vm169_vm0, %v5001_v1 }
 0x451   : > { %11551 = vmatprep.mubr.msk.f32.mxu0 %vm169_vm0, %v14963_v16  ;;  %v5389_v16 = vld [vmem:[#allocation2 + $0x228] sm:$0xff] }
 0x454   : > { %11552 = vmatmul.mubr.msk.f32.vlgmr.msra.gmra.mrb[0].mxu0 %vm169_vm0, %v14967_v63 }
 0x455   : > { %12226 = vmatpush3.bf16.msra.mxu0 %v12223_v14  ;;  %11554 = vmatprep.mubr.msk.f32.mxu0 %vm169_vm0, %v14971_v30  ;;  %v10176_v30 = vld [vmem:[%s16419_s1 + $0x270] sm:$0xff] }
 0x456   : > { %12228 = vmatprep.subr.bf16.mxu0 %v12227_v12 }
 0x458   : > { %11555 = vmatmul.mubr.msk.f32.gmra.mrb[2].mxu0 %vm169_vm0, %v16578_v0 }
 0x459   : > { %11557 = vmatprep.mubr.msk.f32.mxu0 %vm169_vm0, %v16579_v37  ;;  %12230 = vmatpush3.bf16.msra.mxu0 %v12227_v12 }
 0x45c   : > { %11558 = vmatmul.mubr.msk.f32.gmra.mrb[4].mxu0 %vm169_vm0, %v16580_v28 }
 0x45d   : > { %11560 = vmatprep.mubr.msk.f32.mxu0 %vm169_vm0, %v16581_v9 }
 0x460   : > { %11561 = vmatmul.mubr.msk.f32.gmra.mrb[6].mxu0 %vm169_vm0, %v16582_v26 }
 0x461   : > { %11563 = vmatprep.mubr.msk.f32.mxu0 %vm169_vm0, %v16583_v58 }
 0x464   : > { %11564 = vmatmul.mubr.msk.f32.gmra.mrb[8].mxu0 %vm169_vm0, %v16584_v34 }
 0x465   : > { %11566 = vmatprep.mubr.msk.f32.mxu0 %vm169_vm0, %v16585_v46 }
 0x468   : > { %11567 = vmatmul.mubr.msk.f32.gmra.mrb[10].mxu0 %vm169_vm0, %v16586_v27 }
 0x469   : > { %11569 = vmatprep.mubr.msk.f32.mxu0 %vm169_vm0, %v16587_v55 }
 0x46c   : > { %11570 = vmatmul.mubr.msk.f32.gmra.mrb[12].mxu0 %vm169_vm0, %v15015_v47  ;;  %v10177_v47 = vld [vmem:[%s16419_s1 + $0x278] sm:$0xff] }
 0x46d   : > { %11572 = vmatprep.mubr.msk.f32.mxu0 %vm169_vm0, %v15019_v29  ;;  %v12235_v29 = vpack.c.bf16 %v10177_v47, %v10176_v30 }
 0x470   : > { %11573 = vmatmul.mubr.msk.f32.gmra.mrb[14].mxu0 %vm169_vm0, %v15023_v15  ;;  %v6278_v15 = vld [vmem:[#allocation2 + $0x8] sm:$0xff] }
 0x471   : > { %11575 = vmatprep.mubr.msk.f32.mxu0 %vm169_vm0, %v15027_v44  ;;  %11663 = vmatprep.mubr.msk.f32.mxu1 %vm169_vm0, %v6278_v15  ;;  %v6279_v44 = vld [vmem:[#allocation2 + $0x10] sm:$0xff] }
 0x474   : > { %11576 = vmatmul.mubr.msk.f32.gmra.mrb[16].mxu0 %vm169_vm0, %v15031_v56  ;;  %v10170_v56 = vld [vmem:[%s16419_s1 + $0x240] sm:$0xff] }
 0x475   : > { %11578 = vmatprep.mubr.msk.f32.mxu0 %vm169_vm0, %v5377_v51 }
 0x478   : > { %11579 = vmatmul.mubr.msk.f32.gmra.mrb[18].mxu0 %vm169_vm0, %v5378_v17 }
 0x479   : > { %11581 = vmatprep.mubr.msk.f32.mxu0 %vm169_vm0, %v5379_v43 }
 0x47c   : > { %11582 = vmatmul.mubr.msk.f32.gmra.mrb[20].mxu0 %vm169_vm0, %v5380_v45 }
 0x47d   : > { %11584 = vmatprep.mubr.msk.f32.mxu0 %vm169_vm0, %v5381_v49 }
 0x480   : > { %11585 = vmatmul.mubr.msk.f32.gmra.mrb[22].mxu0 %vm169_vm0, %v5382_v59 }
 0x481   : > { %11587 = vmatprep.mubr.msk.f32.mxu0 %vm169_vm0, %v5383_v8 }
 0x484   : > { %11588 = vmatmul.mubr.msk.f32.gmra.mrb[24].mxu0 %vm169_vm0, %v5384_v36 }
 0x485   : > { %11590 = vmatprep.mubr.msk.f32.mxu0 %vm169_vm0, %v5385_v54 }
 0x488   : > { %11591 = vmatmul.mubr.msk.f32.gmra.mrb[26].mxu0 %vm169_vm0, %v5386_v40 }
 0x489   : > { %11593 = vmatprep.mubr.msk.f32.mxu0 %vm169_vm0, %v15055_v2  ;;  %v10171_v2 = vld [vmem:[%s16419_s1 + $0x248] sm:$0xff] }
 0x48c   : > { %11594 = vmatmul.mubr.msk.f32.gmra.mrb[28].mxu0 %vm169_vm0, %v15059_v60  ;;  %v12239_v60 = vpack.c.bf16 %v10171_v2, %v10170_v56 }
 0x48d   : > { %11596 = vmatprep.mubr.msk.f32.mxu0 %vm169_vm0, %v5389_v16 }
 0x490   : > { %11597 = vmatmul.mubr.msk.f32.gmra.mrb[30].mxu0 %vm169_vm0, %v5390_v42 }
 0x491   : > { %11607 = vmatprep.mubr.msk.f32.mxu0 %vm169_vm0, %v14755_v41  ;;  %v16588_v41 = vld [vmem:[#allocation9_spill] sm:$0xff] }
 0x494   : > { %11608 = vmatmul.mubr.msk.f32.vlgmr.msra.gmra.mrb[0].mxu0 %vm169_vm0, %v14760_v21  ;;  %v16589_v21 = vld [vmem:[#allocation10_spill] sm:$0xff] }
 0x495   : > { %11610 = vmatprep.mubr.msk.f32.mxu0 %vm169_vm0, %v14764_v22  ;;  %v16590_v22 = vld [vmem:[#allocation11_spill] sm:$0xff] }
 0x498   : > { %11611 = vmatmul.mubr.msk.f32.gmra.mrb[2].mxu0 %vm169_vm0, %v14768_v61  ;;  %v16591_v61 = vld [vmem:[#allocation12_spill] sm:$0xff] }
 0x499   : > { %11613 = vmatprep.mubr.msk.f32.mxu0 %vm169_vm0, %v14772_v11  ;;  %v16592_v11 = vld [vmem:[#allocation14_spill] sm:$0xff] }
 0x49c   : > { %11614 = vmatmul.mubr.msk.f32.gmra.mrb[4].mxu0 %vm169_vm0, %v14776_v48  ;;  %v16593_v48 = vld [vmem:[#allocation16_spill] sm:$0xff] }
 0x49d   : > { %11616 = vmatprep.mubr.msk.f32.mxu0 %vm169_vm0, %v14780_v19  ;;  %v16594_v19 = vld [vmem:[#allocation17_spill] sm:$0xff] }
 0x4a0   : > { %11617 = vmatmul.mubr.msk.f32.gmra.mrb[6].mxu0 %vm169_vm0, %v14784_v6  ;;  %v16595_v6 = vld [vmem:[#allocation18_spill] sm:$0xff] }
 0x4a1   : > { %11619 = vmatprep.mubr.msk.f32.mxu0 %vm169_vm0, %v14788_v57  ;;  %v16596_v57 = vld [vmem:[#allocation19_spill] sm:$0xff] }
 0x4a4   : > { %11620 = vmatmul.mubr.msk.f32.gmra.mrb[8].mxu0 %vm169_vm0, %v14792_v32  ;;  %v16597_v32 = vld [vmem:[#allocation7_spill] sm:$0xff] }
 0x4a5   : > { %11622 = vmatprep.mubr.msk.f32.mxu0 %vm169_vm0, %v14796_v31  ;;  %v5778_v31 = vld [vmem:[#allocation2 + $0x229] sm:$0xff] }
 0x4a8   : > { %11623 = vmatmul.mubr.msk.f32.gmra.mrb[10].mxu0 %vm169_vm0, %v14800_v24  ;;  %v16598_v24 = vld [vmem:[#allocation8_spill] sm:$0xff] }
 0x4a9   : > { %11625 = vmatprep.mubr.msk.f32.mxu0 %vm169_vm0, %v14804_v7  ;;  %v5779_v7 = vld [vmem:[#allocation2 + $0x231] sm:$0xff] }
 0x4ac   : > { %11626 = vmatmul.mubr.msk.f32.gmra.mrb[12].mxu0 %vm169_vm0, %v14808_v10  ;;  %v10174_v10 = vld [vmem:[%s16419_s1 + $0x260] sm:$0xff] }
 0x4ad   : > { %11628 = vmatprep.mubr.msk.f32.mxu0 %vm169_vm0, %v14812_v3  ;;  %v10175_v3 = vld [vmem:[%s16419_s1 + $0x268] sm:$0xff] }
 0x4ae   : > { %v12231_v63 = vpack.c.bf16 %v10175_v3, %v10174_v10 }
 0x4b0   : > { %11629 = vmatmul.mubr.msk.f32.gmra.mrb[14].mxu0 %vm169_vm0, %v16561_v23  ;;  %12232 = vmatprep.subr.bf16.mxu1 %v12231_v63  ;;  %v10173_v23 = vld [vmem:[%s16419_s1 + $0x258] sm:$0xff] }
 0x4b1   : > { %11631 = vmatprep.mubr.msk.f32.mxu0 %vm169_vm0, %v16562_v25  ;;  %12234 = vmatpush3.bf16.msra.mxu1 %v12231_v63  ;;  %v12243_v25 = vpack.c.bf16 %v10173_v23, %v10172_v4 }
 0x4b2   : > { %12236 = vmatprep.subr.bf16.mxu1 %v12235_v29 }
 0x4b4   : > { %11632 = vmatmul.mubr.msk.f32.gmra.mrb[16].mxu0 %vm169_vm0, %v16588_v41 }
 0x4b5   : > { %11634 = vmatprep.mubr.msk.f32.mxu0 %vm169_vm0, %v16589_v21  ;;  %12238 = vmatpush3.bf16.msra.mxu1 %v12235_v29 }
 0x4b6   : > { %12240 = vmatprep.subr.bf16.mxu1 %v12239_v60 }
 0x4b8   : > { %11635 = vmatmul.mubr.msk.f32.gmra.mrb[18].mxu0 %vm169_vm0, %v16590_v22  ;;  %11664 = vmatmul.mubr.msk.f32.vlgmr.msra.gmra.mrb[0].mxu1 %vm169_vm0, %v6279_v44 }
 0x4b9   : > { %11637 = vmatprep.mubr.msk.f32.mxu0 %vm169_vm0, %v16591_v61  ;;  %12242 = vmatpush3.bf16.msra.mxu1 %v12239_v60 }
 0x4ba   : > { %12244 = vmatprep.subr.bf16.mxu1 %v12243_v25 }
 0x4bc   : > { %11638 = vmatmul.mubr.msk.f32.gmra.mrb[20].mxu0 %vm169_vm0, %v16567_v35 }
 0x4bd   : > { %11640 = vmatprep.mubr.msk.f32.mxu0 %vm169_vm0, %v16592_v11  ;;  %12246 = vmatpush3.bf16.msra.mxu1 %v12243_v25 }
 0x4be   : > { %12248 = vmatprep.subr.bf16.mxu1 %v15369_v20 }
 0x4c0   : > { %11641 = vmatmul.mubr.msk.f32.gmra.mrb[22].mxu0 %vm169_vm0, %v16569_v18 }
 0x4c1   : > { %11643 = vmatprep.mubr.msk.f32.mxu0 %vm169_vm0, %v16593_v48 }
 0x4c4   : > { %11644 = vmatmul.mubr.msk.f32.gmra.mrb[24].mxu0 %vm169_vm0, %v16594_v19 }
 0x4c5   : > { %11646 = vmatprep.mubr.msk.f32.mxu0 %vm169_vm0, %v16595_v6 }
 0x4c8   : > { %11647 = vmatmul.mubr.msk.f32.gmra.mrb[26].mxu0 %vm169_vm0, %v16596_v57 }
 0x4c9   : > { %11649 = vmatprep.mubr.msk.f32.mxu0 %vm169_vm0, %v16597_v32 }
 0x4cc   : > { %11650 = vmatmul.mubr.msk.f32.gmra.mrb[28].mxu0 %vm169_vm0, %v16598_v24 }
 0x4cd   : > { %11652 = vmatprep.mubr.msk.f32.mxu0 %vm169_vm0, %v5778_v31 }
 0x4d0   : > { %11653 = vmatmul.mubr.msk.f32.gmra.mrb[30].mxu0 %vm169_vm0, %v5779_v7 }
 0x567   : > { %v11609_v35 = vpop.f32.mrb[0].mxu0 }
 0x568   : > { %v6146_v14 = vadd.f32 %v11609_v35, %v15375_v50  ;;  %v5946_v18 = vpop.f32.mrb[1].mxu0 }
 0x569   : > { %v6145_v62 = vadd.f32 %v15375_v50, %v5946_v18 }
 0x56a   : > { %v6178_v39 = vmax.f32 %v6146_v14, 0.0 }
 0x56b   : > { %v6177_v5 = vmax.f32 %v6145_v62, 0.0  ;;  %v11612_v52 = vpop.f32.mrb[2].mxu0 }
 0x56c   : > { %6210 = vst.msk [vmem:[#allocation2 + $0x30] sm:$0xff] %vm169_vm0, %v6178_v39  ;;  %v6148_v1 = vadd.f32 %v11612_v52, %v15375_v50  ;;  %v5956_v38 = vpop.f32.mrb[3].mxu0 }
 0x56d   : > { %6209 = vst.msk [vmem:[#allocation2 + $0x28] sm:$0xff] %vm169_vm0, %v6177_v5  ;;  %v6147_v53 = vadd.f32 %v15375_v50, %v5956_v38 }
 0x56e   : > { %v6180_v12 = vmax.f32 %v6148_v1, 0.0 }
 0x56f   : > { %v6179_v0 = vmax.f32 %v6147_v53, 0.0  ;;  %v11615_v37 = vpop.f32.mrb[4].mxu0 }
 0x570   : > { %6212 = vst.msk [vmem:[#allocation2 + $0x50] sm:$0xff] %vm169_vm0, %v6180_v12  ;;  %v6150_v28 = vadd.f32 %v11615_v37, %v15375_v50  ;;  %v5966_v9 = vpop.f32.mrb[5].mxu0 }
 0x571   : > { %6211 = vst.msk [vmem:[#allocation2 + $0x48] sm:$0xff] %vm169_vm0, %v6179_v0  ;;  %v6149_v26 = vadd.f32 %v15375_v50, %v5966_v9 }
 0x572   : > { %v6182_v58 = vmax.f32 %v6150_v28, 0.0 }
 0x573   : > { %v6181_v34 = vmax.f32 %v6149_v26, 0.0  ;;  %v11618_v46 = vpop.f32.mrb[6].mxu0  ;;  %v15395_v43 = vld [vmem:[#allocation2 + $0x30] sm:$0xff] }
 0x574   : > { %6214 = vst.msk [vmem:[#allocation2 + $0x70] sm:$0xff] %vm169_vm0, %v6182_v58  ;;  %v6152_v27 = vadd.f32 %v11618_v46, %v15375_v50  ;;  %v5976_v55 = vpop.f32.mrb[7].mxu0  ;;  %v15389_v51 = vld [vmem:[#allocation2 + $0x28] sm:$0xff] }
 0x575   : > { %6213 = vst.msk [vmem:[#allocation2 + $0x68] sm:$0xff] %vm169_vm0, %v6181_v34  ;;  %v6151_v17 = vadd.f32 %v15375_v50, %v5976_v55  ;;  %11666 = vmatprep.mubr.msk.f32.mxu1 %vm169_vm0, %v15389_v51 }
 0x576   : > { %v6184_v45 = vmax.f32 %v6152_v27, 0.0  ;;  %11667 = vmatmul.mubr.msk.f32.gmra.mrb[2].mxu1 %vm169_vm0, %v15395_v43 }
 0x577   : > { %v6183_v49 = vmax.f32 %v6151_v17, 0.0  ;;  %v11621_v59 = vpop.f32.mrb[8].mxu0  ;;  %v15407_v16 = vld [vmem:[#allocation2 + $0x50] sm:$0xff] }
 0x578   : > { %6216 = vst.msk [vmem:[#allocation2 + $0x90] sm:$0xff] %vm169_vm0, %v6184_v45  ;;  %v6154_v8 = vadd.f32 %v11621_v59, %v15375_v50  ;;  %v5986_v36 = vpop.f32.mrb[9].mxu0  ;;  %v15401_v54 = vld [vmem:[#allocation2 + $0x48] sm:$0xff] }
 0x579   : > { %6215 = vst.msk [vmem:[#allocation2 + $0x88] sm:$0xff] %vm169_vm0, %v6183_v49  ;;  %v6153_v40 = vadd.f32 %v15375_v50, %v5986_v36  ;;  %11669 = vmatprep.mubr.msk.f32.mxu1 %vm169_vm0, %v15401_v54 }
 0x57a   : > { %v6186_v42 = vmax.f32 %v6154_v8, 0.0  ;;  %11670 = vmatmul.mubr.msk.f32.gmra.mrb[4].mxu1 %vm169_vm0, %v15407_v16 }
 0x57b   : > { %v6185_v41 = vmax.f32 %v6153_v40, 0.0  ;;  %v11624_v21 = vpop.f32.mrb[10].mxu0  ;;  %v15419_v19 = vld [vmem:[#allocation2 + $0x70] sm:$0xff] }
 0x57c   : > { %6218 = vst.msk [vmem:[#allocation2 + $0xb0] sm:$0xff] %vm169_vm0, %v6186_v42  ;;  %v6156_v22 = vadd.f32 %v11624_v21, %v15375_v50  ;;  %v5996_v61 = vpop.f32.mrb[11].mxu0  ;;  %v15413_v11 = vld [vmem:[#allocation2 + $0x68] sm:$0xff] }
 0x57d   : > { %6217 = vst.msk [vmem:[#allocation2 + $0xa8] sm:$0xff] %vm169_vm0, %v6185_v41  ;;  %v6155_v48 = vadd.f32 %v15375_v50, %v5996_v61  ;;  %11672 = vmatprep.mubr.msk.f32.mxu1 %vm169_vm0, %v15413_v11 }
 0x57e   : > { %v6188_v6 = vmax.f32 %v6156_v22, 0.0  ;;  %11673 = vmatmul.mubr.msk.f32.gmra.mrb[6].mxu1 %vm169_vm0, %v15419_v19 }
 0x57f   : > { %v6187_v57 = vmax.f32 %v6155_v48, 0.0  ;;  %v11627_v32 = vpop.f32.mrb[12].mxu0  ;;  %v15431_v3 = vld [vmem:[#allocation2 + $0x90] sm:$0xff] }
 0x580   : > { %6220 = vst.msk [vmem:[#allocation2 + $0xd0] sm:$0xff] %vm169_vm0, %v6188_v6  ;;  %v6158_v31 = vadd.f32 %v11627_v32, %v15375_v50  ;;  %v6006_v24 = vpop.f32.mrb[13].mxu0  ;;  %v15425_v7 = vld [vmem:[#allocation2 + $0x88] sm:$0xff] }
 0x581   : > { %6219 = vst.msk [vmem:[#allocation2 + $0xc8] sm:$0xff] %vm169_vm0, %v6187_v57  ;;  %v6157_v10 = vadd.f32 %v15375_v50, %v6006_v24  ;;  %11675 = vmatprep.mubr.msk.f32.mxu1 %vm169_vm0, %v15425_v7 }
 0x582   : > { %v6190_v63 = vmax.f32 %v6158_v31, 0.0  ;;  %11676 = vmatmul.mubr.msk.f32.gmra.mrb[8].mxu1 %vm169_vm0, %v15431_v3 }
 0x583   : > { %v6189_v30 = vmax.f32 %v6157_v10, 0.0  ;;  %v11630_v47 = vpop.f32.mrb[14].mxu0  ;;  %v15443_v2 = vld [vmem:[#allocation2 + $0xb0] sm:$0xff] }
 0x584   : > { %6222 = vst.msk [vmem:[#allocation2 + $0xf0] sm:$0xff] %vm169_vm0, %v6190_v63  ;;  %v6160_v29 = vadd.f32 %v11630_v47, %v15375_v50  ;;  %v6016_v15 = vpop.f32.mrb[15].mxu0  ;;  %v15437_v44 = vld [vmem:[#allocation2 + $0xa8] sm:$0xff] }
 0x585   : > { %6221 = vst.msk [vmem:[#allocation2 + $0xe8] sm:$0xff] %vm169_vm0, %v6189_v30  ;;  %v6159_v56 = vadd.f32 %v15375_v50, %v6016_v15  ;;  %11678 = vmatprep.mubr.msk.f32.mxu1 %vm169_vm0, %v15437_v44 }
 0x586   : > { %v6192_v60 = vmax.f32 %v6160_v29, 0.0  ;;  %11679 = vmatmul.mubr.msk.f32.gmra.mrb[10].mxu1 %vm169_vm0, %v15443_v2 }
 0x587   : > { %v6191_v4 = vmax.f32 %v6159_v56, 0.0  ;;  %v11633_v23 = vpop.f32.mrb[16].mxu0  ;;  %v15455_v14 = vld [vmem:[#allocation2 + $0xd0] sm:$0xff] }
 0x588   : > { %6224 = vst.msk [vmem:[#allocation2 + $0x110] sm:$0xff] %vm169_vm0, %v6192_v60  ;;  %v6162_v25 = vadd.f32 %v11633_v23, %v15375_v50  ;;  %v6026_v33 = vpop.f32.mrb[17].mxu0  ;;  %v15449_v13 = vld [vmem:[#allocation2 + $0xc8] sm:$0xff] }
 0x589   : > { %6223 = vst.msk [vmem:[#allocation2 + $0x108] sm:$0xff] %vm169_vm0, %v6191_v4  ;;  %v6161_v35 = vadd.f32 %v15375_v50, %v6026_v33  ;;  %11681 = vmatprep.mubr.msk.f32.mxu1 %vm169_vm0, %v15449_v13 }
 0x58a   : > { %v6194_v18 = vmax.f32 %v6162_v25, 0.0  ;;  %11682 = vmatmul.mubr.msk.f32.gmra.mrb[12].mxu1 %vm169_vm0, %v15455_v14 }
 0x58b   : > { %v6193_v62 = vmax.f32 %v6161_v35, 0.0  ;;  %v11636_v39 = vpop.f32.mrb[18].mxu0  ;;  %v15467_v53 = vld [vmem:[#allocation2 + $0xf0] sm:$0xff] }
 0x58c   : > { %6226 = vst.msk [vmem:[#allocation2 + $0x130] sm:$0xff] %vm169_vm0, %v6194_v18  ;;  %v6164_v5 = vadd.f32 %v11636_v39, %v15375_v50  ;;  %v6036_v52 = vpop.f32.mrb[19].mxu0  ;;  %v15461_v1 = vld [vmem:[#allocation2 + $0xe8] sm:$0xff] }
 0x58d   : > { %6225 = vst.msk [vmem:[#allocation2 + $0x128] sm:$0xff] %vm169_vm0, %v6193_v62  ;;  %v6163_v38 = vadd.f32 %v15375_v50, %v6036_v52  ;;  %11684 = vmatprep.mubr.msk.f32.mxu1 %vm169_vm0, %v15461_v1 }
 0x58e   : > { %v6196_v12 = vmax.f32 %v6164_v5, 0.0  ;;  %11685 = vmatmul.mubr.msk.f32.gmra.mrb[14].mxu1 %vm169_vm0, %v15467_v53 }
 0x58f   : > { %v6195_v0 = vmax.f32 %v6163_v38, 0.0  ;;  %v11639_v37 = vpop.f32.mrb[20].mxu0  ;;  %v15479_v34 = vld [vmem:[#allocation2 + $0x110] sm:$0xff] }
 0x590   : > { %6228 = vst.msk [vmem:[#allocation2 + $0x150] sm:$0xff] %vm169_vm0, %v6196_v12  ;;  %v6166_v28 = vadd.f32 %v11639_v37, %v15375_v50  ;;  %v6046_v9 = vpop.f32.mrb[21].mxu0  ;;  %v15473_v26 = vld [vmem:[#allocation2 + $0x108] sm:$0xff] }
 0x591   : > { %6227 = vst.msk [vmem:[#allocation2 + $0x148] sm:$0xff] %vm169_vm0, %v6195_v0  ;;  %v6165_v58 = vadd.f32 %v15375_v50, %v6046_v9  ;;  %11687 = vmatprep.mubr.msk.f32.mxu1 %vm169_vm0, %v15473_v26  ;;  %v6241_v9 = vld [vmem:[#allocation2 + $0x7] sm:$0xff] }
 0x592   : > { %v6198_v46 = vmax.f32 %v6166_v28, 0.0  ;;  %11688 = vmatmul.mubr.msk.f32.gmra.mrb[16].mxu1 %vm169_vm0, %v15479_v34 }
 0x593   : > { %v6197_v27 = vmax.f32 %v6165_v58, 0.0  ;;  %v11642_v55 = vpop.f32.mrb[22].mxu0  ;;  %v15491_v8 = vld [vmem:[#allocation2 + $0x130] sm:$0xff] }
 0x594   : > { %6230 = vst.msk [vmem:[#allocation2 + $0x170] sm:$0xff] %vm169_vm0, %v6198_v46  ;;  %v6168_v17 = vadd.f32 %v11642_v55, %v15375_v50  ;;  %v6056_v45 = vpop.f32.mrb[23].mxu0  ;;  %v15485_v49 = vld [vmem:[#allocation2 + $0x128] sm:$0xff]  ;;  %v10244_v46 = vld [vmem:[%s16419_s1 + $0x290] sm:$0xff] }
 0x595   : > { %6229 = vst.msk [vmem:[#allocation2 + $0x168] sm:$0xff] %vm169_vm0, %v6197_v27  ;;  %v6167_v59 = vadd.f32 %v15375_v50, %v6056_v45  ;;  %11690 = vmatprep.mubr.msk.f32.mxu1 %vm169_vm0, %v15485_v49  ;;  %v10245_v27 = vld [vmem:[%s16419_s1 + $0x298] sm:$0xff]  ;;  %v6242_v55 = vld [vmem:[#allocation2 + $0xf] sm:$0xff]  ;;  %v10278_v45 = vld [vmem:[%s16419_s1 + $0x2a0] sm:$0xff] }
 0x596   : > { %v6200_v36 = vmax.f32 %v6168_v17, 0.0  ;;  %11691 = vmatmul.mubr.msk.f32.gmra.mrb[18].mxu1 %vm169_vm0, %v15491_v8  ;;  %v12251_v17 = vpack.c.bf16 %v10245_v27, %v10244_v46 }
 0x597   : > { %v6199_v40 = vmax.f32 %v6167_v59, 0.0  ;;  %v11645_v42 = vpop.f32.mrb[24].mxu0  ;;  %v15503_v48 = vld [vmem:[#allocation2 + $0x150] sm:$0xff]  ;;  %v10279_v59 = vld [vmem:[%s16419_s1 + $0x2a8] sm:$0xff] }
 0x598   : > { %6232 = vst.msk [vmem:[#allocation2 + $0x190] sm:$0xff] %vm169_vm0, %v6200_v36  ;;  %v6170_v41 = vadd.f32 %v11645_v42, %v15375_v50  ;;  %v6066_v21 = vpop.f32.mrb[25].mxu0  ;;  %v15497_v22 = vld [vmem:[#allocation2 + $0x148] sm:$0xff] }
 0x599   : > { %6231 = vst.msk [vmem:[#allocation2 + $0x188] sm:$0xff] %vm169_vm0, %v6199_v40  ;;  %v6169_v61 = vadd.f32 %v15375_v50, %v6066_v21  ;;  %11693 = vmatprep.mubr.msk.f32.mxu1 %vm169_vm0, %v15497_v22  ;;  %v15575_v36 = vld [vmem:[#allocation2 + $0x27] sm:$0xff]  ;;  %v15580_v40 = vpack.c.bf16 %v10279_v59, %v10278_v45  ;;  %v15582_v42 = vld [vmem:[#allocation2 + $0x2f] sm:$0xff]  ;;  %v10281_v59 = vld [vmem:[%s16419_s1 + $0x2b8] sm:$0xff] }
 0x59a   : > { %v6202_v6 = vmax.f32 %v6170_v41, 0.0  ;;  %11694 = vmatmul.mubr.msk.f32.gmra.mrb[20].mxu1 %vm169_vm0, %v15503_v48  ;;  %v15586_v41 = vld [vmem:[#allocation2 + $0x47] sm:$0xff]  ;;  %v10280_v45 = vld [vmem:[%s16419_s1 + $0x2b0] sm:$0xff] }
 0x59b   : > { %v6201_v57 = vmax.f32 %v6169_v61, 0.0  ;;  %v11648_v32 = vpop.f32.mrb[26].mxu0  ;;  %v15515_v30 = vld [vmem:[#allocation2 + $0x170] sm:$0xff]  ;;  %v15595_v21 = vld [vmem:[#allocation2 + $0x67] sm:$0xff] }
 0x59c   : > { %6234 = vst.msk [vmem:[#allocation2 + $0x1b0] sm:$0xff] %vm169_vm0, %v6202_v6  ;;  %v6172_v31 = vadd.f32 %v11648_v32, %v15375_v50  ;;  %v6076_v24 = vpop.f32.mrb[27].mxu0  ;;  %v15509_v10 = vld [vmem:[#allocation2 + $0x168] sm:$0xff] }
 0x59d   : > { %6233 = vst.msk [vmem:[#allocation2 + $0x1a8] sm:$0xff] %vm169_vm0, %v6201_v57  ;;  %v6171_v63 = vadd.f32 %v15375_v50, %v6076_v24  ;;  %11696 = vmatprep.mubr.msk.f32.mxu1 %vm169_vm0, %v15509_v10  ;;  %v15599_v61 = vld [vmem:[#allocation2 + $0x6f] sm:$0xff]  ;;  %v15603_v6 = vld [vmem:[#allocation2 + $0x87] sm:$0xff] }
 0x59e   : > { %v6204_v47 = vmax.f32 %v6172_v31, 0.0  ;;  %11697 = vmatmul.mubr.msk.f32.gmra.mrb[22].mxu1 %vm169_vm0, %v15515_v30  ;;  %v15607_v57 = vld [vmem:[#allocation2 + $0x8f] sm:$0xff]  ;;  %v15611_v32 = vld [vmem:[#allocation2 + $0xa7] sm:$0xff] }
 0x59f   : > { %v6203_v29 = vmax.f32 %v6171_v63, 0.0  ;;  %v11651_v15 = vpop.f32.mrb[28].mxu0  ;;  %v15527_v25 = vld [vmem:[#allocation2 + $0x190] sm:$0xff]  ;;  %v15619_v24 = vld [vmem:[#allocation2 + $0xc7] sm:$0xff] }
 0x5a0   : > { %6236 = vst.msk [vmem:[#allocation2 + $0x1d0] sm:$0xff] %vm169_vm0, %v6204_v47  ;;  %v6174_v56 = vadd.f32 %v11651_v15, %v15375_v50  ;;  %v6086_v60 = vpop.f32.mrb[29].mxu0  ;;  %v15521_v4 = vld [vmem:[#allocation2 + $0x188] sm:$0xff] }
 0x5a1   : > { %6235 = vst.msk [vmem:[#allocation2 + $0x1c8] sm:$0xff] %vm169_vm0, %v6203_v29  ;;  %v6173_v23 = vadd.f32 %v15375_v50, %v6086_v60  ;;  %11699 = vmatprep.mubr.msk.f32.mxu1 %vm169_vm0, %v15521_v4  ;;  %v15615_v31 = vld [vmem:[#allocation2 + $0xaf] sm:$0xff]  ;;  %v15627_v47 = vld [vmem:[#allocation2 + $0xe7] sm:$0xff] }
 0x5a2   : > { %v6206_v33 = vmax.f32 %v6174_v56, 0.0  ;;  %11700 = vmatmul.mubr.msk.f32.gmra.mrb[24].mxu1 %vm169_vm0, %v15527_v25  ;;  %v15623_v63 = vld [vmem:[#allocation2 + $0xcf] sm:$0xff]  ;;  %v15635_v15 = vld [vmem:[#allocation2 + $0x107] sm:$0xff] }
 0x5a3   : > { %v6205_v35 = vmax.f32 %v6173_v23, 0.0  ;;  %v11654_v18 = vpop.f32.mrb[30].mxu0  ;;  %v15539_v38 = vld [vmem:[#allocation2 + $0x1b0] sm:$0xff]  ;;  %v15643_v60 = vld [vmem:[#allocation2 + $0x127] sm:$0xff] }
 0x5a4   : > { %6238 = vst.msk [vmem:[#allocation2 + $0x1f0] sm:$0xff] %vm169_vm0, %v6206_v33  ;;  %v6176_v62 = vadd.f32 %v11654_v18, %v15375_v50  ;;  %v6096_v39 = vpop.f32.mrb[31].mxu0  ;;  %v15533_v5 = vld [vmem:[#allocation2 + $0x1a8] sm:$0xff]  ;;  %16599 = vst [vmem:[#allocation13_spill] sm:$0xff] %v15539_v38 }
 0x5a5   : > { %6237 = vst.msk [vmem:[#allocation2 + $0x1e8] sm:$0xff] %vm169_vm0, %v6205_v35  ;;  %v6175_v52 = vadd.f32 %v15375_v50, %v6096_v39  ;;  %11702 = vmatprep.mubr.msk.f32.mxu1 %vm169_vm0, %v15533_v5  ;;  %v15631_v29 = vld [vmem:[#allocation2 + $0xef] sm:$0xff]  ;;  %v15651_v33 = vld [vmem:[#allocation2 + $0x147] sm:$0xff] }
 0x5a6   : > { %v6208_v12 = vmax.f32 %v6176_v62, 0.0  ;;  %11703 = vmatmul.mubr.msk.f32.gmra.mrb[26].mxu1 %vm169_vm0, %v15539_v38  ;;  %v15639_v56 = vld [vmem:[#allocation2 + $0x10f] sm:$0xff]  ;;  %v15659_v18 = vld [vmem:[#allocation2 + $0x167] sm:$0xff] }
 0x5a7   : > { %v6207_v0 = vmax.f32 %v6175_v52, 0.0  ;;  %v15549_v50 = vld [vmem:[#allocation2 + $0x1d0] sm:$0xff]  ;;  %v15667_v39 = vld [vmem:[#allocation2 + $0x187] sm:$0xff] }
 0x5a8   : > { %6240 = vst.msk [vmem:[#allocation2 + $0x210] sm:$0xff] %vm169_vm0, %v6208_v12  ;;  %v15544_v37 = vld [vmem:[#allocation2 + $0x1c8] sm:$0xff]  ;;  %16601 = vst [vmem:[#allocation6_spill] sm:$0xff] %v15549_v50 }
 0x5a9   : > { %16600 = vst [vmem:[#allocation15_spill] sm:$0xff] %v15544_v37  ;;  %6239 = vst.msk [vmem:[#allocation2 + $0x208] sm:$0xff] %vm169_vm0, %v6207_v0  ;;  %11705 = vmatprep.mubr.msk.f32.mxu1 %vm169_vm0, %v15544_v37  ;;  %v15647_v23 = vld [vmem:[#allocation2 + $0x12f] sm:$0xff]  ;;  %v15675_v12 = vld [vmem:[#allocation2 + $0x1a7] sm:$0xff] }
 0x5aa   : > { %11706 = vmatmul.mubr.msk.f32.gmra.mrb[28].mxu1 %vm169_vm0, %v15549_v50  ;;  %v15655_v35 = vld [vmem:[#allocation2 + $0x14f] sm:$0xff]  ;;  %v10314_v50 = vld [vmem:[%s16419_s1 + $0x2c0] sm:$0xff] }
 0x5ab   : > { %v15557_v58 = vld [vmem:[#allocation2 + $0x1f0] sm:$0xff]  ;;  %v10315_v37 = vld [vmem:[%s16419_s1 + $0x2c8] sm:$0xff] }
 0x5ac   : > { %v15553_v28 = vld [vmem:[#allocation2 + $0x1e8] sm:$0xff]  ;;  %16603 = vst [vmem:[#allocation21_spill] sm:$0xff] %v15557_v58 }
 0x5ad   : > { %16602 = vst [vmem:[#allocation20_spill] sm:$0xff] %v15553_v28  ;;  %11708 = vmatprep.mubr.msk.f32.mxu1 %vm169_vm0, %v15553_v28  ;;  %v15663_v62 = vld [vmem:[#allocation2 + $0x16f] sm:$0xff]  ;;  %v15691_v27 = vld [vmem:[#allocation2 + $0x1e7] sm:$0xff]  ;;  %v12259_v28 = vpack.c.bf16 %v10281_v59, %v10280_v45 }
 0x5ae   : > { %11709 = vmatmul.mubr.msk.f32.gmra.mrb[30].mxu1 %vm169_vm0, %v15557_v58  ;;  %v15671_v52 = vld [vmem:[#allocation2 + $0x18f] sm:$0xff] }
 0x5af   : > { %11719 = vmatprep.mubr.msk.f32.mxu1 %vm169_vm0, %v6241_v9  ;;  %v15679_v0 = vld [vmem:[#allocation2 + $0x1af] sm:$0xff]  ;;  %v15683_v9 = vld [vmem:[#allocation2 + $0x1c7] sm:$0xff] }
 0x5b0   : > { %v15687_v46 = vld [vmem:[#allocation2 + $0x1cf] sm:$0xff] }
 0x5b1   : > { %v6957_v58 = vld [vmem:[#allocation2 + $0x11] sm:$0xff]  ;;  %v15713_v38 = vld [vmem:[#allocation2 + $0x29] sm:$0xff] }
 0x5b2   : > { %11720 = vmatmul.mubr.msk.f32.vlgmr.msra.gmra.mrb[0].mxu1 %vm169_vm0, %v6242_v55  ;;  %v6956_v55 = vld [vmem:[#allocation2 + $0x9] sm:$0xff]  ;;  %v15720_v45 = vld [vmem:[#allocation2 + $0x31] sm:$0xff] }
 0x5b3   : > { %12250 = vmatpush3.bf16.msra.mxu1 %v15369_v20  ;;  %11722 = vmatprep.mubr.msk.f32.mxu1 %vm169_vm0, %v15575_v36  ;;  %v15591_v20 = vld [vmem:[#allocation2 + $0x4f] sm:$0xff] }
 0x5b4   : > { %12252 = vmatprep.subr.bf16.mxu1 %v12251_v17  ;;  %v15724_v59 = vld [vmem:[#allocation2 + $0x49] sm:$0xff] }
 0x5b5   : > { %16604 = vst [vmem:[#allocation22_spill] sm:$0xff] %v15724_v59 }
 0x5b6   : > { %11723 = vmatmul.mubr.msk.f32.gmra.mrb[2].mxu1 %vm169_vm0, %v15582_v42 }
 0x5b7   : > { %11725 = vmatprep.mubr.msk.f32.mxu1 %vm169_vm0, %v15586_v41  ;;  %12254 = vmatpush3.bf16.msra.mxu1 %v12251_v17  ;;  %v15695_v17 = vld [vmem:[#allocation2 + $0x1ef] sm:$0xff] }
 0x5b8   : > { %12256 = vmatprep.subr.bf16.mxu1 %v15580_v40 }
 0x5ba   : > { %11726 = vmatmul.mubr.msk.f32.gmra.mrb[4].mxu1 %vm169_vm0, %v15591_v20 }
 0x5bb   : > { %11728 = vmatprep.mubr.msk.f32.mxu1 %vm169_vm0, %v15595_v21 }
 0x5be   : > { %11729 = vmatmul.mubr.msk.f32.gmra.mrb[6].mxu1 %vm169_vm0, %v15599_v61 }
 0x5bf   : > { %11731 = vmatprep.mubr.msk.f32.mxu1 %vm169_vm0, %v15603_v6 }
 0x5c2   : > { %11732 = vmatmul.mubr.msk.f32.gmra.mrb[8].mxu1 %vm169_vm0, %v15607_v57 }
 0x5c3   : > { %11734 = vmatprep.mubr.msk.f32.mxu1 %vm169_vm0, %v15611_v32 }
 0x5c6   : > { %11735 = vmatmul.mubr.msk.f32.gmra.mrb[10].mxu1 %vm169_vm0, %v15615_v31 }
 0x5c7   : > { %11737 = vmatprep.mubr.msk.f32.mxu1 %vm169_vm0, %v15619_v24 }
 0x5ca   : > { %11738 = vmatmul.mubr.msk.f32.gmra.mrb[12].mxu1 %vm169_vm0, %v15623_v63 }
 0x5cb   : > { %11740 = vmatprep.mubr.msk.f32.mxu1 %vm169_vm0, %v15627_v47 }
 0x5ce   : > { %11741 = vmatmul.mubr.msk.f32.gmra.mrb[14].mxu1 %vm169_vm0, %v15631_v29 }
 0x5cf   : > { %11743 = vmatprep.mubr.msk.f32.mxu1 %vm169_vm0, %v15635_v15 }
 0x5d2   : > { %11744 = vmatmul.mubr.msk.f32.gmra.mrb[16].mxu1 %vm169_vm0, %v15639_v56 }
 0x5d3   : > { %11746 = vmatprep.mubr.msk.f32.mxu1 %vm169_vm0, %v15643_v60 }
 0x5d6   : > { %11747 = vmatmul.mubr.msk.f32.gmra.mrb[18].mxu1 %vm169_vm0, %v15647_v23 }
 0x5d7   : > { %11749 = vmatprep.mubr.msk.f32.mxu1 %vm169_vm0, %v15651_v33 }
 0x5da   : > { %11750 = vmatmul.mubr.msk.f32.gmra.mrb[20].mxu1 %vm169_vm0, %v15655_v35 }
 0x5db   : > { %11752 = vmatprep.mubr.msk.f32.mxu1 %vm169_vm0, %v15659_v18 }
 0x5de   : > { %11753 = vmatmul.mubr.msk.f32.gmra.mrb[22].mxu1 %vm169_vm0, %v15663_v62 }
 0x5df   : > { %11755 = vmatprep.mubr.msk.f32.mxu1 %vm169_vm0, %v15667_v39 }
 0x5e2   : > { %11756 = vmatmul.mubr.msk.f32.gmra.mrb[24].mxu1 %vm169_vm0, %v15671_v52 }
 0x5e3   : > { %11758 = vmatprep.mubr.msk.f32.mxu1 %vm169_vm0, %v15675_v12 }
 0x5e6   : > { %11759 = vmatmul.mubr.msk.f32.gmra.mrb[26].mxu1 %vm169_vm0, %v15679_v0 }
 0x5e7   : > { %11761 = vmatprep.mubr.msk.f32.mxu1 %vm169_vm0, %v15683_v9 }
 0x5ea   : > { %11762 = vmatmul.mubr.msk.f32.gmra.mrb[28].mxu1 %vm169_vm0, %v15687_v46 }
 0x5eb   : > { %11764 = vmatprep.mubr.msk.f32.mxu1 %vm169_vm0, %v15691_v27 }
 0x5ee   : > { %11765 = vmatmul.mubr.msk.f32.gmra.mrb[30].mxu1 %vm169_vm0, %v15695_v17 }
 0x5ef   : > { %11775 = vmatprep.mubr.msk.f32.mxu1 %vm169_vm0, %v6956_v55  ;;  %v15718_v55 = vpack.c.bf16 %v10315_v37, %v10314_v50  ;;  %v15733_v37 = vld [vmem:[#allocation2 + $0x69] sm:$0xff]  ;;  %v15737_v50 = vld [vmem:[#allocation2 + $0x71] sm:$0xff] }
 0x5f0   : > { %16606 = vst [vmem:[#allocation24_spill] sm:$0xff] %v15733_v37  ;;  %16607 = vst [vmem:[#allocation25_spill] sm:$0xff] %v15737_v50 }
 0x5f2   : > { %11776 = vmatmul.mubr.msk.f32.vlgmr.msra.gmra.mrb[0].mxu1 %vm169_vm0, %v6957_v58  ;;  %v15729_v58 = vld [vmem:[#allocation2 + $0x51] sm:$0xff] }
 0x5f3   : > { %12258 = vmatpush3.bf16.msra.mxu1 %v15580_v40  ;;  %11778 = vmatprep.mubr.msk.f32.mxu1 %vm169_vm0, %v15713_v38  ;;  %16605 = vst [vmem:[#allocation23_spill] sm:$0xff] %v15729_v58  ;;  %v15741_v40 = vld [vmem:[#allocation2 + $0x89] sm:$0xff] }
 0x5f4   : > { %12260 = vmatprep.subr.bf16.mxu1 %v12259_v28  ;;  %16608 = vst [vmem:[#allocation26_spill] sm:$0xff] %v15741_v40 }
 0x5f6   : > { %11779 = vmatmul.mubr.msk.f32.gmra.mrb[2].mxu1 %vm169_vm0, %v15720_v45 }
 0x5f7   : > { %11781 = vmatprep.mubr.msk.f32.mxu1 %vm169_vm0, %v15724_v59  ;;  %12262 = vmatpush3.bf16.msra.mxu1 %v12259_v28  ;;  %v15745_v28 = vld [vmem:[#allocation2 + $0x91] sm:$0xff]  ;;  %v10351_v59 = vld [vmem:[%s16419_s1 + $0x2e8] sm:$0xff] }
 0x5f8   : > { %12264 = vmatprep.subr.bf16.mxu1 %v15718_v55  ;;  %16609 = vst [vmem:[#allocation27_spill] sm:$0xff] %v15745_v28 }
 0x5fa   : > { %11782 = vmatmul.mubr.msk.f32.gmra.mrb[4].mxu1 %vm169_vm0, %v15729_v58  ;;  %v15749_v58 = vld [vmem:[#allocation2 + $0xa9] sm:$0xff] }
 0x5fb   : > { %11784 = vmatprep.mubr.msk.f32.mxu1 %vm169_vm0, %v15733_v37  ;;  %16610 = vst [vmem:[#allocation28_spill] sm:$0xff] %v15749_v58  ;;  %v15753_v37 = vld [vmem:[#allocation2 + $0xb1] sm:$0xff] }
 0x5fc   : > { %16611 = vst [vmem:[#allocation29_spill] sm:$0xff] %v15753_v37 }
 0x5fe   : > { %11785 = vmatmul.mubr.msk.f32.gmra.mrb[6].mxu1 %vm169_vm0, %v15737_v50  ;;  %v15757_v50 = vld [vmem:[#allocation2 + $0xc9] sm:$0xff] }
 0x5ff   : > { %11787 = vmatprep.mubr.msk.f32.mxu1 %vm169_vm0, %v15741_v40  ;;  %16612 = vst [vmem:[#allocation30_spill] sm:$0xff] %v15757_v50  ;;  %v15761_v40 = vld [vmem:[#allocation2 + $0xd1] sm:$0xff] }
 0x600   : > { %16613 = vst [vmem:[#allocation9_spill] sm:$0xff] %v15761_v40 }
 0x602   : > { %11788 = vmatmul.mubr.msk.f32.gmra.mrb[8].mxu1 %vm169_vm0, %v15745_v28  ;;  %v15765_v28 = vld [vmem:[#allocation2 + $0xe9] sm:$0xff] }
 0x603   : > { %11790 = vmatprep.mubr.msk.f32.mxu1 %vm169_vm0, %v15749_v58  ;;  %16614 = vst [vmem:[#allocation10_spill] sm:$0xff] %v15765_v28  ;;  %v15769_v58 = vld [vmem:[#allocation2 + $0xf1] sm:$0xff] }
 0x604   : > { %16615 = vst [vmem:[#allocation11_spill] sm:$0xff] %v15769_v58 }
 0x606   : > { %11791 = vmatmul.mubr.msk.f32.gmra.mrb[10].mxu1 %vm169_vm0, %v15753_v37  ;;  %v15773_v37 = vld [vmem:[#allocation2 + $0x109] sm:$0xff] }
 0x607   : > { %11793 = vmatprep.mubr.msk.f32.mxu1 %vm169_vm0, %v15757_v50  ;;  %16616 = vst [vmem:[#allocation12_spill] sm:$0xff] %v15773_v37  ;;  %v15777_v50 = vld [vmem:[#allocation2 + $0x111] sm:$0xff] }
 0x608   : > { %16617 = vst [vmem:[#allocation14_spill] sm:$0xff] %v15777_v50 }
 0x60a   : > { %11794 = vmatmul.mubr.msk.f32.gmra.mrb[12].mxu1 %vm169_vm0, %v15761_v40  ;;  %v15781_v40 = vld [vmem:[#allocation2 + $0x129] sm:$0xff] }
 0x60b   : > { %11796 = vmatprep.mubr.msk.f32.mxu1 %vm169_vm0, %v15765_v28  ;;  %16618 = vst [vmem:[#allocation16_spill] sm:$0xff] %v15781_v40  ;;  %v15785_v28 = vld [vmem:[#allocation2 + $0x131] sm:$0xff] }
 0x60c   : > { %16619 = vst [vmem:[#allocation17_spill] sm:$0xff] %v15785_v28 }
 0x60e   : > { %11797 = vmatmul.mubr.msk.f32.gmra.mrb[14].mxu1 %vm169_vm0, %v15769_v58  ;;  %v15789_v58 = vld [vmem:[#allocation2 + $0x149] sm:$0xff] }
 0x60f   : > { %11799 = vmatprep.mubr.msk.f32.mxu1 %vm169_vm0, %v15773_v37  ;;  %16620 = vst [vmem:[#allocation18_spill] sm:$0xff] %v15789_v58  ;;  %v15793_v37 = vld [vmem:[#allocation2 + $0x151] sm:$0xff] }
 0x610   : > { %16621 = vst [vmem:[#allocation19_spill] sm:$0xff] %v15793_v37 }
 0x612   : > { %11800 = vmatmul.mubr.msk.f32.gmra.mrb[16].mxu1 %vm169_vm0, %v15777_v50  ;;  %v15797_v50 = vld [vmem:[#allocation2 + $0x169] sm:$0xff] }
 0x613   : > { %11802 = vmatprep.mubr.msk.f32.mxu1 %vm169_vm0, %v15781_v40  ;;  %16622 = vst [vmem:[#allocation7_spill] sm:$0xff] %v15797_v50  ;;  %v15801_v40 = vld [vmem:[#allocation2 + $0x171] sm:$0xff] }
 0x614   : > { %16623 = vst [vmem:[#allocation8_spill] sm:$0xff] %v15801_v40 }
 0x616   : > { %11803 = vmatmul.mubr.msk.f32.gmra.mrb[18].mxu1 %vm169_vm0, %v15785_v28  ;;  %v15805_v28 = vld [vmem:[#allocation2 + $0x189] sm:$0xff] }
 0x617   : > { %11805 = vmatprep.mubr.msk.f32.mxu1 %vm169_vm0, %v15789_v58  ;;  %16624 = vst [vmem:[#allocation31_spill] sm:$0xff] %v15805_v28  ;;  %v15809_v58 = vld [vmem:[#allocation2 + $0x191] sm:$0xff] }
 0x618   : > { %16625 = vst [vmem:[#allocation32_spill] sm:$0xff] %v15809_v58 }
 0x61a   : > { %11806 = vmatmul.mubr.msk.f32.gmra.mrb[20].mxu1 %vm169_vm0, %v15793_v37  ;;  %v15813_v37 = vld [vmem:[#allocation2 + $0x1a9] sm:$0xff] }
 0x61b   : > { %11808 = vmatprep.mubr.msk.f32.mxu1 %vm169_vm0, %v15797_v50  ;;  %16626 = vst [vmem:[#allocation33_spill] sm:$0xff] %v15813_v37  ;;  %v15817_v50 = vld [vmem:[#allocation2 + $0x1b1] sm:$0xff] }
 0x61c   : > { %16627 = vst [vmem:[#allocation34_spill] sm:$0xff] %v15817_v50 }
 0x61e   : > { %11809 = vmatmul.mubr.msk.f32.gmra.mrb[22].mxu1 %vm169_vm0, %v15801_v40  ;;  %v15821_v40 = vld [vmem:[#allocation2 + $0x1c9] sm:$0xff] }
 0x61f   : > { %11811 = vmatprep.mubr.msk.f32.mxu1 %vm169_vm0, %v15805_v28  ;;  %16628 = vst [vmem:[#allocation35_spill] sm:$0xff] %v15821_v40  ;;  %v15825_v28 = vld [vmem:[#allocation2 + $0x1d1] sm:$0xff] }
 0x620   : > { %16629 = vst [vmem:[#allocation36_spill] sm:$0xff] %v15825_v28 }
 0x622   : > { %11812 = vmatmul.mubr.msk.f32.gmra.mrb[24].mxu1 %vm169_vm0, %v15809_v58  ;;  %v15829_v58 = vld [vmem:[#allocation2 + $0x1e9] sm:$0xff] }
 0x623   : > { %11814 = vmatprep.mubr.msk.f32.mxu1 %vm169_vm0, %v15813_v37  ;;  %16630 = vst [vmem:[#allocation37_spill] sm:$0xff] %v15829_v58  ;;  %v15833_v37 = vld [vmem:[#allocation2 + $0x1f1] sm:$0xff] }
 0x624   : > { %16631 = vst [vmem:[#allocation38_spill] sm:$0xff] %v15833_v37 }
 0x626   : > { %11815 = vmatmul.mubr.msk.f32.gmra.mrb[26].mxu1 %vm169_vm0, %v15817_v50  ;;  %v10316_v50 = vld [vmem:[%s16419_s1 + $0x2d0] sm:$0xff] }
 0x627   : > { %11817 = vmatprep.mubr.msk.f32.mxu1 %vm169_vm0, %v15821_v40  ;;  %v10317_v40 = vld [vmem:[%s16419_s1 + $0x2d8] sm:$0xff] }
 0x62a   : > { %11818 = vmatmul.mubr.msk.f32.gmra.mrb[28].mxu1 %vm169_vm0, %v15825_v28  ;;  %v12267_v28 = vpack.c.bf16 %v10317_v40, %v10316_v50  ;;  %v10386_v50 = vld [vmem:[%s16419_s1 + $0x300] sm:$0xff]  ;;  %v10387_v40 = vld [vmem:[%s16419_s1 + $0x308] sm:$0xff] }
 0x62b   : > { %11820 = vmatprep.mubr.msk.f32.mxu1 %vm169_vm0, %v15829_v58  ;;  %v10350_v58 = vld [vmem:[%s16419_s1 + $0x2e0] sm:$0xff] }
 0x62e   : > { %11821 = vmatmul.mubr.msk.f32.gmra.mrb[30].mxu1 %vm169_vm0, %v15833_v37  ;;  %v12271_v37 = vpack.c.bf16 %v10351_v59, %v10350_v58  ;;  %v10353_v59 = vld [vmem:[%s16419_s1 + $0x2f8] sm:$0xff] }
 0x62f   : > { %11831 = vmatprep.mubr.msk.f32.mxu1 %vm169_vm0, %v15575_v36  ;;  %v15910_v36 = vld [vmem:[#allocation2 + $0x207] sm:$0xff] }
 0x632   : > { %11832 = vmatmul.mubr.msk.f32.vlgmr.msra.gmra.mrb[0].mxu1 %vm169_vm0, %v15582_v42  ;;  %v15914_v42 = vld [vmem:[#allocation2 + $0x20f] sm:$0xff] }
 0x633   : > { %12266 = vmatpush3.bf16.msra.mxu1 %v15718_v55  ;;  %11834 = vmatprep.mubr.msk.f32.mxu1 %vm169_vm0, %v15586_v41  ;;  %v10352_v55 = vld [vmem:[%s16419_s1 + $0x2f0] sm:$0xff] }
 0x634   : > { %12268 = vmatprep.subr.bf16.mxu1 %v12267_v28  ;;  %v12275_v58 = vpack.c.bf16 %v10353_v59, %v10352_v55  ;;  %v16651_v55 = vld [vmem:[#allocation16_spill] sm:$0xff]  ;;  %v16652_v59 = vld [vmem:[#allocation17_spill] sm:$0xff] }
 0x636   : > { %11835 = vmatmul.mubr.msk.f32.gmra.mrb[2].mxu1 %vm169_vm0, %v15591_v20 }
 0x637   : > { %11837 = vmatprep.mubr.msk.f32.mxu1 %vm169_vm0, %v15595_v21  ;;  %12270 = vmatpush3.bf16.msra.mxu1 %v12267_v28  ;;  %v12279_v28 = vpack.c.bf16 %v10387_v40, %v10386_v50  ;;  %v16654_v50 = vld [vmem:[#allocation19_spill] sm:$0xff] }
 0x638   : > { %12272 = vmatprep.subr.bf16.mxu1 %v12271_v37  ;;  %v16655_v40 = vld [vmem:[#allocation7_spill] sm:$0xff] }
 0x63a   : > { %11838 = vmatmul.mubr.msk.f32.gmra.mrb[4].mxu1 %vm169_vm0, %v15599_v61 }
 0x63b   : > { %11840 = vmatprep.mubr.msk.f32.mxu1 %vm169_vm0, %v15603_v6 }
 0x63e   : > { %11841 = vmatmul.mubr.msk.f32.gmra.mrb[6].mxu1 %vm169_vm0, %v15607_v57 }
 0x63f   : > { %11843 = vmatprep.mubr.msk.f32.mxu1 %vm169_vm0, %v15611_v32 }
 0x642   : > { %11844 = vmatmul.mubr.msk.f32.gmra.mrb[8].mxu1 %vm169_vm0, %v15615_v31 }
 0x643   : > { %11846 = vmatprep.mubr.msk.f32.mxu1 %vm169_vm0, %v15619_v24 }
 0x646   : > { %11847 = vmatmul.mubr.msk.f32.gmra.mrb[10].mxu1 %vm169_vm0, %v15623_v63 }
 0x647   : > { %11849 = vmatprep.mubr.msk.f32.mxu1 %vm169_vm0, %v15627_v47 }
 0x64a   : > { %11850 = vmatmul.mubr.msk.f32.gmra.mrb[12].mxu1 %vm169_vm0, %v15631_v29 }
 0x64b   : > { %11852 = vmatprep.mubr.msk.f32.mxu1 %vm169_vm0, %v15635_v15 }
 0x64e   : > { %11853 = vmatmul.mubr.msk.f32.gmra.mrb[14].mxu1 %vm169_vm0, %v15639_v56 }
 0x64f   : > { %11855 = vmatprep.mubr.msk.f32.mxu1 %vm169_vm0, %v15643_v60 }
 0x652   : > { %11856 = vmatmul.mubr.msk.f32.gmra.mrb[16].mxu1 %vm169_vm0, %v15647_v23 }
 0x653   : > { %11858 = vmatprep.mubr.msk.f32.mxu1 %vm169_vm0, %v15651_v33 }
 0x656   : > { %11859 = vmatmul.mubr.msk.f32.gmra.mrb[18].mxu1 %vm169_vm0, %v15655_v35 }
 0x657   : > { %11861 = vmatprep.mubr.msk.f32.mxu1 %vm169_vm0, %v15659_v18 }
 0x65a   : > { %11862 = vmatmul.mubr.msk.f32.gmra.mrb[20].mxu1 %vm169_vm0, %v15663_v62 }
 0x65b   : > { %11864 = vmatprep.mubr.msk.f32.mxu1 %vm169_vm0, %v15667_v39 }
 0x65e   : > { %11865 = vmatmul.mubr.msk.f32.gmra.mrb[22].mxu1 %vm169_vm0, %v15671_v52 }
 0x65f   : > { %11867 = vmatprep.mubr.msk.f32.mxu1 %vm169_vm0, %v15675_v12 }
 0x662   : > { %11868 = vmatmul.mubr.msk.f32.gmra.mrb[24].mxu1 %vm169_vm0, %v15679_v0 }
 0x663   : > { %11870 = vmatprep.mubr.msk.f32.mxu1 %vm169_vm0, %v15683_v9 }
 0x666   : > { %11871 = vmatmul.mubr.msk.f32.gmra.mrb[26].mxu1 %vm169_vm0, %v15687_v46 }
 0x667   : > { %11873 = vmatprep.mubr.msk.f32.mxu1 %vm169_vm0, %v15691_v27 }
 0x66a   : > { %11874 = vmatmul.mubr.msk.f32.gmra.mrb[28].mxu1 %vm169_vm0, %v15695_v17 }
 0x66b   : > { %11876 = vmatprep.mubr.msk.f32.mxu1 %vm169_vm0, %v15910_v36 }
 0x66e   : > { %11877 = vmatmul.mubr.msk.f32.gmra.mrb[30].mxu1 %vm169_vm0, %v15914_v42 }
 0x66f   : > { %11887 = vmatprep.mubr.msk.f32.mxu1 %vm169_vm0, %v15389_v51  ;;  %v16632_v51 = vld [vmem:[#allocation13_spill] sm:$0xff] }
 0x672   : > { %11888 = vmatmul.mubr.msk.f32.vlgmr.msra.gmra.mrb[0].mxu1 %vm169_vm0, %v15395_v43  ;;  %v16633_v43 = vld [vmem:[#allocation15_spill] sm:$0xff] }
 0x673   : > { %12274 = vmatpush3.bf16.msra.mxu1 %v12271_v37  ;;  %11890 = vmatprep.mubr.msk.f32.mxu1 %vm169_vm0, %v15401_v54  ;;  %v16634_v54 = vld [vmem:[#allocation6_spill] sm:$0xff] }
 0x674   : > { %12276 = vmatprep.subr.bf16.mxu1 %v12275_v58  ;;  %v16650_v37 = vld [vmem:[#allocation14_spill] sm:$0xff] }
 0x676   : > { %11891 = vmatmul.mubr.msk.f32.gmra.mrb[2].mxu1 %vm169_vm0, %v15407_v16  ;;  %v16635_v16 = vld [vmem:[#allocation20_spill] sm:$0xff] }
 0x677   : > { %11893 = vmatprep.mubr.msk.f32.mxu1 %vm169_vm0, %v15413_v11  ;;  %12278 = vmatpush3.bf16.msra.mxu1 %v12275_v58  ;;  %v16636_v11 = vld [vmem:[#allocation21_spill] sm:$0xff]  ;;  %v16653_v58 = vld [vmem:[#allocation18_spill] sm:$0xff] }
 0x678   : > { %12280 = vmatprep.subr.bf16.mxu1 %v12279_v28 }
 0x67a   : > { %11894 = vmatmul.mubr.msk.f32.gmra.mrb[4].mxu1 %vm169_vm0, %v15419_v19  ;;  %v15990_v19 = vld [vmem:[#allocation2 + $0x208] sm:$0xff] }
 0x67b   : > { %11896 = vmatprep.mubr.msk.f32.mxu1 %vm169_vm0, %v15425_v7  ;;  %v15994_v7 = vld [vmem:[#allocation2 + $0x210] sm:$0xff] }
 0x67e   : > { %11897 = vmatmul.mubr.msk.f32.gmra.mrb[6].mxu1 %vm169_vm0, %v15431_v3  ;;  %v10388_v3 = vld [vmem:[%s16419_s1 + $0x310] sm:$0xff] }
 0x67f   : > { %11899 = vmatprep.mubr.msk.f32.mxu1 %vm169_vm0, %v15437_v44  ;;  %v10389_v44 = vld [vmem:[%s16419_s1 + $0x318] sm:$0xff] }
 0x682   : > { %11900 = vmatmul.mubr.msk.f32.gmra.mrb[8].mxu1 %vm169_vm0, %v15443_v2  ;;  %v12283_v2 = vpack.c.bf16 %v10389_v44, %v10388_v3  ;;  %v16657_v3 = vld [vmem:[#allocation31_spill] sm:$0xff]  ;;  %v16658_v44 = vld [vmem:[#allocation32_spill] sm:$0xff] }
 0x683   : > { %11902 = vmatprep.mubr.msk.f32.mxu1 %vm169_vm0, %v15449_v13  ;;  %v10422_v13 = vld [vmem:[%s16419_s1 + $0x320] sm:$0xff] }
 0x686   : > { %11903 = vmatmul.mubr.msk.f32.gmra.mrb[10].mxu1 %vm169_vm0, %v15455_v14  ;;  %v10423_v14 = vld [vmem:[%s16419_s1 + $0x328] sm:$0xff] }
 0x687   : > { %11905 = vmatprep.mubr.msk.f32.mxu1 %vm169_vm0, %v15461_v1  ;;  %v16637_v1 = vld [vmem:[#allocation22_spill] sm:$0xff] }
 0x68a   : > { %11906 = vmatmul.mubr.msk.f32.gmra.mrb[12].mxu1 %vm169_vm0, %v15467_v53  ;;  %v12287_v53 = vpack.c.bf16 %v10423_v14, %v10422_v13  ;;  %v16660_v13 = vld [vmem:[#allocation34_spill] sm:$0xff]  ;;  %v16661_v14 = vld [vmem:[#allocation35_spill] sm:$0xff] }
 0x68b   : > { %11908 = vmatprep.mubr.msk.f32.mxu1 %vm169_vm0, %v15473_v26  ;;  %v16638_v26 = vld [vmem:[#allocation23_spill] sm:$0xff] }
 0x68e   : > { %11909 = vmatmul.mubr.msk.f32.gmra.mrb[14].mxu1 %vm169_vm0, %v15479_v34  ;;  %v16639_v34 = vld [vmem:[#allocation24_spill] sm:$0xff] }
 0x68f   : > { %11911 = vmatprep.mubr.msk.f32.mxu1 %vm169_vm0, %v15485_v49  ;;  %v16640_v49 = vld [vmem:[#allocation25_spill] sm:$0xff] }
 0x692   : > { %11912 = vmatmul.mubr.msk.f32.gmra.mrb[16].mxu1 %vm169_vm0, %v15491_v8  ;;  %v16641_v8 = vld [vmem:[#allocation26_spill] sm:$0xff] }
 0x693   : > { %11914 = vmatprep.mubr.msk.f32.mxu1 %vm169_vm0, %v15497_v22  ;;  %v16642_v22 = vld [vmem:[#allocation27_spill] sm:$0xff] }
 0x696   : > { %11915 = vmatmul.mubr.msk.f32.gmra.mrb[18].mxu1 %vm169_vm0, %v15503_v48  ;;  %v16643_v48 = vld [vmem:[#allocation28_spill] sm:$0xff] }
 0x697   : > { %11917 = vmatprep.mubr.msk.f32.mxu1 %vm169_vm0, %v15509_v10  ;;  %v16644_v10 = vld [vmem:[#allocation29_spill] sm:$0xff] }
 0x69a   : > { %11918 = vmatmul.mubr.msk.f32.gmra.mrb[20].mxu1 %vm169_vm0, %v15515_v30  ;;  %v16645_v30 = vld [vmem:[#allocation30_spill] sm:$0xff] }
 0x69b   : > { %11920 = vmatprep.mubr.msk.f32.mxu1 %vm169_vm0, %v15521_v4  ;;  %v16646_v4 = vld [vmem:[#allocation9_spill] sm:$0xff] }
 0x69e   : > { %11921 = vmatmul.mubr.msk.f32.gmra.mrb[22].mxu1 %vm169_vm0, %v15527_v25  ;;  %v16647_v25 = vld [vmem:[#allocation10_spill] sm:$0xff] }
 0x69f   : > { %11923 = vmatprep.mubr.msk.f32.mxu1 %vm169_vm0, %v15533_v5 }
 0x6a2   : > { %11924 = vmatmul.mubr.msk.f32.gmra.mrb[24].mxu1 %vm169_vm0, %v16632_v51 }
 0x6a3   : > { %11926 = vmatprep.mubr.msk.f32.mxu1 %vm169_vm0, %v16633_v43 }
 0x6a6   : > { %11927 = vmatmul.mubr.msk.f32.gmra.mrb[26].mxu1 %vm169_vm0, %v16634_v54 }
 0x6a7   : > { %11929 = vmatprep.mubr.msk.f32.mxu1 %vm169_vm0, %v16635_v16 }
 0x6aa   : > { %11930 = vmatmul.mubr.msk.f32.gmra.mrb[28].mxu1 %vm169_vm0, %v16636_v11 }
 0x6ab   : > { %11932 = vmatprep.mubr.msk.f32.mxu1 %vm169_vm0, %v15990_v19 }
 0x6ae   : > { %11933 = vmatmul.mubr.msk.f32.gmra.mrb[30].mxu1 %vm169_vm0, %v15994_v7 }
 0x6af   : > { %11943 = vmatprep.mubr.msk.f32.mxu1 %vm169_vm0, %v15713_v38  ;;  %v16648_v38 = vld [vmem:[#allocation11_spill] sm:$0xff] }
 0x6b2   : > { %11944 = vmatmul.mubr.msk.f32.vlgmr.msra.gmra.mrb[0].mxu1 %vm169_vm0, %v15720_v45  ;;  %v16649_v45 = vld [vmem:[#allocation12_spill] sm:$0xff] }
 0x6b3   : > { %12282 = vmatpush3.bf16.msra.mxu1 %v12279_v28  ;;  %11946 = vmatprep.mubr.msk.f32.mxu1 %vm169_vm0, %v16637_v1  ;;  %v16656_v28 = vld [vmem:[#allocation8_spill] sm:$0xff] }
 0x6b4   : > { %12284 = vmatprep.subr.bf16.mxu1 %v12283_v2 }
 0x6b6   : > { %11947 = vmatmul.mubr.msk.f32.gmra.mrb[2].mxu1 %vm169_vm0, %v16638_v26 }
 0x6b7   : > { %11949 = vmatprep.mubr.msk.f32.mxu1 %vm169_vm0, %v16639_v34  ;;  %12286 = vmatpush3.bf16.msra.mxu1 %v12283_v2  ;;  %v16659_v2 = vld [vmem:[#allocation33_spill] sm:$0xff] }
 0x6b8   : > { %12288 = vmatprep.subr.bf16.mxu1 %v12287_v53 }
 0x6ba   : > { %11950 = vmatmul.mubr.msk.f32.gmra.mrb[4].mxu1 %vm169_vm0, %v16640_v49 }
 0x6bb   : > { %11952 = vmatprep.mubr.msk.f32.mxu1 %vm169_vm0, %v16641_v8 }
 0x6be   : > { %11953 = vmatmul.mubr.msk.f32.gmra.mrb[6].mxu1 %vm169_vm0, %v16642_v22 }
 0x6bf   : > { %11955 = vmatprep.mubr.msk.f32.mxu1 %vm169_vm0, %v16643_v48 }
 0x6c2   : > { %11956 = vmatmul.mubr.msk.f32.gmra.mrb[8].mxu1 %vm169_vm0, %v16644_v10 }
 0x6c3   : > { %11958 = vmatprep.mubr.msk.f32.mxu1 %vm169_vm0, %v16645_v30 }
 0x6c6   : > { %11959 = vmatmul.mubr.msk.f32.gmra.mrb[10].mxu1 %vm169_vm0, %v16646_v4 }
 0x6c7   : > { %11961 = vmatprep.mubr.msk.f32.mxu1 %vm169_vm0, %v16647_v25 }
 0x6ca   : > { %11962 = vmatmul.mubr.msk.f32.gmra.mrb[12].mxu1 %vm169_vm0, %v16648_v38 }
 0x6cb   : > { %11964 = vmatprep.mubr.msk.f32.mxu1 %vm169_vm0, %v16649_v45 }
 0x6ce   : > { %11965 = vmatmul.mubr.msk.f32.gmra.mrb[14].mxu1 %vm169_vm0, %v16650_v37 }
 0x6cf   : > { %11967 = vmatprep.mubr.msk.f32.mxu1 %vm169_vm0, %v16651_v55 }
 0x6d2   : > { %11968 = vmatmul.mubr.msk.f32.gmra.mrb[16].mxu1 %vm169_vm0, %v16652_v59 }
 0x6d3   : > { %11970 = vmatprep.mubr.msk.f32.mxu1 %vm169_vm0, %v16653_v58 }
 0x6d6   : > { %11971 = vmatmul.mubr.msk.f32.gmra.mrb[18].mxu1 %vm169_vm0, %v16654_v50  ;;  %v16662_v50 = vld [vmem:[#allocation36_spill] sm:$0xff] }
 0x6d7   : > { %11973 = vmatprep.mubr.msk.f32.mxu1 %vm169_vm0, %v16655_v40  ;;  %v16663_v40 = vld [vmem:[#allocation37_spill] sm:$0xff] }
 0x6da   : > { %11974 = vmatmul.mubr.msk.f32.gmra.mrb[20].mxu1 %vm169_vm0, %v16656_v28  ;;  %v16664_v28 = vld [vmem:[#allocation38_spill] sm:$0xff] }
 0x6db   : > { %11976 = vmatprep.mubr.msk.f32.mxu1 %vm169_vm0, %v16657_v3  ;;  %v16070_v3 = vld [vmem:[#allocation2 + $0x209] sm:$0xff] }
 0x6dc   : > { %16665 = vst [vmem:[#allocation13_spill] sm:$0xff] %v16070_v3 }
 0x6de   : > { %11977 = vmatmul.mubr.msk.f32.gmra.mrb[22].mxu1 %vm169_vm0, %v16658_v44 }
 0x6df   : > { %11979 = vmatprep.mubr.msk.f32.mxu1 %vm169_vm0, %v16659_v2  ;;  %v16074_v2 = vld [vmem:[#allocation2 + $0x211] sm:$0xff] }
 0x6e0   : > { %16666 = vst [vmem:[#allocation15_spill] sm:$0xff] %v16074_v2 }
 0x6e2   : > { %11980 = vmatmul.mubr.msk.f32.gmra.mrb[24].mxu1 %vm169_vm0, %v16660_v13 }
 0x6e3   : > { %11982 = vmatprep.mubr.msk.f32.mxu1 %vm169_vm0, %v16661_v14  ;;  %v10424_v14 = vld [vmem:[%s16419_s1 + $0x330] sm:$0xff] }
 0x6e6   : > { %11983 = vmatmul.mubr.msk.f32.gmra.mrb[26].mxu1 %vm169_vm0, %v16662_v50  ;;  %v10425_v50 = vld [vmem:[%s16419_s1 + $0x338] sm:$0xff] }
 0x6e7   : > { %11985 = vmatprep.mubr.msk.f32.mxu1 %vm169_vm0, %v16663_v40  ;;  %v10459_v40 = vld [vmem:[%s16419_s1 + $0x348] sm:$0xff] }
 0x6ea   : > { %11986 = vmatmul.mubr.msk.f32.gmra.mrb[28].mxu1 %vm169_vm0, %v16664_v28  ;;  %v12291_v28 = vpack.c.bf16 %v10425_v50, %v10424_v14 }
 0x6eb   : > { %11988 = vmatprep.mubr.msk.f32.mxu1 %vm169_vm0, %v16070_v3  ;;  %v10458_v3 = vld [vmem:[%s16419_s1 + $0x340] sm:$0xff] }
 0x6ee   : > { %11989 = vmatmul.mubr.msk.f32.gmra.mrb[30].mxu1 %vm169_vm0, %v16074_v2  ;;  %v12295_v2 = vpack.c.bf16 %v10459_v40, %v10458_v3 }
 0x6ef   : > { %11999 = vmatprep.mubr.msk.f32.mxu1 %vm169_vm0, %v15586_v41  ;;  %v8542_v41 = vld [vmem:[#allocation2 + $0x227] sm:$0xff] }
 0x6f2   : > { %12000 = vmatmul.mubr.msk.f32.vlgmr.msra.gmra.mrb[0].mxu1 %vm169_vm0, %v15591_v20  ;;  %v8543_v20 = vld [vmem:[#allocation2 + $0x22f] sm:$0xff] }
 0x6f3   : > { %12290 = vmatpush3.bf16.msra.mxu1 %v12287_v53  ;;  %12002 = vmatprep.mubr.msk.f32.mxu1 %vm169_vm0, %v15595_v21  ;;  %v10460_v21 = vld [vmem:[%s16419_s1 + $0x350] sm:$0xff] }
 0x6f4   : > { %12292 = vmatprep.subr.bf16.mxu1 %v12291_v28  ;;  %v9320_v53 = vld [vmem:[#allocation2 + $0x229] sm:$0xff] }
 0x6f6   : > { %12003 = vmatmul.mubr.msk.f32.gmra.mrb[2].mxu1 %vm169_vm0, %v15599_v61  ;;  %v10461_v61 = vld [vmem:[%s16419_s1 + $0x358] sm:$0xff] }
 0x6f7   : > { %12005 = vmatprep.mubr.msk.f32.mxu1 %vm169_vm0, %v15603_v6  ;;  %12294 = vmatpush3.bf16.msra.mxu1 %v12291_v28  ;;  %v8901_v6 = vld [vmem:[#allocation2 + $0x48] sm:$0xff] }
 0x6f8   : > { %12296 = vmatprep.subr.bf16.mxu1 %v12295_v2 }
 0x6fa   : > { %12006 = vmatmul.mubr.msk.f32.gmra.mrb[4].mxu1 %vm169_vm0, %v15607_v57  ;;  %v12299_v57 = vpack.c.bf16 %v10461_v61, %v10460_v21 }
 0x6fb   : > { %12008 = vmatprep.mubr.msk.f32.mxu1 %vm169_vm0, %v15611_v32  ;;  %v8902_v32 = vld [vmem:[#allocation2 + $0x50] sm:$0xff] }
 0x6fe   : > { %12009 = vmatmul.mubr.msk.f32.gmra.mrb[6].mxu1 %vm169_vm0, %v15615_v31  ;;  %v8903_v31 = vld [vmem:[#allocation2 + $0x68] sm:$0xff] }
 0x6ff   : > { %12011 = vmatprep.mubr.msk.f32.mxu1 %vm169_vm0, %v15619_v24  ;;  %v8904_v24 = vld [vmem:[#allocation2 + $0x70] sm:$0xff] }
 0x702   : > { %12012 = vmatmul.mubr.msk.f32.gmra.mrb[8].mxu1 %vm169_vm0, %v15623_v63  ;;  %v8905_v63 = vld [vmem:[#allocation2 + $0x88] sm:$0xff] }
 0x703   : > { %12014 = vmatprep.mubr.msk.f32.mxu1 %vm169_vm0, %v15627_v47  ;;  %v8906_v47 = vld [vmem:[#allocation2 + $0x90] sm:$0xff] }
 0x706   : > { %12015 = vmatmul.mubr.msk.f32.gmra.mrb[10].mxu1 %vm169_vm0, %v15631_v29  ;;  %v8907_v29 = vld [vmem:[#allocation2 + $0xa8] sm:$0xff] }
 0x707   : > { %12017 = vmatprep.mubr.msk.f32.mxu1 %vm169_vm0, %v15635_v15  ;;  %v8908_v15 = vld [vmem:[#allocation2 + $0xb0] sm:$0xff] }
 0x70a   : > { %12018 = vmatmul.mubr.msk.f32.gmra.mrb[12].mxu1 %vm169_vm0, %v15639_v56  ;;  %v8909_v56 = vld [vmem:[#allocation2 + $0xc8] sm:$0xff] }
 0x70b   : > { %12020 = vmatprep.mubr.msk.f32.mxu1 %vm169_vm0, %v15643_v60  ;;  %v8910_v60 = vld [vmem:[#allocation2 + $0xd0] sm:$0xff] }
 0x70e   : > { %12021 = vmatmul.mubr.msk.f32.gmra.mrb[14].mxu1 %vm169_vm0, %v15647_v23  ;;  %v8911_v23 = vld [vmem:[#allocation2 + $0xe8] sm:$0xff] }
 0x70f   : > { %12023 = vmatprep.mubr.msk.f32.mxu1 %vm169_vm0, %v15651_v33  ;;  %v8912_v33 = vld [vmem:[#allocation2 + $0xf0] sm:$0xff] }
 0x712   : > { %12024 = vmatmul.mubr.msk.f32.gmra.mrb[16].mxu1 %vm169_vm0, %v15655_v35  ;;  %v8913_v35 = vld [vmem:[#allocation2 + $0x108] sm:$0xff] }
 0x713   : > { %12026 = vmatprep.mubr.msk.f32.mxu1 %vm169_vm0, %v15659_v18  ;;  %v8914_v18 = vld [vmem:[#allocation2 + $0x110] sm:$0xff] }
 0x716   : > { %12027 = vmatmul.mubr.msk.f32.gmra.mrb[18].mxu1 %vm169_vm0, %v15663_v62  ;;  %v8915_v62 = vld [vmem:[#allocation2 + $0x128] sm:$0xff] }
 0x717   : > { %12029 = vmatprep.mubr.msk.f32.mxu1 %vm169_vm0, %v15667_v39  ;;  %v8916_v39 = vld [vmem:[#allocation2 + $0x130] sm:$0xff] }
 0x71a   : > { %12030 = vmatmul.mubr.msk.f32.gmra.mrb[20].mxu1 %vm169_vm0, %v15671_v52  ;;  %v8917_v52 = vld [vmem:[#allocation2 + $0x148] sm:$0xff] }
 0x71b   : > { %12032 = vmatprep.mubr.msk.f32.mxu1 %vm169_vm0, %v15675_v12  ;;  %v8918_v12 = vld [vmem:[#allocation2 + $0x150] sm:$0xff] }
 0x71e   : > { %12033 = vmatmul.mubr.msk.f32.gmra.mrb[22].mxu1 %vm169_vm0, %v15679_v0  ;;  %v8919_v0 = vld [vmem:[#allocation2 + $0x168] sm:$0xff] }
 0x71f   : > { %12035 = vmatprep.mubr.msk.f32.mxu1 %vm169_vm0, %v15683_v9  ;;  %v8920_v9 = vld [vmem:[#allocation2 + $0x170] sm:$0xff] }
 0x722   : > { %12036 = vmatmul.mubr.msk.f32.gmra.mrb[24].mxu1 %vm169_vm0, %v15687_v46  ;;  %v8921_v46 = vld [vmem:[#allocation2 + $0x188] sm:$0xff] }
 0x723   : > { %12038 = vmatprep.mubr.msk.f32.mxu1 %vm169_vm0, %v15691_v27  ;;  %v8922_v27 = vld [vmem:[#allocation2 + $0x190] sm:$0xff] }
 0x726   : > { %12039 = vmatmul.mubr.msk.f32.gmra.mrb[26].mxu1 %vm169_vm0, %v15695_v17  ;;  %v8931_v17 = vld [vmem:[#allocation2 + $0x228] sm:$0xff] }
 0x727   : > { %12041 = vmatprep.mubr.msk.f32.mxu1 %vm169_vm0, %v15910_v36  ;;  %v16667_v36 = vld [vmem:[#allocation19_spill] sm:$0xff] }
 0x72a   : > { %12042 = vmatmul.mubr.msk.f32.gmra.mrb[28].mxu1 %vm169_vm0, %v15914_v42  ;;  %v16668_v42 = vld [vmem:[#allocation7_spill] sm:$0xff] }
 0x72b   : > { %12044 = vmatprep.mubr.msk.f32.mxu1 %vm169_vm0, %v8542_v41 }
 0x72e   : > { %12045 = vmatmul.mubr.msk.f32.gmra.mrb[30].mxu1 %vm169_vm0, %v8543_v20 }
 0x72f   : > { %12055 = vmatprep.mubr.msk.f32.mxu1 %vm169_vm0, %v8901_v6 }
 0x732   : > { %12056 = vmatmul.mubr.msk.f32.vlgmr.msra.gmra.mrb[0].mxu1 %vm169_vm0, %v8902_v32 }
 0x733   : > { %12298 = vmatpush3.bf16.msra.mxu1 %v12295_v2  ;;  %12058 = vmatprep.mubr.msk.f32.mxu1 %vm169_vm0, %v8903_v31 }
 0x734   : > { %12300 = vmatprep.subr.bf16.mxu1 %v12299_v57 }
 0x736   : > { %12059 = vmatmul.mubr.msk.f32.gmra.mrb[2].mxu1 %vm169_vm0, %v8904_v24 }
 0x737   : > { %12061 = vmatprep.mubr.msk.f32.mxu1 %vm169_vm0, %v8905_v63  ;;  %12302 = vmatpush3.bf16.msra.mxu1 %v12299_v57 }
 0x73a   : > { %12062 = vmatmul.mubr.msk.f32.gmra.mrb[4].mxu1 %vm169_vm0, %v8906_v47 }
 0x73b   : > { %12064 = vmatprep.mubr.msk.f32.mxu1 %vm169_vm0, %v8907_v29 }
 0x73e   : > { %12065 = vmatmul.mubr.msk.f32.gmra.mrb[6].mxu1 %vm169_vm0, %v8908_v15 }
 0x73f   : > { %12067 = vmatprep.mubr.msk.f32.mxu1 %vm169_vm0, %v8909_v56 }
 0x742   : > { %12068 = vmatmul.mubr.msk.f32.gmra.mrb[8].mxu1 %vm169_vm0, %v8910_v60 }
 0x743   : > { %12070 = vmatprep.mubr.msk.f32.mxu1 %vm169_vm0, %v8911_v23 }
 0x746   : > { %12071 = vmatmul.mubr.msk.f32.gmra.mrb[10].mxu1 %vm169_vm0, %v8912_v33 }
 0x747   : > { %12073 = vmatprep.mubr.msk.f32.mxu1 %vm169_vm0, %v8913_v35 }
 0x74a   : > { %12074 = vmatmul.mubr.msk.f32.gmra.mrb[12].mxu1 %vm169_vm0, %v8914_v18 }
 0x74b   : > { %12076 = vmatprep.mubr.msk.f32.mxu1 %vm169_vm0, %v8915_v62 }
 0x74e   : > { %12077 = vmatmul.mubr.msk.f32.gmra.mrb[14].mxu1 %vm169_vm0, %v8916_v39 }
 0x74f   : > { %12079 = vmatprep.mubr.msk.f32.mxu1 %vm169_vm0, %v8917_v52 }
 0x752   : > { %12080 = vmatmul.mubr.msk.f32.gmra.mrb[16].mxu1 %vm169_vm0, %v8918_v12 }
 0x753   : > { %12082 = vmatprep.mubr.msk.f32.mxu1 %vm169_vm0, %v8919_v0 }
 0x756   : > { %12083 = vmatmul.mubr.msk.f32.gmra.mrb[18].mxu1 %vm169_vm0, %v8920_v9 }
 0x757   : > { %12085 = vmatprep.mubr.msk.f32.mxu1 %vm169_vm0, %v8921_v46 }
 0x75a   : > { %12086 = vmatmul.mubr.msk.f32.gmra.mrb[20].mxu1 %vm169_vm0, %v8922_v27 }
 0x75b   : > { %12088 = vmatprep.mubr.msk.f32.mxu1 %vm169_vm0, %v15533_v5  ;;  %v8932_v5 = vld [vmem:[#allocation2 + $0x230] sm:$0xff] }
 0x75e   : > { %12089 = vmatmul.mubr.msk.f32.gmra.mrb[22].mxu1 %vm169_vm0, %v16632_v51  ;;  %v16669_v51 = vld [vmem:[#allocation8_spill] sm:$0xff] }
 0x75f   : > { %12091 = vmatprep.mubr.msk.f32.mxu1 %vm169_vm0, %v16633_v43  ;;  %v16670_v43 = vld [vmem:[#allocation31_spill] sm:$0xff] }
 0x762   : > { %12092 = vmatmul.mubr.msk.f32.gmra.mrb[24].mxu1 %vm169_vm0, %v16634_v54  ;;  %v16671_v54 = vld [vmem:[#allocation33_spill] sm:$0xff] }
 0x763   : > { %12094 = vmatprep.mubr.msk.f32.mxu1 %vm169_vm0, %v16635_v16  ;;  %v16672_v16 = vld [vmem:[#allocation35_spill] sm:$0xff] }
 0x766   : > { %12095 = vmatmul.mubr.msk.f32.gmra.mrb[26].mxu1 %vm169_vm0, %v16636_v11  ;;  %v16673_v11 = vld [vmem:[#allocation36_spill] sm:$0xff] }
 0x767   : > { %12097 = vmatprep.mubr.msk.f32.mxu1 %vm169_vm0, %v15990_v19  ;;  %v16674_v19 = vld [vmem:[#allocation37_spill] sm:$0xff] }
 0x76a   : > { %12098 = vmatmul.mubr.msk.f32.gmra.mrb[28].mxu1 %vm169_vm0, %v15994_v7  ;;  %v16675_v7 = vld [vmem:[#allocation38_spill] sm:$0xff] }
 0x76b   : > { %12100 = vmatprep.mubr.msk.f32.mxu1 %vm169_vm0, %v8931_v17 }
 0x76e   : > { %12101 = vmatmul.mubr.msk.f32.gmra.mrb[30].mxu1 %vm169_vm0, %v8932_v5 }
 0x76f   : > { %12111 = vmatprep.mubr.msk.f32.mxu1 %vm169_vm0, %v16637_v1  ;;  %v16676_v1 = vld [vmem:[#allocation13_spill] sm:$0xff] }
 0x772   : > { %12112 = vmatmul.mubr.msk.f32.vlgmr.msra.gmra.mrb[0].mxu1 %vm169_vm0, %v16638_v26  ;;  %v16677_v26 = vld [vmem:[#allocation15_spill] sm:$0xff] }
 0x773   : > { %12114 = vmatprep.mubr.msk.f32.mxu1 %vm169_vm0, %v16639_v34  ;;  %v9321_v34 = vld [vmem:[#allocation2 + $0x231] sm:$0xff] }
 0x776   : > { %12115 = vmatmul.mubr.msk.f32.gmra.mrb[2].mxu1 %vm169_vm0, %v16640_v49  ;;  %v16266_v49 = vld [vmem:[%s16420_s2 + $0x2] ss:$0 sm:$0xff] }
 0x777   : > { %12117 = vmatprep.mubr.msk.f32.mxu1 %vm169_vm0, %v16641_v8 }
 0x77a   : > { %12118 = vmatmul.mubr.msk.f32.gmra.mrb[4].mxu1 %vm169_vm0, %v16642_v22 }
 0x77b   : > { %12120 = vmatprep.mubr.msk.f32.mxu1 %vm169_vm0, %v16643_v48 }
 0x77e   : > { %12121 = vmatmul.mubr.msk.f32.gmra.mrb[6].mxu1 %vm169_vm0, %v16644_v10 }
 0x77f   : > { %12123 = vmatprep.mubr.msk.f32.mxu1 %vm169_vm0, %v16645_v30 }
 0x782   : > { %12124 = vmatmul.mubr.msk.f32.gmra.mrb[8].mxu1 %vm169_vm0, %v16646_v4 }
 0x783   : > { %12126 = vmatprep.mubr.msk.f32.mxu1 %vm169_vm0, %v16647_v25 }
 0x786   : > { %12127 = vmatmul.mubr.msk.f32.gmra.mrb[10].mxu1 %vm169_vm0, %v16648_v38 }
 0x787   : > { %12129 = vmatprep.mubr.msk.f32.mxu1 %vm169_vm0, %v16649_v45 }
 0x78a   : > { %12130 = vmatmul.mubr.msk.f32.gmra.mrb[12].mxu1 %vm169_vm0, %v16650_v37 }
 0x78b   : > { %12132 = vmatprep.mubr.msk.f32.mxu1 %vm169_vm0, %v16651_v55 }
 0x78e   : > { %12133 = vmatmul.mubr.msk.f32.gmra.mrb[14].mxu1 %vm169_vm0, %v16652_v59 }
 0x78f   : > { %12135 = vmatprep.mubr.msk.f32.mxu1 %vm169_vm0, %v16653_v58 }
 0x792   : > { %12136 = vmatmul.mubr.msk.f32.gmra.mrb[16].mxu1 %vm169_vm0, %v16667_v36 }
 0x793   : > { %12138 = vmatprep.mubr.msk.f32.mxu1 %vm169_vm0, %v16668_v42 }
 0x796   : > { %12139 = vmatmul.mubr.msk.f32.gmra.mrb[18].mxu1 %vm169_vm0, %v16669_v51 }
 0x797   : > { %12141 = vmatprep.mubr.msk.f32.mxu1 %vm169_vm0, %v16670_v43 }
 0x79a   : > { %12142 = vmatmul.mubr.msk.f32.gmra.mrb[20].mxu1 %vm169_vm0, %v16658_v44 }
 0x79b   : > { %12144 = vmatprep.mubr.msk.f32.mxu1 %vm169_vm0, %v16671_v54 }
 0x79e   : > { %12145 = vmatmul.mubr.msk.f32.gmra.mrb[22].mxu1 %vm169_vm0, %v16660_v13 }
 0x79f   : > { %12147 = vmatprep.mubr.msk.f32.mxu1 %vm169_vm0, %v16672_v16 }
 0x7a2   : > { %12148 = vmatmul.mubr.msk.f32.gmra.mrb[24].mxu1 %vm169_vm0, %v16673_v11 }
 0x7a3   : > { %12150 = vmatprep.mubr.msk.f32.mxu1 %vm169_vm0, %v16674_v19 }
 0x7a6   : > { %12151 = vmatmul.mubr.msk.f32.gmra.mrb[26].mxu1 %vm169_vm0, %v16675_v7 }
 0x7a7   : > { %12153 = vmatprep.mubr.msk.f32.mxu1 %vm169_vm0, %v16676_v1 }
 0x7aa   : > { %12154 = vmatmul.mubr.msk.f32.gmra.mrb[28].mxu1 %vm169_vm0, %v16677_v26 }
 0x7ab   : > { %12156 = vmatprep.mubr.msk.f32.mxu1 %vm169_vm0, %v9320_v53 }
 0x7ae   : > { %12157 = vmatmul.mubr.msk.f32.gmra.mrb[30].mxu1 %vm169_vm0, %v9321_v34 }
 0x845   : > { %v12113_v8 = vpop.f32.mrb[0].mxu1 }
 0x846   : > { %v9688_v22 = vadd.f32 %v12113_v8, %v16266_v49  ;;  %v9488_v48 = vpop.f32.mrb[1].mxu1 }
 0x847   : > { %v9687_v10 = vadd.f32 %v16266_v49, %v9488_v48 }
 0x848   : > { %9720 = vst.msk [vmem:[%s16270_s20 + $0x8] sm:$0xff] %vm169_vm0, %v9688_v22 }
 0x849   : > { %9719 = vst.msk [vmem:[%s16270_s20] sm:$0xff] %vm169_vm0, %v9687_v10  ;;  %v12116_v30 = vpop.f32.mrb[2].mxu1 }
 0x84a   : > { %v9690_v4 = vadd.f32 %v12116_v30, %v16266_v49  ;;  %v9498_v25 = vpop.f32.mrb[3].mxu1 }
 0x84b   : > { %v9689_v38 = vadd.f32 %v16266_v49, %v9498_v25 }
 0x84c   : > { %9722 = vst.msk [vmem:[%s16270_s20 + $0x18] sm:$0xff] %vm169_vm0, %v9690_v4 }
 0x84d   : > { %9721 = vst.msk [vmem:[%s16270_s20 + $0x10] sm:$0xff] %vm169_vm0, %v9689_v38  ;;  %v12119_v45 = vpop.f32.mrb[4].mxu1 }
 0x84e   : > { %v9692_v37 = vadd.f32 %v12119_v45, %v16266_v49  ;;  %v9508_v55 = vpop.f32.mrb[5].mxu1 }
 0x84f   : > { %v9691_v59 = vadd.f32 %v16266_v49, %v9508_v55 }
 0x850   : > { %9724 = vst.msk [vmem:[%s16270_s20 + $0x28] sm:$0xff] %vm169_vm0, %v9692_v37 }
 0x851   : > { %9723 = vst.msk [vmem:[%s16270_s20 + $0x20] sm:$0xff] %vm169_vm0, %v9691_v59  ;;  %v12122_v58 = vpop.f32.mrb[6].mxu1 }
 0x852   : > { %v9694_v50 = vadd.f32 %v12122_v58, %v16266_v49  ;;  %v9518_v40 = vpop.f32.mrb[7].mxu1 }
 0x853   : > { %v9693_v28 = vadd.f32 %v16266_v49, %v9518_v40 }
 0x854   : > { %9726 = vst.msk [vmem:[%s16270_s20 + $0x38] sm:$0xff] %vm169_vm0, %v9694_v50 }
 0x855   : > { %9725 = vst.msk [vmem:[%s16270_s20 + $0x30] sm:$0xff] %vm169_vm0, %v9693_v28  ;;  %v12125_v3 = vpop.f32.mrb[8].mxu1 }
 0x856   : > { %v9696_v44 = vadd.f32 %v12125_v3, %v16266_v49  ;;  %v9528_v2 = vpop.f32.mrb[9].mxu1 }
 0x857   : > { %v9695_v13 = vadd.f32 %v16266_v49, %v9528_v2 }
 0x858   : > { %9728 = vst.msk [vmem:[%s16270_s20 + $0x48] sm:$0xff] %vm169_vm0, %v9696_v44 }
 0x859   : > { %9727 = vst.msk [vmem:[%s16270_s20 + $0x40] sm:$0xff] %vm169_vm0, %v9695_v13  ;;  %v12128_v14 = vpop.f32.mrb[10].mxu1 }
 0x85a   : > { %v9698_v41 = vadd.f32 %v12128_v14, %v16266_v49  ;;  %v9538_v20 = vpop.f32.mrb[11].mxu1 }
 0x85b   : > { %v9697_v21 = vadd.f32 %v16266_v49, %v9538_v20 }
 0x85c   : > { %9730 = vst.msk [vmem:[%s16270_s20 + $0x58] sm:$0xff] %vm169_vm0, %v9698_v41 }
 0x85d   : > { %9729 = vst.msk [vmem:[%s16270_s20 + $0x50] sm:$0xff] %vm169_vm0, %v9697_v21  ;;  %v12131_v61 = vpop.f32.mrb[12].mxu1 }
 0x85e   : > { %v9700_v6 = vadd.f32 %v12131_v61, %v16266_v49  ;;  %v9548_v57 = vpop.f32.mrb[13].mxu1 }
 0x85f   : > { %v9699_v32 = vadd.f32 %v16266_v49, %v9548_v57 }
 0x860   : > { %9732 = vst.msk [vmem:[%s16270_s20 + $0x68] sm:$0xff] %vm169_vm0, %v9700_v6 }
 0x861   : > { %9731 = vst.msk [vmem:[%s16270_s20 + $0x60] sm:$0xff] %vm169_vm0, %v9699_v32  ;;  %v12134_v31 = vpop.f32.mrb[14].mxu1 }
 0x862   : > { %v9702_v24 = vadd.f32 %v12134_v31, %v16266_v49  ;;  %v9558_v63 = vpop.f32.mrb[15].mxu1 }
 0x863   : > { %v9701_v47 = vadd.f32 %v16266_v49, %v9558_v63 }
 0x864   : > { %9734 = vst.msk [vmem:[%s16270_s20 + $0x78] sm:$0xff] %vm169_vm0, %v9702_v24 }
 0x865   : > { %9733 = vst.msk [vmem:[%s16270_s20 + $0x70] sm:$0xff] %vm169_vm0, %v9701_v47  ;;  %v12137_v29 = vpop.f32.mrb[16].mxu1 }
 0x866   : > { %v9704_v15 = vadd.f32 %v12137_v29, %v16266_v49  ;;  %v9568_v56 = vpop.f32.mrb[17].mxu1 }
 0x867   : > { %v9703_v60 = vadd.f32 %v16266_v49, %v9568_v56 }
 0x868   : > { %9736 = vst.msk [vmem:[%s16270_s20 + $0x88] sm:$0xff] %vm169_vm0, %v9704_v15 }
 0x869   : > { %9735 = vst.msk [vmem:[%s16270_s20 + $0x80] sm:$0xff] %vm169_vm0, %v9703_v60  ;;  %v12140_v23 = vpop.f32.mrb[18].mxu1 }
 0x86a   : > { %v9706_v33 = vadd.f32 %v12140_v23, %v16266_v49  ;;  %v9578_v35 = vpop.f32.mrb[19].mxu1 }
 0x86b   : > { %v9705_v18 = vadd.f32 %v16266_v49, %v9578_v35 }
 0x86c   : > { %9738 = vst.msk [vmem:[%s16270_s20 + $0x98] sm:$0xff] %vm169_vm0, %v9706_v33 }
 0x86d   : > { %9737 = vst.msk [vmem:[%s16270_s20 + $0x90] sm:$0xff] %vm169_vm0, %v9705_v18  ;;  %v12143_v62 = vpop.f32.mrb[20].mxu1 }
 0x86e   : > { %v9708_v39 = vadd.f32 %v12143_v62, %v16266_v49  ;;  %v9588_v52 = vpop.f32.mrb[21].mxu1 }
 0x86f   : > { %v9707_v12 = vadd.f32 %v16266_v49, %v9588_v52 }
 0x870   : > { %9740 = vst.msk [vmem:[%s16270_s20 + $0xa8] sm:$0xff] %vm169_vm0, %v9708_v39 }
 0x871   : > { %9739 = vst.msk [vmem:[%s16270_s20 + $0xa0] sm:$0xff] %vm169_vm0, %v9707_v12  ;;  %v12146_v0 = vpop.f32.mrb[22].mxu1 }
 0x872   : > { %v9710_v9 = vadd.f32 %v12146_v0, %v16266_v49  ;;  %v9598_v46 = vpop.f32.mrb[23].mxu1 }
 0x873   : > { %v9709_v27 = vadd.f32 %v16266_v49, %v9598_v46 }
 0x874   : > { %9742 = vst.msk [vmem:[%s16270_s20 + $0xb8] sm:$0xff] %vm169_vm0, %v9710_v9 }
 0x875   : > { %9741 = vst.msk [vmem:[%s16270_s20 + $0xb0] sm:$0xff] %vm169_vm0, %v9709_v27  ;;  %v12149_v17 = vpop.f32.mrb[24].mxu1 }
 0x876   : > { %v9712_v5 = vadd.f32 %v12149_v17, %v16266_v49  ;;  %v9608_v36 = vpop.f32.mrb[25].mxu1 }
 0x877   : > { %v9711_v42 = vadd.f32 %v16266_v49, %v9608_v36 }
 0x878   : > { %9744 = vst.msk [vmem:[%s16270_s20 + $0xc8] sm:$0xff] %vm169_vm0, %v9712_v5 }
 0x879   : > { %9743 = vst.msk [vmem:[%s16270_s20 + $0xc0] sm:$0xff] %vm169_vm0, %v9711_v42  ;;  %v12152_v51 = vpop.f32.mrb[26].mxu1 }
 0x87a   : > { %v9714_v43 = vadd.f32 %v12152_v51, %v16266_v49  ;;  %v9618_v54 = vpop.f32.mrb[27].mxu1 }
 0x87b   : > { %v9713_v16 = vadd.f32 %v16266_v49, %v9618_v54 }
 0x87c   : > { %9746 = vst.msk [vmem:[%s16270_s20 + $0xd8] sm:$0xff] %vm169_vm0, %v9714_v43 }
 0x87d   : > { %9745 = vst.msk [vmem:[%s16270_s20 + $0xd0] sm:$0xff] %vm169_vm0, %v9713_v16  ;;  %v12155_v11 = vpop.f32.mrb[28].mxu1 }
 0x87e   : > { %v9716_v19 = vadd.f32 %v12155_v11, %v16266_v49  ;;  %v9628_v7 = vpop.f32.mrb[29].mxu1 }
 0x87f   : > { %v9715_v1 = vadd.f32 %v16266_v49, %v9628_v7 }
 0x880   : > { %9748 = vst.msk [vmem:[%s16270_s20 + $0xe8] sm:$0xff] %vm169_vm0, %v9716_v19 }
 0x881   : > { %9747 = vst.msk [vmem:[%s16270_s20 + $0xe0] sm:$0xff] %vm169_vm0, %v9715_v1  ;;  %v12158_v53 = vpop.f32.mrb[30].mxu1 }
 0x882   : > { %v9718_v26 = vadd.f32 %v12158_v53, %v16266_v49  ;;  %v9638_v34 = vpop.f32.mrb[31].mxu1 }
 0x883   : > { %v9717_v8 = vadd.f32 %v16266_v49, %v9638_v34 }
 0x884   : > { %9750 = vst.msk [vmem:[%s16270_s20 + $0xf8] sm:$0xff] %vm169_vm0, %v9718_v26 }
 0x885   : > { %9749 = vst.msk [vmem:[%s16270_s20 + $0xf0] sm:$0xff] %vm169_vm0, %v9717_v8 }
 0x886   : > { %12893 = shalt.err (!%p12890_p3)
}
 0x887   : > { %s12894_s7 = scalar_lea.hbm %s16366_s29, 4096  ;;  %s12898_s10 = scalar_lea.hbm %s16421_s3, 8192 }
 0x888   : > { %p12895_p4 = scmp.ne.s32.totalorder %s16366_s29, %s12894_s7  ;;  %p12899_p9 = scmp.lt.u32.totalorder %s16366_s29, %s16421_s3 }
 0x889   : > { %p12900_p10 = scmp.lt.u32.totalorder %s12898_s10, %s12894_s7  ;;  %p12902_p12 = scmp.lt.u32.totalorder %s12894_s7, %s16366_s29 }
 0x88a   : > { %p12896_p7 = pnand %p12895_p4, %p13007_p5 }
 0x88b   : > { %p12901_p11 = por %p12900_p10, %p12899_p9 }
 0x88c   : > { %p12897_p8 = pneg %p12896_p7 }
 0x88d   : > { %p12903_p13 = por %p12902_p12, %p12901_p11 }
 0x88f   : > { %p12904_p0 = pnand %p12903_p13, %p12897_p8 }
 0x891   : > { %12907 = shalt.err (!%p12904_p0)
}
 0x892   : > { %s12947_s28 = smov 128   ;;  %s12948_s19 = smov 8  }
 0x893   : > { %12815 = dma.vmem_to_hbm [thread:$0]  (%p13007_p5), %s16368_s25, 4096, %s16366_s29, %s16377_s16, %s12947_s28, %s12947_s28, %s12948_s19  }
 0x894 PF: > { %p12821_p1 = scmp.ge.s32.totalorder %s12942_s15, 2  ;;  %s9780_s20 = sand.u32 1, %s12930_s12  }
 0x895   : > { %s9781_s24 = scalar_lea.sflag [#allocation4], %s9780_s20 }
 0x896   : > { %p12818_p2 = pnand %p12821_p1, %p13011_p6 }
 0x898   : > { %12925 = dma.done.wait (!%p12818_p2), %s9781_s24, 4096  }
 0x899   : > { %12927 = vsyncadd (!%p12818_p2), %s9781_s24, 4294963200  ;;  %p13_p3 = scmp.ge.s32.totalorder %s12994_s18, 4   ;;  %s16678_s12 = smov %s12934_s13 }
 0x89a   : > { %s16679_s13 = smov %s12938_s14  ;;  %s16680_s14 = smov %s13005_s21 }
 0x89b   : > { %s16681_s15 = smov %s12994_s18  ;;  %15 = sbr.rel (!%p13_p3) target bundleno = 3 (0x3), region = 74 }
 0x8a2   :  { %9786 = vsyncpa [#allocation4], 1 }
 0x8a3   :  { %9788 = vsyncpa [#allocation4 + $0x1], 1 }

</bundles_post_ra>
